<compile_context>
chip_gen: v6e
topology: v6e:2x2x1
jax: 0.10.0
libtpu: 0.0.40
codegen_flags: <defaults>
</compile_context>

<pallas_src>
import functools

import jax
import jax.numpy as jnp
from jax.experimental import pallas as pl
from jax.experimental.pallas import tpu as pltpu

LANE = 128
SUBLANE = 8


def _round_up(x, m):
    return (x + m - 1) // m * m


# -----------------------------------------------------------------------------
# Pallas kernel: one bidirectional LSTM layer, both directions interleaved.
# Grid = (time_chunk index,), walked "arbitrary" with fw/bw h/c state resident
# in VMEM scratch across chunks.  Forward works on chunk c, backward on chunk
# n_chunks-1-c, so both dependency chains advance every inner-loop step.
# -----------------------------------------------------------------------------
def _bilstm_kernel(xf_ref, xb_ref, len_ref, wih_ref, whh_ref, b_ref,
                   yf_ref, yb_ref, hn_ref,
                   hf_scr, cf_scr, hb_scr, cb_scr, gxf_scr, gxb_scr,
                   *, time_chunk, unroll):
    # xf_ref  : (Tc*Bp, Din)  forward-direction chunk (time-major rows)
    # xb_ref  : (Tc*Bp, Din)  backward-direction chunk (reverse chunk order)
    # len_ref : (Bp, 1)       int32 sequence lengths (0 for padded batch rows)
    # wih_ref : (2, Din, G)   input->gates weights, [fw, bw]
    # whh_ref : (2, H,   G)   hidden->gates weights
    # b_ref   : (2, 1,   G)   combined bias (b_ih + b_hh), gate-padded to G
    # yf_ref  : (Tc, Bp, H)   forward outputs of this chunk
    # yb_ref  : (Tc, Bp, H)   backward outputs of its (reversed) chunk
    # hn_ref  : (Bp, 2H)      final hidden state [h_fw | h_bw]
    cc = pl.program_id(0)
    n_chunks = pl.num_programs(0)
    Bp, H = hf_scr.shape
    Tc = time_chunk

    @pl.when(cc == 0)
    def _():
        hf_scr[...] = jnp.zeros_like(hf_scr)
        cf_scr[...] = jnp.zeros_like(cf_scr)
        hb_scr[...] = jnp.zeros_like(hb_scr)
        cb_scr[...] = jnp.zeros_like(cb_scr)

    # ---- Hoisted input projections: one big MXU matmul per direction/chunk --
    gxf_scr[...] = jnp.dot(xf_ref[...], wih_ref[0],
                           preferred_element_type=jnp.float32) + b_ref[0]
    gxb_scr[...] = jnp.dot(xb_ref[...], wih_ref[1],
                           preferred_element_type=jnp.float32) + b_ref[1]

    lens = len_ref[...]                       # (Bp, 1) int32
    whh_f = whh_ref[0]                        # (H, G), loop-invariant
    whh_b = whh_ref[1]

    base_f = cc * Tc                          # global time of fw local step 0
    base_b = (n_chunks - 1 - cc) * Tc         # global time of bw chunk start

    def cell(g, c_prev):
        i_g = jax.nn.sigmoid(g[:, 0 * H:1 * H])
        f_g = jax.nn.sigmoid(g[:, 1 * H:2 * H])
        g_g = jnp.tanh(g[:, 2 * H:3 * H])
        o_g = jax.nn.sigmoid(g[:, 3 * H:4 * H])
        c_new = f_g * c_prev + i_g * g_g
        h_new = o_g * jnp.tanh(c_new)
        return h_new, c_new

    def step(s, carry):
        h_f, c_f, h_b, c_b = carry            # vreg-resident state
        sb = Tc - 1 - s                       # backward in-chunk time index
        rf = pl.multiple_of(s * Bp, Bp)
        rb = pl.multiple_of(sb * Bp, Bp)
        g_f = gxf_scr[pl.ds(rf, Bp), :] + jnp.dot(
            h_f, whh_f, preferred_element_type=jnp.float32)
        g_b = gxb_scr[pl.ds(rb, Bp), :] + jnp.dot(
            h_b, whh_b, preferred_element_type=jnp.float32)
        hf_new, cf_new = cell(g_f, c_f)
        hb_new, cb_new = cell(g_b, c_b)
        # Packed-sequence semantics: state frozen and output zero at pads.
        vf = (base_f + s) < lens              # (Bp, 1) bool
        vb = (base_b + sb) < lens
        yf_ref[s] = jnp.where(vf, hf_new, jnp.zeros_like(hf_new))
        yb_ref[sb] = jnp.where(vb, hb_new, jnp.zeros_like(hb_new))
        return (jnp.where(vf, hf_new, h_f), jnp.where(vf, cf_new, c_f),
                jnp.where(vb, hb_new, h_b), jnp.where(vb, cb_new, c_b))

    carry0 = (hf_scr[...], cf_scr[...], hb_scr[...], cb_scr[...])
    h_f, c_f, h_b, c_b = jax.lax.fori_loop(0, Tc, step, carry0, unroll=unroll)

    # Flush state once per chunk for cross-chunk persistence.
    hf_scr[...] = h_f
    cf_scr[...] = c_f
    hb_scr[...] = h_b
    cb_scr[...] = c_b

    @pl.when(cc == n_chunks - 1)
    def _():
        hn_ref[...] = jnp.concatenate([h_f, h_b], axis=-1)


def bilstm_layer_pallas(x_tm, len_col, w_ih2, w_hh2, b2, *, hidden, gate_pad,
                        time_chunk):
    """One bidirectional LSTM layer.

    x_tm   : (Tp, Bp, Din) time-major, batch/time padded
    len_col: (Bp, 1) int32 lengths
    w_ih2  : (2, Din, G)   stacked fw/bw, gate columns padded to G
    w_hh2  : (2, H, G)
    b2     : (2, 1, G)
    returns y_fw (Tp, Bp, H), y_bw (Tp, Bp, H), hn (Bp, 2H)
    """
    Tp, Bp, Din = x_tm.shape
    H, G = hidden, gate_pad
    n_chunks = Tp // time_chunk
    # Row-major (T, B) collapse is a free view; lets the kernel do one big
    # (Tc*Bp, Din) matmul per direction without any in-kernel reshape.
    x2d = x_tm.reshape(Tp * Bp, Din)

    kernel = functools.partial(_bilstm_kernel, time_chunk=time_chunk,
                               unroll=min(8, time_chunk))
    y_fw, y_bw, hn = pl.pallas_call(
        kernel,
        out_shape=(jax.ShapeDtypeStruct((Tp, Bp, H), jnp.float32),
                   jax.ShapeDtypeStruct((Tp, Bp, H), jnp.float32),
                   jax.ShapeDtypeStruct((Bp, 2 * H), jnp.float32)),
        grid_spec=pltpu.PrefetchScalarGridSpec(
            num_scalar_prefetch=0,
            grid=(n_chunks,),
            in_specs=[
                # forward direction walks chunks 0..n-1
                pl.BlockSpec((time_chunk * Bp, Din), lambda c: (c, 0)),
                # backward direction walks chunks n-1..0 (same array)
                pl.BlockSpec((time_chunk * Bp, Din),
                             lambda c: (n_chunks - 1 - c, 0)),
                pl.BlockSpec((Bp, 1), lambda c: (0, 0)),
                pl.BlockSpec((2, Din, G), lambda c: (0, 0, 0)),
                pl.BlockSpec((2, H, G), lambda c: (0, 0, 0)),
                pl.BlockSpec((2, 1, G), lambda c: (0, 0, 0)),
            ],
            out_specs=(
                pl.BlockSpec((time_chunk, Bp, H), lambda c: (c, 0, 0)),
                pl.BlockSpec((time_chunk, Bp, H),
                             lambda c: (n_chunks - 1 - c, 0, 0)),
                pl.BlockSpec((Bp, 2 * H), lambda c: (0, 0)),
            ),
            scratch_shapes=[
                pltpu.VMEM((Bp, H), jnp.float32),                    # h fw
                pltpu.VMEM((Bp, H), jnp.float32),                    # c fw
                pltpu.VMEM((Bp, H), jnp.float32),                    # h bw
                pltpu.VMEM((Bp, H), jnp.float32),                    # c bw
                pltpu.VMEM((time_chunk * Bp, G), jnp.float32),       # gx fw
                pltpu.VMEM((time_chunk * Bp, G), jnp.float32),       # gx bw
            ]),
        compiler_params=pltpu.CompilerParams(
            dimension_semantics=("arbitrary",),
            # stays under v7x's 64 MiB physical VMEM; raise toward ~96 MiB when
            # tuning time_chunk on v5e/v6e (128 MiB physical).
            vmem_limit_bytes=48 * 1024 * 1024),
    )(x2d, x2d, len_col, w_ih2, w_hh2, b2)
    return y_fw, y_bw, hn


# -----------------------------------------------------------------------------
# Full LSTMEncoder forward (bidirectional, batch_first), matching the module
# -----------------------------------------------------------------------------
def lstm_encoder_forward_pallas(embedded_tokens, lengths, kparams, *,
                                num_layers, hidden_dim, time_chunk):
    B, T, _ = embedded_tokens.shape
    Bp = _round_up(B, SUBLANE)
    Tp = _round_up(T, time_chunk)
    G = _round_up(4 * hidden_dim, LANE)

    x = jnp.transpose(embedded_tokens, (1, 0, 2)).astype(jnp.float32)  # (T,B,D)
    x = jnp.pad(x, ((0, Tp - T), (0, Bp - B), (0, 0)))
    len_col = jnp.pad(lengths.astype(jnp.int32), (0, Bp - B))[:, None]  # (Bp,1)

    layer_in = x
    hn = None
    for l in range(num_layers):
        p = kparams[l]
        y_fw, y_bw, hn = bilstm_layer_pallas(
            layer_in, len_col, p['w_ih'], p['w_hh'], p['b'],
            hidden=hidden_dim, gate_pad=G, time_chunk=time_chunk)
        # torch ordering: [fw | bw] halves feed the next layer / final output.
        layer_in = jnp.concatenate([y_fw, y_bw], axis=-1)      # (Tp, Bp, 2H)
        # inter-layer dropout: eval-mode no-op

    output = jnp.transpose(layer_in[:T, :B, :], (1, 0, 2))      # (B, T, 2H)
    sentence_encoding = hn[:B, :]                               # (B, 2H)
    return {'sentence_encoding': sentence_encoding, 'output': output}


# -----------------------------------------------------------------------------
# Parameter generation / layout conversion
# -----------------------------------------------------------------------------
def init_raw_params(key, input_dim, hidden_dim, num_layers):
    """torch.nn.LSTM-style uniform(-1/sqrt(H), 1/sqrt(H)) init, deterministic."""
    k = 1.0 / (hidden_dim ** 0.5)
    raw = []
    for l in range(num_layers):
        din = input_dim if l == 0 else 2 * hidden_dim
        layer = {}
        for d in ('fw', 'bw'):
            key, k1, k2, k3, k4 = jax.random.split(key, 5)
            layer[d] = {
                'w_ih': jax.random.uniform(k1, (4 * hidden_dim, din),
                                           jnp.float32, -k, k),
                'w_hh': jax.random.uniform(k2, (4 * hidden_dim, hidden_dim),
                                           jnp.float32, -k, k),
                'b_ih': jax.random.uniform(k3, (4 * hidden_dim,),
                                           jnp.float32, -k, k),
                'b_hh': jax.random.uniform(k4, (4 * hidden_dim,),
                                           jnp.float32, -k, k),
            }
        raw.append(layer)
    return raw


def ref_params_from_raw(raw):
    out = []
    for layer in raw:
        out.append({d: {'w_ih_t': p['w_ih'].T,            # (din, 4H)
                        'w_hh_t': p['w_hh'].T,            # (H, 4H)
                        'b': (p['b_ih'] + p['b_hh'])[None, :]}
                    for d, p in layer.items()})
    return out


def _pad_gate_cols(w, G):
    """(rows, 4H) -> (rows, G): gate columns kept contiguous, zero-padded."""
    rows, cols = w.shape
    if cols == G:
        return w
    return jnp.zeros((rows, G), w.dtype).at[:, :cols].set(w)


def kernel_params_from_raw(raw, H, G):
    """Gate-padded, direction-stacked params for the fused Pallas kernel."""
    out = []
    for layer in raw:
        wihs, whhs, bs = [], [], []
        for d in ('fw', 'bw'):
            p = layer[d]
            wihs.append(_pad_gate_cols(p['w_ih'].T, G))           # (din, G)
            whhs.append(_pad_gate_cols(p['w_hh'].T, G))           # (H, G)
            bs.append(_pad_gate_cols((p['b_ih'] + p['b_hh'])[None, :], G))
        out.append({'w_ih': jnp.stack(wihs),                      # (2, din, G)
                    'w_hh': jnp.stack(whhs),                      # (2, H, G)
                    'b': jnp.stack(bs)})                          # (2, 1, G)
    return out


# -----------------------------------------------------------------------------
# Pure-JAX reference (unpadded), correctness check only
# -----------------------------------------------------------------------------
def lstm_dir_ref(x_tm, mask_tm, w_ih_t, w_hh_t, b):
    T, B, _ = x_tm.shape
    H = w_hh_t.shape[0]

    def step(carry, inp):
        h, c = carry
        x_t, m_t = inp
        gates = x_t @ w_ih_t + h @ w_hh_t + b
        i_g = jax.nn.sigmoid(gates[:, :H])
        f_g = jax.nn.sigmoid(gates[:, H:2 * H])
        g_g = jnp.tanh(gates[:, 2 * H:3 * H])
        o_g = jax.nn.sigmoid(gates[:, 3 * H:])
        c_new = f_g * c + i_g * g_g
        h_new = o_g * jnp.tanh(c_new)
        h2 = m_t * h_new + (1.0 - m_t) * h
        c2 = m_t * c_new + (1.0 - m_t) * c
        return (h2, c2), m_t * h_new

    init = (jnp.zeros((B, H), jnp.float32), jnp.zeros((B, H), jnp.float32))
    (h_n, _), ys = jax.lax.scan(step, init, (x_tm, mask_tm))
    return ys, h_n


def lstm_encoder_forward_ref(embedded_tokens, lengths, params, num_layers,
                             hidden_dim):
    B, T, _ = embedded_tokens.shape
    x_tm = jnp.transpose(embedded_tokens, (1, 0, 2)).astype(jnp.float32)
    t_idx = jnp.arange(T)[:, None]
    mask = (t_idx < lengths[None, :]).astype(jnp.float32)[:, :, None]  # (T,B,1)

    layer_in = x_tm
    h_fw = h_bw = None
    for l in range(num_layers):
        pf = params[l]['fw']
        y_fw, h_fw = lstm_dir_ref(layer_in, mask, pf['w_ih_t'], pf['w_hh_t'],
                                  pf['b'])
        pb = params[l]['bw']
        y_bw_rev, h_bw = lstm_dir_ref(layer_in[::-1], mask[::-1],
                                      pb['w_ih_t'], pb['w_hh_t'], pb['b'])
        y_bw = y_bw_rev[::-1]
        layer_in = jnp.concatenate([y_fw, y_bw], axis=-1)
    output = jnp.transpose(layer_in, (1, 0, 2))
    sentence_encoding = jnp.concatenate([h_fw, h_bw], axis=-1)
    return {'sentence_encoding': sentence_encoding, 'output': output}


if __name__ == "__main__":
    B, T = 2, 8
    INPUT_DIM, HIDDEN_DIM, NUM_LAYERS = 16, 32, 2
    TIME_CHUNK = 4                           # 2 chunks -> exercises time grid
    G = _round_up(4 * HIDDEN_DIM, LANE)      # total gate width, lane-padded

    key = jax.random.PRNGKey(0)
    key, kx = jax.random.split(key)
    embedded_tokens = jax.random.normal(kx, (B, T, INPUT_DIM), jnp.float32)
    lengths = jnp.array([8, 5], dtype=jnp.int32)    # max(lengths) == T

    raw = init_raw_params(key, INPUT_DIM, HIDDEN_DIM, NUM_LAYERS)
    kparams = kernel_params_from_raw(raw, HIDDEN_DIM, G)
    rparams = ref_params_from_raw(raw)

    fwd = jax.jit(functools.partial(
        lstm_encoder_forward_pallas, num_layers=NUM_LAYERS,
        hidden_dim=HIDDEN_DIM, time_chunk=TIME_CHUNK))

    out = fwd(embedded_tokens, lengths, kparams)
    jax.block_until_ready(out)

    ref = lstm_encoder_forward_ref(embedded_tokens, lengths, rparams,
                                   NUM_LAYERS, HIDDEN_DIM)

    assert out['output'].shape == (B, T, 2 * HIDDEN_DIM)
    assert out['sentence_encoding'].shape == (B, 2 * HIDDEN_DIM)
    assert jnp.allclose(out['output'], ref['output'], atol=1e-5, rtol=1e-5)
    assert jnp.allclose(out['sentence_encoding'], ref['sentence_encoding'],
                        atol=1e-5, rtol=1e-5)

    print("KERNEL_OK")
</pallas_src>

<mosaic_0001>
module attributes {stable_mosaic.version = 11 : i64} {
  func.func @_bilstm_kernel(%arg0: i32, %arg1: memref<32x64xf32, #tpu.memory_space<vmem>>, %arg2: memref<32x64xf32, #tpu.memory_space<vmem>>, %arg3: memref<8x1xi32, #tpu.memory_space<vmem>>, %arg4: memref<2x64x128xf32, #tpu.memory_space<vmem>>, %arg5: memref<2x32x128xf32, #tpu.memory_space<vmem>>, %arg6: memref<2x1x128xf32, #tpu.memory_space<vmem>>, %arg7: memref<4x8x32xf32, #tpu.memory_space<vmem>>, %arg8: memref<4x8x32xf32, #tpu.memory_space<vmem>>, %arg9: memref<8x64xf32, #tpu.memory_space<vmem>>, %arg10: memref<8x32xf32, #tpu.memory_space<vmem>>, %arg11: memref<8x32xf32, #tpu.memory_space<vmem>>, %arg12: memref<8x32xf32, #tpu.memory_space<vmem>>, %arg13: memref<8x32xf32, #tpu.memory_space<vmem>>, %arg14: memref<32x128xf32, #tpu.memory_space<vmem>>, %arg15: memref<32x128xf32, #tpu.memory_space<vmem>>) attributes {dimension_semantics = [#tpu.dimension_semantics<arbitrary>], iteration_bounds = array<i64: 2>, scalar_prefetch = 0 : i64, scratch_operands = 6 : i64, tpu.core_type = #tpu.core_type<tc>, window_params = [{transform_indices = @transform_0, window_bounds = array<i64: 32, 64>}, {transform_indices = @transform_1, window_bounds = array<i64: 32, 64>}, {pipeline_mode = #tpu.pipeline_mode<synchronous>, transform_indices = @transform_2, window_bounds = array<i64: 8, 1>}, {pipeline_mode = #tpu.pipeline_mode<synchronous>, transform_indices = @transform_3, window_bounds = array<i64: 2, 64, 128>}, {pipeline_mode = #tpu.pipeline_mode<synchronous>, transform_indices = @transform_4, window_bounds = array<i64: 2, 32, 128>}, {pipeline_mode = #tpu.pipeline_mode<synchronous>, transform_indices = @transform_5, window_bounds = array<i64: 2, 1, 128>}, {transform_indices = @transform_6, window_bounds = array<i64: 4, 8, 32>}, {transform_indices = @transform_7, window_bounds = array<i64: 4, 8, 32>}, {pipeline_mode = #tpu.pipeline_mode<synchronous>, transform_indices = @transform_8, window_bounds = array<i64: 8, 64>}]} {
    %c0_i32 = arith.constant 0 : i32
    %0 = arith.cmpi eq, %arg0, %c0_i32 : i32
    %1 = arith.extui %0 : i1 to i32
    %c0_i32_0 = arith.constant 0 : i32
    %2 = arith.cmpi ne, %1, %c0_i32_0 : i32
    scf.if %2 {
      %cst_125 = arith.constant 0.000000e+00 : f32
      %428 = vector.broadcast %cst_125 : f32 to vector<8x32xf32>
      %c0_126 = arith.constant 0 : index
      %c0_127 = arith.constant 0 : index
      %429 = vector.load %arg10[%c0_126, %c0_127] : memref<8x32xf32, #tpu.memory_space<vmem>>, vector<8x32xf32>
      tpu.vector_store %arg10[%c0_126, %c0_127], %428 {strides = array<i32>} : memref<8x32xf32, #tpu.memory_space<vmem>>, vector<8x32xf32>,
      %cst_128 = arith.constant 0.000000e+00 : f32
      %430 = vector.broadcast %cst_128 : f32 to vector<8x32xf32>
      %c0_129 = arith.constant 0 : index
      %c0_130 = arith.constant 0 : index
      %431 = vector.load %arg11[%c0_129, %c0_130] : memref<8x32xf32, #tpu.memory_space<vmem>>, vector<8x32xf32>
      tpu.vector_store %arg11[%c0_129, %c0_130], %430 {strides = array<i32>} : memref<8x32xf32, #tpu.memory_space<vmem>>, vector<8x32xf32>,
      %cst_131 = arith.constant 0.000000e+00 : f32
      %432 = vector.broadcast %cst_131 : f32 to vector<8x32xf32>
      %c0_132 = arith.constant 0 : index
      %c0_133 = arith.constant 0 : index
      %433 = vector.load %arg12[%c0_132, %c0_133] : memref<8x32xf32, #tpu.memory_space<vmem>>, vector<8x32xf32>
      tpu.vector_store %arg12[%c0_132, %c0_133], %432 {strides = array<i32>} : memref<8x32xf32, #tpu.memory_space<vmem>>, vector<8x32xf32>,
      %cst_134 = arith.constant 0.000000e+00 : f32
      %434 = vector.broadcast %cst_134 : f32 to vector<8x32xf32>
      %c0_135 = arith.constant 0 : index
      %c0_136 = arith.constant 0 : index
      %435 = vector.load %arg13[%c0_135, %c0_136] : memref<8x32xf32, #tpu.memory_space<vmem>>, vector<8x32xf32>
      tpu.vector_store %arg13[%c0_135, %c0_136], %434 {strides = array<i32>} : memref<8x32xf32, #tpu.memory_space<vmem>>, vector<8x32xf32>,
    } else {
    }
    %c0 = arith.constant 0 : index
    %c0_1 = arith.constant 0 : index
    %3 = vector.load %arg1[%c0, %c0_1] : memref<32x64xf32, #tpu.memory_space<vmem>>, vector<32x64xf32>
    %c0_2 = arith.constant 0 : index
    %c0_3 = arith.constant 0 : index
    %c0_4 = arith.constant 0 : index
    %4 = vector.load %arg4[%c0_2, %c0_3, %c0_4] : memref<2x64x128xf32, #tpu.memory_space<vmem>>, vector<1x64x128xf32>
    %5 = vector.shape_cast %4 : vector<1x64x128xf32> to vector<64x128xf32>
    %cst = arith.constant dense<0.000000e+00> : vector<32x128xf32>
    %6 = tpu.matmul %3, %5, %cst {dimension_numbers = #tpu.dot_dimension_numbers<[1], [0], [0], [1], [0, 0, 1, 1], [], []>} : vector<32x64xf32>, vector<64x128xf32>, vector<32x128xf32> -> vector<32x128xf32>
    %c0_5 = arith.constant 0 : index
    %c0_6 = arith.constant 0 : index
    %c0_7 = arith.constant 0 : index
    %7 = vector.load %arg6[%c0_5, %c0_6, %c0_7] : memref<2x1x128xf32, #tpu.memory_space<vmem>>, vector<1x1x128xf32>
    %8 = vector.shape_cast %7 : vector<1x1x128xf32> to vector<1x128xf32>
    %9 = vector.broadcast %8 : vector<1x128xf32> to vector<32x128xf32>
    %10 = arith.addf %6, %9 : vector<32x128xf32>
    %c0_8 = arith.constant 0 : index
    %c0_9 = arith.constant 0 : index
    %11 = vector.load %arg14[%c0_8, %c0_9] : memref<32x128xf32, #tpu.memory_space<vmem>>, vector<32x128xf32>
    tpu.vector_store %arg14[%c0_8, %c0_9], %10 {strides = array<i32>} : memref<32x128xf32, #tpu.memory_space<vmem>>, vector<32x128xf32>,
    %c0_10 = arith.constant 0 : index
    %c0_11 = arith.constant 0 : index
    %12 = vector.load %arg2[%c0_10, %c0_11] : memref<32x64xf32, #tpu.memory_space<vmem>>, vector<32x64xf32>
    %c1 = arith.constant 1 : index
    %c0_12 = arith.constant 0 : index
    %c0_13 = arith.constant 0 : index
    %13 = vector.load %arg4[%c1, %c0_12, %c0_13] : memref<2x64x128xf32, #tpu.memory_space<vmem>>, vector<1x64x128xf32>
    %14 = vector.shape_cast %13 : vector<1x64x128xf32> to vector<64x128xf32>
    %cst_14 = arith.constant dense<0.000000e+00> : vector<32x128xf32>
    %15 = tpu.matmul %12, %14, %cst_14 {dimension_numbers = #tpu.dot_dimension_numbers<[1], [0], [0], [1], [0, 0, 1, 1], [], []>} : vector<32x64xf32>, vector<64x128xf32>, vector<32x128xf32> -> vector<32x128xf32>
    %c1_15 = arith.constant 1 : index
    %c0_16 = arith.constant 0 : index
    %c0_17 = arith.constant 0 : index
    %16 = vector.load %arg6[%c1_15, %c0_16, %c0_17] : memref<2x1x128xf32, #tpu.memory_space<vmem>>, vector<1x1x128xf32>
    %17 = vector.shape_cast %16 : vector<1x1x128xf32> to vector<1x128xf32>
    %18 = vector.broadcast %17 : vector<1x128xf32> to vector<32x128xf32>
    %19 = arith.addf %15, %18 : vector<32x128xf32>
    %c0_18 = arith.constant 0 : index
    %c0_19 = arith.constant 0 : index
    %20 = vector.load %arg15[%c0_18, %c0_19] : memref<32x128xf32, #tpu.memory_space<vmem>>, vector<32x128xf32>
    tpu.vector_store %arg15[%c0_18, %c0_19], %19 {strides = array<i32>} : memref<32x128xf32, #tpu.memory_space<vmem>>, vector<32x128xf32>,
    %c0_20 = arith.constant 0 : index
    %c0_21 = arith.constant 0 : index
    %21 = vector.load %arg3[%c0_20, %c0_21] : memref<8x1xi32, #tpu.memory_space<vmem>>, vector<8x1xi32>
    %c0_22 = arith.constant 0 : index
    %c0_23 = arith.constant 0 : index
    %c0_24 = arith.constant 0 : index
    %22 = vector.load %arg5[%c0_22, %c0_23, %c0_24] : memref<2x32x128xf32, #tpu.memory_space<vmem>>, vector<1x32x128xf32>
    %23 = vector.shape_cast %22 : vector<1x32x128xf32> to vector<32x128xf32>
    %c1_25 = arith.constant 1 : index
    %c0_26 = arith.constant 0 : index
    %c0_27 = arith.constant 0 : index
    %24 = vector.load %arg5[%c1_25, %c0_26, %c0_27] : memref<2x32x128xf32, #tpu.memory_space<vmem>>, vector<1x32x128xf32>
    %25 = vector.shape_cast %24 : vector<1x32x128xf32> to vector<32x128xf32>
    %c4_i32 = arith.constant 4 : i32
    %26 = arith.muli %arg0, %c4_i32 : i32
    %c1_i32 = arith.constant 1 : i32
    %27 = arith.subi %c1_i32, %arg0 : i32
    %c4_i32_28 = arith.constant 4 : i32
    %28 = arith.muli %27, %c4_i32_28 : i32
    %c0_29 = arith.constant 0 : index
    %c0_30 = arith.constant 0 : index
    %29 = vector.load %arg10[%c0_29, %c0_30] : memref<8x32xf32, #tpu.memory_space<vmem>>, vector<8x32xf32>
    %c0_31 = arith.constant 0 : index
    %c0_32 = arith.constant 0 : index
    %30 = vector.load %arg11[%c0_31, %c0_32] : memref<8x32xf32, #tpu.memory_space<vmem>>, vector<8x32xf32>
    %c0_33 = arith.constant 0 : index
    %c0_34 = arith.constant 0 : index
    %31 = vector.load %arg12[%c0_33, %c0_34] : memref<8x32xf32, #tpu.memory_space<vmem>>, vector<8x32xf32>
    %c0_35 = arith.constant 0 : index
    %c0_36 = arith.constant 0 : index
    %32 = vector.load %arg13[%c0_35, %c0_36] : memref<8x32xf32, #tpu.memory_space<vmem>>, vector<8x32xf32>
    %c0_i32_37 = arith.constant 0 : i32
    %c3_i32 = arith.constant 3 : i32
    %33 = arith.subi %c3_i32, %c0_i32_37 : i32
    %c8_i32 = arith.constant 8 : i32
    %34 = arith.muli %c0_i32_37, %c8_i32 : i32
    %35 = tpu.assume_multiple %34, 8 : i32
    %c8_i32_38 = arith.constant 8 : i32
    %36 = arith.muli %33, %c8_i32_38 : i32
    %37 = tpu.assume_multiple %36, 8 : i32
    %38 = arith.index_cast %35 : i32 to index
    %c0_39 = arith.constant 0 : index
    %39 = vector.load %arg14[%38, %c0_39] : memref<32x128xf32, #tpu.memory_space<vmem>>, vector<8x128xf32>
    %cst_40 = arith.constant dense<0.000000e+00> : vector<8x128xf32>
    %40 = tpu.matmul %29, %23, %cst_40 {dimension_numbers = #tpu.dot_dimension_numbers<[1], [0], [0], [1], [0, 0, 1, 1], [], []>} : vector<8x32xf32>, vector<32x128xf32>, vector<8x128xf32> -> vector<8x128xf32>
    %41 = arith.addf %39, %40 : vector<8x128xf32>
    %42 = arith.index_cast %37 : i32 to index
    %c0_41 = arith.constant 0 : index
    %43 = vector.load %arg15[%42, %c0_41] : memref<32x128xf32, #tpu.memory_space<vmem>>, vector<8x128xf32>
    %cst_42 = arith.constant dense<0.000000e+00> : vector<8x128xf32>
    %44 = tpu.matmul %31, %25, %cst_42 {dimension_numbers = #tpu.dot_dimension_numbers<[1], [0], [0], [1], [0, 0, 1, 1], [], []>} : vector<8x32xf32>, vector<32x128xf32>, vector<8x128xf32> -> vector<8x128xf32>
    %45 = arith.addf %43, %44 : vector<8x128xf32>
    %46 = vector.extract_strided_slice %41 {offsets = [0, 0], sizes = [8, 32], strides = [1, 1]} : vector<8x128xf32> to vector<8x32xf32>
    %47 = arith.negf %46 : vector<8x32xf32>
    %48 = math.exp %47 : vector<8x32xf32>
    %cst_43 = arith.constant 1.000000e+00 : f32
    %49 = vector.broadcast %cst_43 : f32 to vector<8x32xf32>
    %50 = arith.addf %49, %48 : vector<8x32xf32>
    %51 = arith.divf %49, %50 : vector<8x32xf32>
    %52 = vector.extract_strided_slice %41 {offsets = [0, 32], sizes = [8, 32], strides = [1, 1]} : vector<8x128xf32> to vector<8x32xf32>
    %53 = arith.negf %52 : vector<8x32xf32>
    %54 = math.exp %53 : vector<8x32xf32>
    %cst_44 = arith.constant 1.000000e+00 : f32
    %55 = vector.broadcast %cst_44 : f32 to vector<8x32xf32>
    %56 = arith.addf %55, %54 : vector<8x32xf32>
    %57 = arith.divf %55, %56 : vector<8x32xf32>
    %58 = vector.extract_strided_slice %41 {offsets = [0, 64], sizes = [8, 32], strides = [1, 1]} : vector<8x128xf32> to vector<8x32xf32>
    %59 = math.tanh %58 : vector<8x32xf32>
    %60 = vector.extract_strided_slice %41 {offsets = [0, 96], sizes = [8, 32], strides = [1, 1]} : vector<8x128xf32> to vector<8x32xf32>
    %61 = arith.negf %60 : vector<8x32xf32>
    %62 = math.exp %61 : vector<8x32xf32>
    %cst_45 = arith.constant 1.000000e+00 : f32
    %63 = vector.broadcast %cst_45 : f32 to vector<8x32xf32>
    %64 = arith.addf %63, %62 : vector<8x32xf32>
    %65 = arith.divf %63, %64 : vector<8x32xf32>
    %66 = arith.mulf %57, %30 : vector<8x32xf32>
    %67 = arith.mulf %51, %59 : vector<8x32xf32>
    %68 = arith.addf %66, %67 : vector<8x32xf32>
    %69 = math.tanh %68 : vector<8x32xf32>
    %70 = arith.mulf %65, %69 : vector<8x32xf32>
    %71 = vector.extract_strided_slice %45 {offsets = [0, 0], sizes = [8, 32], strides = [1, 1]} : vector<8x128xf32> to vector<8x32xf32>
    %72 = arith.negf %71 : vector<8x32xf32>
    %73 = math.exp %72 : vector<8x32xf32>
    %cst_46 = arith.constant 1.000000e+00 : f32
    %74 = vector.broadcast %cst_46 : f32 to vector<8x32xf32>
    %75 = arith.addf %74, %73 : vector<8x32xf32>
    %76 = arith.divf %74, %75 : vector<8x32xf32>
    %77 = vector.extract_strided_slice %45 {offsets = [0, 32], sizes = [8, 32], strides = [1, 1]} : vector<8x128xf32> to vector<8x32xf32>
    %78 = arith.negf %77 : vector<8x32xf32>
    %79 = math.exp %78 : vector<8x32xf32>
    %cst_47 = arith.constant 1.000000e+00 : f32
    %80 = vector.broadcast %cst_47 : f32 to vector<8x32xf32>
    %81 = arith.addf %80, %79 : vector<8x32xf32>
    %82 = arith.divf %80, %81 : vector<8x32xf32>
    %83 = vector.extract_strided_slice %45 {offsets = [0, 64], sizes = [8, 32], strides = [1, 1]} : vector<8x128xf32> to vector<8x32xf32>
    %84 = math.tanh %83 : vector<8x32xf32>
    %85 = vector.extract_strided_slice %45 {offsets = [0, 96], sizes = [8, 32], strides = [1, 1]} : vector<8x128xf32> to vector<8x32xf32>
    %86 = arith.negf %85 : vector<8x32xf32>
    %87 = math.exp %86 : vector<8x32xf32>
    %cst_48 = arith.constant 1.000000e+00 : f32
    %88 = vector.broadcast %cst_48 : f32 to vector<8x32xf32>
    %89 = arith.addf %88, %87 : vector<8x32xf32>
    %90 = arith.divf %88, %89 : vector<8x32xf32>
    %91 = arith.mulf %82, %32 : vector<8x32xf32>
    %92 = arith.mulf %76, %84 : vector<8x32xf32>
    %93 = arith.addf %91, %92 : vector<8x32xf32>
    %94 = math.tanh %93 : vector<8x32xf32>
    %95 = arith.mulf %90, %94 : vector<8x32xf32>
    %96 = arith.addi %26, %c0_i32_37 : i32
    %97 = vector.broadcast %96 : i32 to vector<8x1xi32>
    %98 = arith.cmpi slt, %97, %21 : vector<8x1xi32>
    %99 = arith.addi %28, %33 : i32
    %100 = vector.broadcast %99 : i32 to vector<8x1xi32>
    %101 = arith.cmpi slt, %100, %21 : vector<8x1xi32>
    %cst_49 = arith.constant 0.000000e+00 : f32
    %102 = vector.broadcast %cst_49 : f32 to vector<8x32xf32>
    %103 = vector.shape_cast %98 : vector<8x1xi1> to vector<8x1xi1>
    %104 = vector.broadcast %103 : vector<8x1xi1> to vector<8x32xi1>
    %105 = arith.select %104, %70, %102 : vector<8x32xi1>, vector<8x32xf32>
    %106 = arith.index_cast %c0_i32_37 : i32 to index
    %c0_50 = arith.constant 0 : index
    %c0_51 = arith.constant 0 : index
    %107 = vector.load %arg7[%106, %c0_50, %c0_51] : memref<4x8x32xf32, #tpu.memory_space<vmem>>, vector<1x8x32xf32>
    %108 = vector.shape_cast %107 : vector<1x8x32xf32> to vector<8x32xf32>
    %109 = vector.shape_cast %105 : vector<8x32xf32> to vector<1x8x32xf32>
    tpu.vector_store %arg7[%106, %c0_50, %c0_51], %109 {strides = array<i32>} : memref<4x8x32xf32, #tpu.memory_space<vmem>>, vector<1x8x32xf32>,
    %cst_52 = arith.constant 0.000000e+00 : f32
    %110 = vector.broadcast %cst_52 : f32 to vector<8x32xf32>
    %111 = vector.shape_cast %101 : vector<8x1xi1> to vector<8x1xi1>
    %112 = vector.broadcast %111 : vector<8x1xi1> to vector<8x32xi1>
    %113 = arith.select %112, %95, %110 : vector<8x32xi1>, vector<8x32xf32>
    %114 = arith.index_cast %33 : i32 to index
    %c0_53 = arith.constant 0 : index
    %c0_54 = arith.constant 0 : index
    %115 = vector.load %arg8[%114, %c0_53, %c0_54] : memref<4x8x32xf32, #tpu.memory_space<vmem>>, vector<1x8x32xf32>
    %116 = vector.shape_cast %115 : vector<1x8x32xf32> to vector<8x32xf32>
    %117 = vector.shape_cast %113 : vector<8x32xf32> to vector<1x8x32xf32>
    tpu.vector_store %arg8[%114, %c0_53, %c0_54], %117 {strides = array<i32>} : memref<4x8x32xf32, #tpu.memory_space<vmem>>, vector<1x8x32xf32>,
    %118 = vector.shape_cast %98 : vector<8x1xi1> to vector<8x1xi1>
    %119 = vector.broadcast %118 : vector<8x1xi1> to vector<8x32xi1>
    %120 = arith.select %119, %70, %29 : vector<8x32xi1>, vector<8x32xf32>
    %121 = vector.shape_cast %98 : vector<8x1xi1> to vector<8x1xi1>
    %122 = vector.broadcast %121 : vector<8x1xi1> to vector<8x32xi1>
    %123 = arith.select %122, %68, %30 : vector<8x32xi1>, vector<8x32xf32>
    %124 = vector.shape_cast %101 : vector<8x1xi1> to vector<8x1xi1>
    %125 = vector.broadcast %124 : vector<8x1xi1> to vector<8x32xi1>
    %126 = arith.select %125, %95, %31 : vector<8x32xi1>, vector<8x32xf32>
    %127 = vector.shape_cast %101 : vector<8x1xi1> to vector<8x1xi1>
    %128 = vector.broadcast %127 : vector<8x1xi1> to vector<8x32xi1>
    %129 = arith.select %128, %93, %32 : vector<8x32xi1>, vector<8x32xf32>
    %c1_i32_55 = arith.constant 1 : i32
    %c3_i32_56 = arith.constant 3 : i32
    %130 = arith.subi %c3_i32_56, %c1_i32_55 : i32
    %c8_i32_57 = arith.constant 8 : i32
    %131 = arith.muli %c1_i32_55, %c8_i32_57 : i32
    %132 = tpu.assume_multiple %131, 8 : i32
    %c8_i32_58 = arith.constant 8 : i32
    %133 = arith.muli %130, %c8_i32_58 : i32
    %134 = tpu.assume_multiple %133, 8 : i32
    %135 = arith.index_cast %132 : i32 to index
    %c0_59 = arith.constant 0 : index
    %136 = vector.load %arg14[%135, %c0_59] : memref<32x128xf32, #tpu.memory_space<vmem>>, vector<8x128xf32>
    %cst_60 = arith.constant dense<0.000000e+00> : vector<8x128xf32>
    %137 = tpu.matmul %120, %23, %cst_60 {dimension_numbers = #tpu.dot_dimension_numbers<[1], [0], [0], [1], [0, 0, 1, 1], [], []>} : vector<8x32xf32>, vector<32x128xf32>, vector<8x128xf32> -> vector<8x128xf32>
    %138 = arith.addf %136, %137 : vector<8x128xf32>
    %139 = arith.index_cast %134 : i32 to index
    %c0_61 = arith.constant 0 : index
    %140 = vector.load %arg15[%139, %c0_61] : memref<32x128xf32, #tpu.memory_space<vmem>>, vector<8x128xf32>
    %cst_62 = arith.constant dense<0.000000e+00> : vector<8x128xf32>
    %141 = tpu.matmul %126, %25, %cst_62 {dimension_numbers = #tpu.dot_dimension_numbers<[1], [0], [0], [1], [0, 0, 1, 1], [], []>} : vector<8x32xf32>, vector<32x128xf32>, vector<8x128xf32> -> vector<8x128xf32>
    %142 = arith.addf %140, %141 : vector<8x128xf32>
    %143 = vector.extract_strided_slice %138 {offsets = [0, 0], sizes = [8, 32], strides = [1, 1]} : vector<8x128xf32> to vector<8x32xf32>
    %144 = arith.negf %143 : vector<8x32xf32>
    %145 = math.exp %144 : vector<8x32xf32>
    %cst_63 = arith.constant 1.000000e+00 : f32
    %146 = vector.broadcast %cst_63 : f32 to vector<8x32xf32>
    %147 = arith.addf %146, %145 : vector<8x32xf32>
    %148 = arith.divf %146, %147 : vector<8x32xf32>
    %149 = vector.extract_strided_slice %138 {offsets = [0, 32], sizes = [8, 32], strides = [1, 1]} : vector<8x128xf32> to vector<8x32xf32>
    %150 = arith.negf %149 : vector<8x32xf32>
    %151 = math.exp %150 : vector<8x32xf32>
    %cst_64 = arith.constant 1.000000e+00 : f32
    %152 = vector.broadcast %cst_64 : f32 to vector<8x32xf32>
    %153 = arith.addf %152, %151 : vector<8x32xf32>
    %154 = arith.divf %152, %153 : vector<8x32xf32>
    %155 = vector.extract_strided_slice %138 {offsets = [0, 64], sizes = [8, 32], strides = [1, 1]} : vector<8x128xf32> to vector<8x32xf32>
    %156 = math.tanh %155 : vector<8x32xf32>
    %157 = vector.extract_strided_slice %138 {offsets = [0, 96], sizes = [8, 32], strides = [1, 1]} : vector<8x128xf32> to vector<8x32xf32>
    %158 = arith.negf %157 : vector<8x32xf32>
    %159 = math.exp %158 : vector<8x32xf32>
    %cst_65 = arith.constant 1.000000e+00 : f32
    %160 = vector.broadcast %cst_65 : f32 to vector<8x32xf32>
    %161 = arith.addf %160, %159 : vector<8x32xf32>
    %162 = arith.divf %160, %161 : vector<8x32xf32>
    %163 = arith.mulf %154, %123 : vector<8x32xf32>
    %164 = arith.mulf %148, %156 : vector<8x32xf32>
    %165 = arith.addf %163, %164 : vector<8x32xf32>
    %166 = math.tanh %165 : vector<8x32xf32>
    %167 = arith.mulf %162, %166 : vector<8x32xf32>
    %168 = vector.extract_strided_slice %142 {offsets = [0, 0], sizes = [8, 32], strides = [1, 1]} : vector<8x128xf32> to vector<8x32xf32>
    %169 = arith.negf %168 : vector<8x32xf32>
    %170 = math.exp %169 : vector<8x32xf32>
    %cst_66 = arith.constant 1.000000e+00 : f32
    %171 = vector.broadcast %cst_66 : f32 to vector<8x32xf32>
    %172 = arith.addf %171, %170 : vector<8x32xf32>
    %173 = arith.divf %171, %172 : vector<8x32xf32>
    %174 = vector.extract_strided_slice %142 {offsets = [0, 32], sizes = [8, 32], strides = [1, 1]} : vector<8x128xf32> to vector<8x32xf32>
    %175 = arith.negf %174 : vector<8x32xf32>
    %176 = math.exp %175 : vector<8x32xf32>
    %cst_67 = arith.constant 1.000000e+00 : f32
    %177 = vector.broadcast %cst_67 : f32 to vector<8x32xf32>
    %178 = arith.addf %177, %176 : vector<8x32xf32>
    %179 = arith.divf %177, %178 : vector<8x32xf32>
    %180 = vector.extract_strided_slice %142 {offsets = [0, 64], sizes = [8, 32], strides = [1, 1]} : vector<8x128xf32> to vector<8x32xf32>
    %181 = math.tanh %180 : vector<8x32xf32>
    %182 = vector.extract_strided_slice %142 {offsets = [0, 96], sizes = [8, 32], strides = [1, 1]} : vector<8x128xf32> to vector<8x32xf32>
    %183 = arith.negf %182 : vector<8x32xf32>
    %184 = math.exp %183 : vector<8x32xf32>
    %cst_68 = arith.constant 1.000000e+00 : f32
    %185 = vector.broadcast %cst_68 : f32 to vector<8x32xf32>
    %186 = arith.addf %185, %184 : vector<8x32xf32>
    %187 = arith.divf %185, %186 : vector<8x32xf32>
    %188 = arith.mulf %179, %129 : vector<8x32xf32>
    %189 = arith.mulf %173, %181 : vector<8x32xf32>
    %190 = arith.addf %188, %189 : vector<8x32xf32>
    %191 = math.tanh %190 : vector<8x32xf32>
    %192 = arith.mulf %187, %191 : vector<8x32xf32>
    %193 = arith.addi %26, %c1_i32_55 : i32
    %194 = vector.broadcast %193 : i32 to vector<8x1xi32>
    %195 = arith.cmpi slt, %194, %21 : vector<8x1xi32>
    %196 = arith.addi %28, %130 : i32
    %197 = vector.broadcast %196 : i32 to vector<8x1xi32>
    %198 = arith.cmpi slt, %197, %21 : vector<8x1xi32>
    %cst_69 = arith.constant 0.000000e+00 : f32
    %199 = vector.broadcast %cst_69 : f32 to vector<8x32xf32>
    %200 = vector.shape_cast %195 : vector<8x1xi1> to vector<8x1xi1>
    %201 = vector.broadcast %200 : vector<8x1xi1> to vector<8x32xi1>
    %202 = arith.select %201, %167, %199 : vector<8x32xi1>, vector<8x32xf32>
    %203 = arith.index_cast %c1_i32_55 : i32 to index
    %c0_70 = arith.constant 0 : index
    %c0_71 = arith.constant 0 : index
    %204 = vector.load %arg7[%203, %c0_70, %c0_71] : memref<4x8x32xf32, #tpu.memory_space<vmem>>, vector<1x8x32xf32>
    %205 = vector.shape_cast %204 : vector<1x8x32xf32> to vector<8x32xf32>
    %206 = vector.shape_cast %202 : vector<8x32xf32> to vector<1x8x32xf32>
    tpu.vector_store %arg7[%203, %c0_70, %c0_71], %206 {strides = array<i32>} : memref<4x8x32xf32, #tpu.memory_space<vmem>>, vector<1x8x32xf32>,
    %cst_72 = arith.constant 0.000000e+00 : f32
    %207 = vector.broadcast %cst_72 : f32 to vector<8x32xf32>
    %208 = vector.shape_cast %198 : vector<8x1xi1> to vector<8x1xi1>
    %209 = vector.broadcast %208 : vector<8x1xi1> to vector<8x32xi1>
    %210 = arith.select %209, %192, %207 : vector<8x32xi1>, vector<8x32xf32>
    %211 = arith.index_cast %130 : i32 to index
    %c0_73 = arith.constant 0 : index
    %c0_74 = arith.constant 0 : index
    %212 = vector.load %arg8[%211, %c0_73, %c0_74] : memref<4x8x32xf32, #tpu.memory_space<vmem>>, vector<1x8x32xf32>
    %213 = vector.shape_cast %212 : vector<1x8x32xf32> to vector<8x32xf32>
    %214 = vector.shape_cast %210 : vector<8x32xf32> to vector<1x8x32xf32>
    tpu.vector_store %arg8[%211, %c0_73, %c0_74], %214 {strides = array<i32>} : memref<4x8x32xf32, #tpu.memory_space<vmem>>, vector<1x8x32xf32>,
    %215 = vector.shape_cast %195 : vector<8x1xi1> to vector<8x1xi1>
    %216 = vector.broadcast %215 : vector<8x1xi1> to vector<8x32xi1>
    %217 = arith.select %216, %167, %120 : vector<8x32xi1>, vector<8x32xf32>
    %218 = vector.shape_cast %195 : vector<8x1xi1> to vector<8x1xi1>
    %219 = vector.broadcast %218 : vector<8x1xi1> to vector<8x32xi1>
    %220 = arith.select %219, %165, %123 : vector<8x32xi1>, vector<8x32xf32>
    %221 = vector.shape_cast %198 : vector<8x1xi1> to vector<8x1xi1>
    %222 = vector.broadcast %221 : vector<8x1xi1> to vector<8x32xi1>
    %223 = arith.select %222, %192, %126 : vector<8x32xi1>, vector<8x32xf32>
    %224 = vector.shape_cast %198 : vector<8x1xi1> to vector<8x1xi1>
    %225 = vector.broadcast %224 : vector<8x1xi1> to vector<8x32xi1>
    %226 = arith.select %225, %190, %129 : vector<8x32xi1>, vector<8x32xf32>
    %c2_i32 = arith.constant 2 : i32
    %c3_i32_75 = arith.constant 3 : i32
    %227 = arith.subi %c3_i32_75, %c2_i32 : i32
    %c8_i32_76 = arith.constant 8 : i32
    %228 = arith.muli %c2_i32, %c8_i32_76 : i32
    %229 = tpu.assume_multiple %228, 8 : i32
    %c8_i32_77 = arith.constant 8 : i32
    %230 = arith.muli %227, %c8_i32_77 : i32
    %231 = tpu.assume_multiple %230, 8 : i32
    %232 = arith.index_cast %229 : i32 to index
    %c0_78 = arith.constant 0 : index
    %233 = vector.load %arg14[%232, %c0_78] : memref<32x128xf32, #tpu.memory_space<vmem>>, vector<8x128xf32>
    %cst_79 = arith.constant dense<0.000000e+00> : vector<8x128xf32>
    %234 = tpu.matmul %217, %23, %cst_79 {dimension_numbers = #tpu.dot_dimension_numbers<[1], [0], [0], [1], [0, 0, 1, 1], [], []>} : vector<8x32xf32>, vector<32x128xf32>, vector<8x128xf32> -> vector<8x128xf32>
    %235 = arith.addf %233, %234 : vector<8x128xf32>
    %236 = arith.index_cast %231 : i32 to index
    %c0_80 = arith.constant 0 : index
    %237 = vector.load %arg15[%236, %c0_80] : memref<32x128xf32, #tpu.memory_space<vmem>>, vector<8x128xf32>
    %cst_81 = arith.constant dense<0.000000e+00> : vector<8x128xf32>
    %238 = tpu.matmul %223, %25, %cst_81 {dimension_numbers = #tpu.dot_dimension_numbers<[1], [0], [0], [1], [0, 0, 1, 1], [], []>} : vector<8x32xf32>, vector<32x128xf32>, vector<8x128xf32> -> vector<8x128xf32>
    %239 = arith.addf %237, %238 : vector<8x128xf32>
    %240 = vector.extract_strided_slice %235 {offsets = [0, 0], sizes = [8, 32], strides = [1, 1]} : vector<8x128xf32> to vector<8x32xf32>
    %241 = arith.negf %240 : vector<8x32xf32>
    %242 = math.exp %241 : vector<8x32xf32>
    %cst_82 = arith.constant 1.000000e+00 : f32
    %243 = vector.broadcast %cst_82 : f32 to vector<8x32xf32>
    %244 = arith.addf %243, %242 : vector<8x32xf32>
    %245 = arith.divf %243, %244 : vector<8x32xf32>
    %246 = vector.extract_strided_slice %235 {offsets = [0, 32], sizes = [8, 32], strides = [1, 1]} : vector<8x128xf32> to vector<8x32xf32>
    %247 = arith.negf %246 : vector<8x32xf32>
    %248 = math.exp %247 : vector<8x32xf32>
    %cst_83 = arith.constant 1.000000e+00 : f32
    %249 = vector.broadcast %cst_83 : f32 to vector<8x32xf32>
    %250 = arith.addf %249, %248 : vector<8x32xf32>
    %251 = arith.divf %249, %250 : vector<8x32xf32>
    %252 = vector.extract_strided_slice %235 {offsets = [0, 64], sizes = [8, 32], strides = [1, 1]} : vector<8x128xf32> to vector<8x32xf32>
    %253 = math.tanh %252 : vector<8x32xf32>
    %254 = vector.extract_strided_slice %235 {offsets = [0, 96], sizes = [8, 32], strides = [1, 1]} : vector<8x128xf32> to vector<8x32xf32>
    %255 = arith.negf %254 : vector<8x32xf32>
    %256 = math.exp %255 : vector<8x32xf32>
    %cst_84 = arith.constant 1.000000e+00 : f32
    %257 = vector.broadcast %cst_84 : f32 to vector<8x32xf32>
    %258 = arith.addf %257, %256 : vector<8x32xf32>
    %259 = arith.divf %257, %258 : vector<8x32xf32>
    %260 = arith.mulf %251, %220 : vector<8x32xf32>
    %261 = arith.mulf %245, %253 : vector<8x32xf32>
    %262 = arith.addf %260, %261 : vector<8x32xf32>
    %263 = math.tanh %262 : vector<8x32xf32>
    %264 = arith.mulf %259, %263 : vector<8x32xf32>
    %265 = vector.extract_strided_slice %239 {offsets = [0, 0], sizes = [8, 32], strides = [1, 1]} : vector<8x128xf32> to vector<8x32xf32>
    %266 = arith.negf %265 : vector<8x32xf32>
    %267 = math.exp %266 : vector<8x32xf32>
    %cst_85 = arith.constant 1.000000e+00 : f32
    %268 = vector.broadcast %cst_85 : f32 to vector<8x32xf32>
    %269 = arith.addf %268, %267 : vector<8x32xf32>
    %270 = arith.divf %268, %269 : vector<8x32xf32>
    %271 = vector.extract_strided_slice %239 {offsets = [0, 32], sizes = [8, 32], strides = [1, 1]} : vector<8x128xf32> to vector<8x32xf32>
    %272 = arith.negf %271 : vector<8x32xf32>
    %273 = math.exp %272 : vector<8x32xf32>
    %cst_86 = arith.constant 1.000000e+00 : f32
    %274 = vector.broadcast %cst_86 : f32 to vector<8x32xf32>
    %275 = arith.addf %274, %273 : vector<8x32xf32>
    %276 = arith.divf %274, %275 : vector<8x32xf32>
    %277 = vector.extract_strided_slice %239 {offsets = [0, 64], sizes = [8, 32], strides = [1, 1]} : vector<8x128xf32> to vector<8x32xf32>
    %278 = math.tanh %277 : vector<8x32xf32>
    %279 = vector.extract_strided_slice %239 {offsets = [0, 96], sizes = [8, 32], strides = [1, 1]} : vector<8x128xf32> to vector<8x32xf32>
    %280 = arith.negf %279 : vector<8x32xf32>
    %281 = math.exp %280 : vector<8x32xf32>
    %cst_87 = arith.constant 1.000000e+00 : f32
    %282 = vector.broadcast %cst_87 : f32 to vector<8x32xf32>
    %283 = arith.addf %282, %281 : vector<8x32xf32>
    %284 = arith.divf %282, %283 : vector<8x32xf32>
    %285 = arith.mulf %276, %226 : vector<8x32xf32>
    %286 = arith.mulf %270, %278 : vector<8x32xf32>
    %287 = arith.addf %285, %286 : vector<8x32xf32>
    %288 = math.tanh %287 : vector<8x32xf32>
    %289 = arith.mulf %284, %288 : vector<8x32xf32>
    %290 = arith.addi %26, %c2_i32 : i32
    %291 = vector.broadcast %290 : i32 to vector<8x1xi32>
    %292 = arith.cmpi slt, %291, %21 : vector<8x1xi32>
    %293 = arith.addi %28, %227 : i32
    %294 = vector.broadcast %293 : i32 to vector<8x1xi32>
    %295 = arith.cmpi slt, %294, %21 : vector<8x1xi32>
    %cst_88 = arith.constant 0.000000e+00 : f32
    %296 = vector.broadcast %cst_88 : f32 to vector<8x32xf32>
    %297 = vector.shape_cast %292 : vector<8x1xi1> to vector<8x1xi1>
    %298 = vector.broadcast %297 : vector<8x1xi1> to vector<8x32xi1>
    %299 = arith.select %298, %264, %296 : vector<8x32xi1>, vector<8x32xf32>
    %300 = arith.index_cast %c2_i32 : i32 to index
    %c0_89 = arith.constant 0 : index
    %c0_90 = arith.constant 0 : index
    %301 = vector.load %arg7[%300, %c0_89, %c0_90] : memref<4x8x32xf32, #tpu.memory_space<vmem>>, vector<1x8x32xf32>
    %302 = vector.shape_cast %301 : vector<1x8x32xf32> to vector<8x32xf32>
    %303 = vector.shape_cast %299 : vector<8x32xf32> to vector<1x8x32xf32>
    tpu.vector_store %arg7[%300, %c0_89, %c0_90], %303 {strides = array<i32>} : memref<4x8x32xf32, #tpu.memory_space<vmem>>, vector<1x8x32xf32>,
    %cst_91 = arith.constant 0.000000e+00 : f32
    %304 = vector.broadcast %cst_91 : f32 to vector<8x32xf32>
    %305 = vector.shape_cast %295 : vector<8x1xi1> to vector<8x1xi1>
    %306 = vector.broadcast %305 : vector<8x1xi1> to vector<8x32xi1>
    %307 = arith.select %306, %289, %304 : vector<8x32xi1>, vector<8x32xf32>
    %308 = arith.index_cast %227 : i32 to index
    %c0_92 = arith.constant 0 : index
    %c0_93 = arith.constant 0 : index
    %309 = vector.load %arg8[%308, %c0_92, %c0_93] : memref<4x8x32xf32, #tpu.memory_space<vmem>>, vector<1x8x32xf32>
    %310 = vector.shape_cast %309 : vector<1x8x32xf32> to vector<8x32xf32>
    %311 = vector.shape_cast %307 : vector<8x32xf32> to vector<1x8x32xf32>
    tpu.vector_store %arg8[%308, %c0_92, %c0_93], %311 {strides = array<i32>} : memref<4x8x32xf32, #tpu.memory_space<vmem>>, vector<1x8x32xf32>,
    %312 = vector.shape_cast %292 : vector<8x1xi1> to vector<8x1xi1>
    %313 = vector.broadcast %312 : vector<8x1xi1> to vector<8x32xi1>
    %314 = arith.select %313, %264, %217 : vector<8x32xi1>, vector<8x32xf32>
    %315 = vector.shape_cast %292 : vector<8x1xi1> to vector<8x1xi1>
    %316 = vector.broadcast %315 : vector<8x1xi1> to vector<8x32xi1>
    %317 = arith.select %316, %262, %220 : vector<8x32xi1>, vector<8x32xf32>
    %318 = vector.shape_cast %295 : vector<8x1xi1> to vector<8x1xi1>
    %319 = vector.broadcast %318 : vector<8x1xi1> to vector<8x32xi1>
    %320 = arith.select %319, %289, %223 : vector<8x32xi1>, vector<8x32xf32>
    %321 = vector.shape_cast %295 : vector<8x1xi1> to vector<8x1xi1>
    %322 = vector.broadcast %321 : vector<8x1xi1> to vector<8x32xi1>
    %323 = arith.select %322, %287, %226 : vector<8x32xi1>, vector<8x32xf32>
    %c3_i32_94 = arith.constant 3 : i32
    %c3_i32_95 = arith.constant 3 : i32
    %324 = arith.subi %c3_i32_95, %c3_i32_94 : i32
    %c8_i32_96 = arith.constant 8 : i32
    %325 = arith.muli %c3_i32_94, %c8_i32_96 : i32
    %326 = tpu.assume_multiple %325, 8 : i32
    %c8_i32_97 = arith.constant 8 : i32
    %327 = arith.muli %324, %c8_i32_97 : i32
    %328 = tpu.assume_multiple %327, 8 : i32
    %329 = arith.index_cast %326 : i32 to index
    %c0_98 = arith.constant 0 : index
    %330 = vector.load %arg14[%329, %c0_98] : memref<32x128xf32, #tpu.memory_space<vmem>>, vector<8x128xf32>
    %cst_99 = arith.constant dense<0.000000e+00> : vector<8x128xf32>
    %331 = tpu.matmul %314, %23, %cst_99 {dimension_numbers = #tpu.dot_dimension_numbers<[1], [0], [0], [1], [0, 0, 1, 1], [], []>} : vector<8x32xf32>, vector<32x128xf32>, vector<8x128xf32> -> vector<8x128xf32>
    %332 = arith.addf %330, %331 : vector<8x128xf32>
    %333 = arith.index_cast %328 : i32 to index
    %c0_100 = arith.constant 0 : index
    %334 = vector.load %arg15[%333, %c0_100] : memref<32x128xf32, #tpu.memory_space<vmem>>, vector<8x128xf32>
    %cst_101 = arith.constant dense<0.000000e+00> : vector<8x128xf32>
    %335 = tpu.matmul %320, %25, %cst_101 {dimension_numbers = #tpu.dot_dimension_numbers<[1], [0], [0], [1], [0, 0, 1, 1], [], []>} : vector<8x32xf32>, vector<32x128xf32>, vector<8x128xf32> -> vector<8x128xf32>
    %336 = arith.addf %334, %335 : vector<8x128xf32>
    %337 = vector.extract_strided_slice %332 {offsets = [0, 0], sizes = [8, 32], strides = [1, 1]} : vector<8x128xf32> to vector<8x32xf32>
    %338 = arith.negf %337 : vector<8x32xf32>
    %339 = math.exp %338 : vector<8x32xf32>
    %cst_102 = arith.constant 1.000000e+00 : f32
    %340 = vector.broadcast %cst_102 : f32 to vector<8x32xf32>
    %341 = arith.addf %340, %339 : vector<8x32xf32>
    %342 = arith.divf %340, %341 : vector<8x32xf32>
    %343 = vector.extract_strided_slice %332 {offsets = [0, 32], sizes = [8, 32], strides = [1, 1]} : vector<8x128xf32> to vector<8x32xf32>
    %344 = arith.negf %343 : vector<8x32xf32>
    %345 = math.exp %344 : vector<8x32xf32>
    %cst_103 = arith.constant 1.000000e+00 : f32
    %346 = vector.broadcast %cst_103 : f32 to vector<8x32xf32>
    %347 = arith.addf %346, %345 : vector<8x32xf32>
    %348 = arith.divf %346, %347 : vector<8x32xf32>
    %349 = vector.extract_strided_slice %332 {offsets = [0, 64], sizes = [8, 32], strides = [1, 1]} : vector<8x128xf32> to vector<8x32xf32>
    %350 = math.tanh %349 : vector<8x32xf32>
    %351 = vector.extract_strided_slice %332 {offsets = [0, 96], sizes = [8, 32], strides = [1, 1]} : vector<8x128xf32> to vector<8x32xf32>
    %352 = arith.negf %351 : vector<8x32xf32>
    %353 = math.exp %352 : vector<8x32xf32>
    %cst_104 = arith.constant 1.000000e+00 : f32
    %354 = vector.broadcast %cst_104 : f32 to vector<8x32xf32>
    %355 = arith.addf %354, %353 : vector<8x32xf32>
    %356 = arith.divf %354, %355 : vector<8x32xf32>
    %357 = arith.mulf %348, %317 : vector<8x32xf32>
    %358 = arith.mulf %342, %350 : vector<8x32xf32>
    %359 = arith.addf %357, %358 : vector<8x32xf32>
    %360 = math.tanh %359 : vector<8x32xf32>
    %361 = arith.mulf %356, %360 : vector<8x32xf32>
    %362 = vector.extract_strided_slice %336 {offsets = [0, 0], sizes = [8, 32], strides = [1, 1]} : vector<8x128xf32> to vector<8x32xf32>
    %363 = arith.negf %362 : vector<8x32xf32>
    %364 = math.exp %363 : vector<8x32xf32>
    %cst_105 = arith.constant 1.000000e+00 : f32
    %365 = vector.broadcast %cst_105 : f32 to vector<8x32xf32>
    %366 = arith.addf %365, %364 : vector<8x32xf32>
    %367 = arith.divf %365, %366 : vector<8x32xf32>
    %368 = vector.extract_strided_slice %336 {offsets = [0, 32], sizes = [8, 32], strides = [1, 1]} : vector<8x128xf32> to vector<8x32xf32>
    %369 = arith.negf %368 : vector<8x32xf32>
    %370 = math.exp %369 : vector<8x32xf32>
    %cst_106 = arith.constant 1.000000e+00 : f32
    %371 = vector.broadcast %cst_106 : f32 to vector<8x32xf32>
    %372 = arith.addf %371, %370 : vector<8x32xf32>
    %373 = arith.divf %371, %372 : vector<8x32xf32>
    %374 = vector.extract_strided_slice %336 {offsets = [0, 64], sizes = [8, 32], strides = [1, 1]} : vector<8x128xf32> to vector<8x32xf32>
    %375 = math.tanh %374 : vector<8x32xf32>
    %376 = vector.extract_strided_slice %336 {offsets = [0, 96], sizes = [8, 32], strides = [1, 1]} : vector<8x128xf32> to vector<8x32xf32>
    %377 = arith.negf %376 : vector<8x32xf32>
    %378 = math.exp %377 : vector<8x32xf32>
    %cst_107 = arith.constant 1.000000e+00 : f32
    %379 = vector.broadcast %cst_107 : f32 to vector<8x32xf32>
    %380 = arith.addf %379, %378 : vector<8x32xf32>
    %381 = arith.divf %379, %380 : vector<8x32xf32>
    %382 = arith.mulf %373, %323 : vector<8x32xf32>
    %383 = arith.mulf %367, %375 : vector<8x32xf32>
    %384 = arith.addf %382, %383 : vector<8x32xf32>
    %385 = math.tanh %384 : vector<8x32xf32>
    %386 = arith.mulf %381, %385 : vector<8x32xf32>
    %387 = arith.addi %26, %c3_i32_94 : i32
    %388 = vector.broadcast %387 : i32 to vector<8x1xi32>
    %389 = arith.cmpi slt, %388, %21 : vector<8x1xi32>
    %390 = arith.addi %28, %324 : i32
    %391 = vector.broadcast %390 : i32 to vector<8x1xi32>
    %392 = arith.cmpi slt, %391, %21 : vector<8x1xi32>
    %cst_108 = arith.constant 0.000000e+00 : f32
    %393 = vector.broadcast %cst_108 : f32 to vector<8x32xf32>
    %394 = vector.shape_cast %389 : vector<8x1xi1> to vector<8x1xi1>
    %395 = vector.broadcast %394 : vector<8x1xi1> to vector<8x32xi1>
    %396 = arith.select %395, %361, %393 : vector<8x32xi1>, vector<8x32xf32>
    %397 = arith.index_cast %c3_i32_94 : i32 to index
    %c0_109 = arith.constant 0 : index
    %c0_110 = arith.constant 0 : index
    %398 = vector.load %arg7[%397, %c0_109, %c0_110] : memref<4x8x32xf32, #tpu.memory_space<vmem>>, vector<1x8x32xf32>
    %399 = vector.shape_cast %398 : vector<1x8x32xf32> to vector<8x32xf32>
    %400 = vector.shape_cast %396 : vector<8x32xf32> to vector<1x8x32xf32>
    tpu.vector_store %arg7[%397, %c0_109, %c0_110], %400 {strides = array<i32>} : memref<4x8x32xf32, #tpu.memory_space<vmem>>, vector<1x8x32xf32>,
    %cst_111 = arith.constant 0.000000e+00 : f32
    %401 = vector.broadcast %cst_111 : f32 to vector<8x32xf32>
    %402 = vector.shape_cast %392 : vector<8x1xi1> to vector<8x1xi1>
    %403 = vector.broadcast %402 : vector<8x1xi1> to vector<8x32xi1>
    %404 = arith.select %403, %386, %401 : vector<8x32xi1>, vector<8x32xf32>
    %405 = arith.index_cast %324 : i32 to index
    %c0_112 = arith.constant 0 : index
    %c0_113 = arith.constant 0 : index
    %406 = vector.load %arg8[%405, %c0_112, %c0_113] : memref<4x8x32xf32, #tpu.memory_space<vmem>>, vector<1x8x32xf32>
    %407 = vector.shape_cast %406 : vector<1x8x32xf32> to vector<8x32xf32>
    %408 = vector.shape_cast %404 : vector<8x32xf32> to vector<1x8x32xf32>
    tpu.vector_store %arg8[%405, %c0_112, %c0_113], %408 {strides = array<i32>} : memref<4x8x32xf32, #tpu.memory_space<vmem>>, vector<1x8x32xf32>,
    %409 = vector.shape_cast %389 : vector<8x1xi1> to vector<8x1xi1>
    %410 = vector.broadcast %409 : vector<8x1xi1> to vector<8x32xi1>
    %411 = arith.select %410, %361, %314 : vector<8x32xi1>, vector<8x32xf32>
    %412 = vector.shape_cast %389 : vector<8x1xi1> to vector<8x1xi1>
    %413 = vector.broadcast %412 : vector<8x1xi1> to vector<8x32xi1>
    %414 = arith.select %413, %359, %317 : vector<8x32xi1>, vector<8x32xf32>
    %415 = vector.shape_cast %392 : vector<8x1xi1> to vector<8x1xi1>
    %416 = vector.broadcast %415 : vector<8x1xi1> to vector<8x32xi1>
    %417 = arith.select %416, %386, %320 : vector<8x32xi1>, vector<8x32xf32>
    %418 = vector.shape_cast %392 : vector<8x1xi1> to vector<8x1xi1>
    %419 = vector.broadcast %418 : vector<8x1xi1> to vector<8x32xi1>
    %420 = arith.select %419, %384, %323 : vector<8x32xi1>, vector<8x32xf32>
    %c4_i32_114 = arith.constant 4 : i32
    %c0_115 = arith.constant 0 : index
    %c0_116 = arith.constant 0 : index
    %421 = vector.load %arg10[%c0_115, %c0_116] : memref<8x32xf32, #tpu.memory_space<vmem>>, vector<8x32xf32>
    tpu.vector_store %arg10[%c0_115, %c0_116], %411 {strides = array<i32>} : memref<8x32xf32, #tpu.memory_space<vmem>>, vector<8x32xf32>,
    %c0_117 = arith.constant 0 : index
    %c0_118 = arith.constant 0 : index
    %422 = vector.load %arg11[%c0_117, %c0_118] : memref<8x32xf32, #tpu.memory_space<vmem>>, vector<8x32xf32>
    tpu.vector_store %arg11[%c0_117, %c0_118], %414 {strides = array<i32>} : memref<8x32xf32, #tpu.memory_space<vmem>>, vector<8x32xf32>,
    %c0_119 = arith.constant 0 : index
    %c0_120 = arith.constant 0 : index
    %423 = vector.load %arg12[%c0_119, %c0_120] : memref<8x32xf32, #tpu.memory_space<vmem>>, vector<8x32xf32>
    tpu.vector_store %arg12[%c0_119, %c0_120], %417 {strides = array<i32>} : memref<8x32xf32, #tpu.memory_space<vmem>>, vector<8x32xf32>,
    %c0_121 = arith.constant 0 : index
    %c0_122 = arith.constant 0 : index
    %424 = vector.load %arg13[%c0_121, %c0_122] : memref<8x32xf32, #tpu.memory_space<vmem>>, vector<8x32xf32>
    tpu.vector_store %arg13[%c0_121, %c0_122], %420 {strides = array<i32>} : memref<8x32xf32, #tpu.memory_space<vmem>>, vector<8x32xf32>,
    %c1_i32_123 = arith.constant 1 : i32
    %425 = arith.cmpi eq, %arg0, %c1_i32_123 : i32
    %426 = arith.extui %425 : i1 to i32
    %c0_i32_124 = arith.constant 0 : i32
    %427 = arith.cmpi ne, %426, %c0_i32_124 : i32
    scf.if %427 {
      %428 = tpu.concatenate %411, %417 in 1 : vector<8x32xf32>, vector<8x32xf32> -> vector<8x64xf32>
      %c0_125 = arith.constant 0 : index
      %c0_126 = arith.constant 0 : index
      %429 = vector.load %arg9[%c0_125, %c0_126] : memref<8x64xf32, #tpu.memory_space<vmem>>, vector<8x64xf32>
      tpu.vector_store %arg9[%c0_125, %c0_126], %428 {strides = array<i32>} : memref<8x64xf32, #tpu.memory_space<vmem>>, vector<8x64xf32>,
    } else {
    }
    return
  }
  func.func @transform_0(%arg0: i32) -> (i32, i32) {
    %c0_i32 = arith.constant 0 : i32
    %c0_i32_0 = arith.constant 0 : i32
    return %arg0, %c0_i32 : i32, i32
  }
  func.func @transform_1(%arg0: i32) -> (i32, i32) {
    %c1_i32 = arith.constant 1 : i32
    %0 = arith.subi %c1_i32, %arg0 : i32
    %c0_i32 = arith.constant 0 : i32
    %c0_i32_0 = arith.constant 0 : i32
    return %0, %c0_i32 : i32, i32
  }
  func.func @transform_2(%arg0: i32) -> (i32, i32) {
    %c0_i32 = arith.constant 0 : i32
    %c0_i32_0 = arith.constant 0 : i32
    %c0_i32_1 = arith.constant 0 : i32
    return %c0_i32, %c0_i32_0 : i32, i32
  }
  func.func @transform_3(%arg0: i32) -> (i32, i32, i32) {
    %c0_i32 = arith.constant 0 : i32
    %c0_i32_0 = arith.constant 0 : i32
    %c0_i32_1 = arith.constant 0 : i32
    %c0_i32_2 = arith.constant 0 : i32
    return %c0_i32, %c0_i32_0, %c0_i32_1 : i32, i32, i32
  }
  func.func @transform_4(%arg0: i32) -> (i32, i32, i32) {
    %c0_i32 = arith.constant 0 : i32
    %c0_i32_0 = arith.constant 0 : i32
    %c0_i32_1 = arith.constant 0 : i32
    %c0_i32_2 = arith.constant 0 : i32
    return %c0_i32, %c0_i32_0, %c0_i32_1 : i32, i32, i32
  }
  func.func @transform_5(%arg0: i32) -> (i32, i32, i32) {
    %c0_i32 = arith.constant 0 : i32
    %c0_i32_0 = arith.constant 0 : i32
    %c0_i32_1 = arith.constant 0 : i32
    %c0_i32_2 = arith.constant 0 : i32
    return %c0_i32, %c0_i32_0, %c0_i32_1 : i32, i32, i32
  }
  func.func @transform_6(%arg0: i32) -> (i32, i32, i32) {
    %c0_i32 = arith.constant 0 : i32
    %c0_i32_0 = arith.constant 0 : i32
    %c0_i32_1 = arith.constant 0 : i32
    return %arg0, %c0_i32, %c0_i32_0 : i32, i32, i32
  }
  func.func @transform_7(%arg0: i32) -> (i32, i32, i32) {
    %c1_i32 = arith.constant 1 : i32
    %0 = arith.subi %c1_i32, %arg0 : i32
    %c0_i32 = arith.constant 0 : i32
    %c0_i32_0 = arith.constant 0 : i32
    %c0_i32_1 = arith.constant 0 : i32
    return %0, %c0_i32, %c0_i32_0 : i32, i32, i32
  }
  func.func @transform_8(%arg0: i32) -> (i32, i32) {
    %c0_i32 = arith.constant 0 : i32
    %c0_i32_0 = arith.constant 0 : i32
    %c0_i32_1 = arith.constant 0 : i32
    return %c0_i32, %c0_i32_0 : i32, i32
  }
}

module attributes {stable_mosaic.version = 11 : i64} {
  func.func @_bilstm_kernel(%arg0: i32, %arg1: memref<32x16xf32, #tpu.memory_space<vmem>>, %arg2: memref<32x16xf32, #tpu.memory_space<vmem>>, %arg3: memref<8x1xi32, #tpu.memory_space<vmem>>, %arg4: memref<2x16x128xf32, #tpu.memory_space<vmem>>, %arg5: memref<2x32x128xf32, #tpu.memory_space<vmem>>, %arg6: memref<2x1x128xf32, #tpu.memory_space<vmem>>, %arg7: memref<4x8x32xf32, #tpu.memory_space<vmem>>, %arg8: memref<4x8x32xf32, #tpu.memory_space<vmem>>, %arg9: memref<8x64xf32, #tpu.memory_space<vmem>>, %arg10: memref<8x32xf32, #tpu.memory_space<vmem>>, %arg11: memref<8x32xf32, #tpu.memory_space<vmem>>, %arg12: memref<8x32xf32, #tpu.memory_space<vmem>>, %arg13: memref<8x32xf32, #tpu.memory_space<vmem>>, %arg14: memref<32x128xf32, #tpu.memory_space<vmem>>, %arg15: memref<32x128xf32, #tpu.memory_space<vmem>>) attributes {dimension_semantics = [#tpu.dimension_semantics<arbitrary>], iteration_bounds = array<i64: 2>, scalar_prefetch = 0 : i64, scratch_operands = 6 : i64, tpu.core_type = #tpu.core_type<tc>, window_params = [{transform_indices = @transform_0, window_bounds = array<i64: 32, 16>}, {transform_indices = @transform_1, window_bounds = array<i64: 32, 16>}, {pipeline_mode = #tpu.pipeline_mode<synchronous>, transform_indices = @transform_2, window_bounds = array<i64: 8, 1>}, {pipeline_mode = #tpu.pipeline_mode<synchronous>, transform_indices = @transform_3, window_bounds = array<i64: 2, 16, 128>}, {pipeline_mode = #tpu.pipeline_mode<synchronous>, transform_indices = @transform_4, window_bounds = array<i64: 2, 32, 128>}, {pipeline_mode = #tpu.pipeline_mode<synchronous>, transform_indices = @transform_5, window_bounds = array<i64: 2, 1, 128>}, {transform_indices = @transform_6, window_bounds = array<i64: 4, 8, 32>}, {transform_indices = @transform_7, window_bounds = array<i64: 4, 8, 32>}, {pipeline_mode = #tpu.pipeline_mode<synchronous>, transform_indices = @transform_8, window_bounds = array<i64: 8, 64>}]} {
    %c0_i32 = arith.constant 0 : i32
    %0 = arith.cmpi eq, %arg0, %c0_i32 : i32
    %1 = arith.extui %0 : i1 to i32
    %c0_i32_0 = arith.constant 0 : i32
    %2 = arith.cmpi ne, %1, %c0_i32_0 : i32
    scf.if %2 {
      %cst_125 = arith.constant 0.000000e+00 : f32
      %428 = vector.broadcast %cst_125 : f32 to vector<8x32xf32>
      %c0_126 = arith.constant 0 : index
      %c0_127 = arith.constant 0 : index
      %429 = vector.load %arg10[%c0_126, %c0_127] : memref<8x32xf32, #tpu.memory_space<vmem>>, vector<8x32xf32>
      tpu.vector_store %arg10[%c0_126, %c0_127], %428 {strides = array<i32>} : memref<8x32xf32, #tpu.memory_space<vmem>>, vector<8x32xf32>,
      %cst_128 = arith.constant 0.000000e+00 : f32
      %430 = vector.broadcast %cst_128 : f32 to vector<8x32xf32>
      %c0_129 = arith.constant 0 : index
      %c0_130 = arith.constant 0 : index
      %431 = vector.load %arg11[%c0_129, %c0_130] : memref<8x32xf32, #tpu.memory_space<vmem>>, vector<8x32xf32>
      tpu.vector_store %arg11[%c0_129, %c0_130], %430 {strides = array<i32>} : memref<8x32xf32, #tpu.memory_space<vmem>>, vector<8x32xf32>,
      %cst_131 = arith.constant 0.000000e+00 : f32
      %432 = vector.broadcast %cst_131 : f32 to vector<8x32xf32>
      %c0_132 = arith.constant 0 : index
      %c0_133 = arith.constant 0 : index
      %433 = vector.load %arg12[%c0_132, %c0_133] : memref<8x32xf32, #tpu.memory_space<vmem>>, vector<8x32xf32>
      tpu.vector_store %arg12[%c0_132, %c0_133], %432 {strides = array<i32>} : memref<8x32xf32, #tpu.memory_space<vmem>>, vector<8x32xf32>,
      %cst_134 = arith.constant 0.000000e+00 : f32
      %434 = vector.broadcast %cst_134 : f32 to vector<8x32xf32>
      %c0_135 = arith.constant 0 : index
      %c0_136 = arith.constant 0 : index
      %435 = vector.load %arg13[%c0_135, %c0_136] : memref<8x32xf32, #tpu.memory_space<vmem>>, vector<8x32xf32>
      tpu.vector_store %arg13[%c0_135, %c0_136], %434 {strides = array<i32>} : memref<8x32xf32, #tpu.memory_space<vmem>>, vector<8x32xf32>,
    } else {
    }
    %c0 = arith.constant 0 : index
    %c0_1 = arith.constant 0 : index
    %3 = vector.load %arg1[%c0, %c0_1] : memref<32x16xf32, #tpu.memory_space<vmem>>, vector<32x16xf32>
    %c0_2 = arith.constant 0 : index
    %c0_3 = arith.constant 0 : index
    %c0_4 = arith.constant 0 : index
    %4 = vector.load %arg4[%c0_2, %c0_3, %c0_4] : memref<2x16x128xf32, #tpu.memory_space<vmem>>, vector<1x16x128xf32>
    %5 = vector.shape_cast %4 : vector<1x16x128xf32> to vector<16x128xf32>
    %cst = arith.constant dense<0.000000e+00> : vector<32x128xf32>
    %6 = tpu.matmul %3, %5, %cst {dimension_numbers = #tpu.dot_dimension_numbers<[1], [0], [0], [1], [0, 0, 1, 1], [], []>} : vector<32x16xf32>, vector<16x128xf32>, vector<32x128xf32> -> vector<32x128xf32>
    %c0_5 = arith.constant 0 : index
    %c0_6 = arith.constant 0 : index
    %c0_7 = arith.constant 0 : index
    %7 = vector.load %arg6[%c0_5, %c0_6, %c0_7] : memref<2x1x128xf32, #tpu.memory_space<vmem>>, vector<1x1x128xf32>
    %8 = vector.shape_cast %7 : vector<1x1x128xf32> to vector<1x128xf32>
    %9 = vector.broadcast %8 : vector<1x128xf32> to vector<32x128xf32>
    %10 = arith.addf %6, %9 : vector<32x128xf32>
    %c0_8 = arith.constant 0 : index
    %c0_9 = arith.constant 0 : index
    %11 = vector.load %arg14[%c0_8, %c0_9] : memref<32x128xf32, #tpu.memory_space<vmem>>, vector<32x128xf32>
    tpu.vector_store %arg14[%c0_8, %c0_9], %10 {strides = array<i32>} : memref<32x128xf32, #tpu.memory_space<vmem>>, vector<32x128xf32>,
    %c0_10 = arith.constant 0 : index
    %c0_11 = arith.constant 0 : index
    %12 = vector.load %arg2[%c0_10, %c0_11] : memref<32x16xf32, #tpu.memory_space<vmem>>, vector<32x16xf32>
    %c1 = arith.constant 1 : index
    %c0_12 = arith.constant 0 : index
    %c0_13 = arith.constant 0 : index
    %13 = vector.load %arg4[%c1, %c0_12, %c0_13] : memref<2x16x128xf32, #tpu.memory_space<vmem>>, vector<1x16x128xf32>
    %14 = vector.shape_cast %13 : vector<1x16x128xf32> to vector<16x128xf32>
    %cst_14 = arith.constant dense<0.000000e+00> : vector<32x128xf32>
    %15 = tpu.matmul %12, %14, %cst_14 {dimension_numbers = #tpu.dot_dimension_numbers<[1], [0], [0], [1], [0, 0, 1, 1], [], []>} : vector<32x16xf32>, vector<16x128xf32>, vector<32x128xf32> -> vector<32x128xf32>
    %c1_15 = arith.constant 1 : index
    %c0_16 = arith.constant 0 : index
    %c0_17 = arith.constant 0 : index
    %16 = vector.load %arg6[%c1_15, %c0_16, %c0_17] : memref<2x1x128xf32, #tpu.memory_space<vmem>>, vector<1x1x128xf32>
    %17 = vector.shape_cast %16 : vector<1x1x128xf32> to vector<1x128xf32>
    %18 = vector.broadcast %17 : vector<1x128xf32> to vector<32x128xf32>
    %19 = arith.addf %15, %18 : vector<32x128xf32>
    %c0_18 = arith.constant 0 : index
    %c0_19 = arith.constant 0 : index
    %20 = vector.load %arg15[%c0_18, %c0_19] : memref<32x128xf32, #tpu.memory_space<vmem>>, vector<32x128xf32>
    tpu.vector_store %arg15[%c0_18, %c0_19], %19 {strides = array<i32>} : memref<32x128xf32, #tpu.memory_space<vmem>>, vector<32x128xf32>,
    %c0_20 = arith.constant 0 : index
    %c0_21 = arith.constant 0 : index
    %21 = vector.load %arg3[%c0_20, %c0_21] : memref<8x1xi32, #tpu.memory_space<vmem>>, vector<8x1xi32>
    %c0_22 = arith.constant 0 : index
    %c0_23 = arith.constant 0 : index
    %c0_24 = arith.constant 0 : index
    %22 = vector.load %arg5[%c0_22, %c0_23, %c0_24] : memref<2x32x128xf32, #tpu.memory_space<vmem>>, vector<1x32x128xf32>
    %23 = vector.shape_cast %22 : vector<1x32x128xf32> to vector<32x128xf32>
    %c1_25 = arith.constant 1 : index
    %c0_26 = arith.constant 0 : index
    %c0_27 = arith.constant 0 : index
    %24 = vector.load %arg5[%c1_25, %c0_26, %c0_27] : memref<2x32x128xf32, #tpu.memory_space<vmem>>, vector<1x32x128xf32>
    %25 = vector.shape_cast %24 : vector<1x32x128xf32> to vector<32x128xf32>
    %c4_i32 = arith.constant 4 : i32
    %26 = arith.muli %arg0, %c4_i32 : i32
    %c1_i32 = arith.constant 1 : i32
    %27 = arith.subi %c1_i32, %arg0 : i32
    %c4_i32_28 = arith.constant 4 : i32
    %28 = arith.muli %27, %c4_i32_28 : i32
    %c0_29 = arith.constant 0 : index
    %c0_30 = arith.constant 0 : index
    %29 = vector.load %arg10[%c0_29, %c0_30] : memref<8x32xf32, #tpu.memory_space<vmem>>, vector<8x32xf32>
    %c0_31 = arith.constant 0 : index
    %c0_32 = arith.constant 0 : index
    %30 = vector.load %arg11[%c0_31, %c0_32] : memref<8x32xf32, #tpu.memory_space<vmem>>, vector<8x32xf32>
    %c0_33 = arith.constant 0 : index
    %c0_34 = arith.constant 0 : index
    %31 = vector.load %arg12[%c0_33, %c0_34] : memref<8x32xf32, #tpu.memory_space<vmem>>, vector<8x32xf32>
    %c0_35 = arith.constant 0 : index
    %c0_36 = arith.constant 0 : index
    %32 = vector.load %arg13[%c0_35, %c0_36] : memref<8x32xf32, #tpu.memory_space<vmem>>, vector<8x32xf32>
    %c0_i32_37 = arith.constant 0 : i32
    %c3_i32 = arith.constant 3 : i32
    %33 = arith.subi %c3_i32, %c0_i32_37 : i32
    %c8_i32 = arith.constant 8 : i32
    %34 = arith.muli %c0_i32_37, %c8_i32 : i32
    %35 = tpu.assume_multiple %34, 8 : i32
    %c8_i32_38 = arith.constant 8 : i32
    %36 = arith.muli %33, %c8_i32_38 : i32
    %37 = tpu.assume_multiple %36, 8 : i32
    %38 = arith.index_cast %35 : i32 to index
    %c0_39 = arith.constant 0 : index
    %39 = vector.load %arg14[%38, %c0_39] : memref<32x128xf32, #tpu.memory_space<vmem>>, vector<8x128xf32>
    %cst_40 = arith.constant dense<0.000000e+00> : vector<8x128xf32>
    %40 = tpu.matmul %29, %23, %cst_40 {dimension_numbers = #tpu.dot_dimension_numbers<[1], [0], [0], [1], [0, 0, 1, 1], [], []>} : vector<8x32xf32>, vector<32x128xf32>, vector<8x128xf32> -> vector<8x128xf32>
    %41 = arith.addf %39, %40 : vector<8x128xf32>
    %42 = arith.index_cast %37 : i32 to index
    %c0_41 = arith.constant 0 : index
    %43 = vector.load %arg15[%42, %c0_41] : memref<32x128xf32, #tpu.memory_space<vmem>>, vector<8x128xf32>
    %cst_42 = arith.constant dense<0.000000e+00> : vector<8x128xf32>
    %44 = tpu.matmul %31, %25, %cst_42 {dimension_numbers = #tpu.dot_dimension_numbers<[1], [0], [0], [1], [0, 0, 1, 1], [], []>} : vector<8x32xf32>, vector<32x128xf32>, vector<8x128xf32> -> vector<8x128xf32>
    %45 = arith.addf %43, %44 : vector<8x128xf32>
    %46 = vector.extract_strided_slice %41 {offsets = [0, 0], sizes = [8, 32], strides = [1, 1]} : vector<8x128xf32> to vector<8x32xf32>
    %47 = arith.negf %46 : vector<8x32xf32>
    %48 = math.exp %47 : vector<8x32xf32>
    %cst_43 = arith.constant 1.000000e+00 : f32
    %49 = vector.broadcast %cst_43 : f32 to vector<8x32xf32>
    %50 = arith.addf %49, %48 : vector<8x32xf32>
    %51 = arith.divf %49, %50 : vector<8x32xf32>
    %52 = vector.extract_strided_slice %41 {offsets = [0, 32], sizes = [8, 32], strides = [1, 1]} : vector<8x128xf32> to vector<8x32xf32>
    %53 = arith.negf %52 : vector<8x32xf32>
    %54 = math.exp %53 : vector<8x32xf32>
    %cst_44 = arith.constant 1.000000e+00 : f32
    %55 = vector.broadcast %cst_44 : f32 to vector<8x32xf32>
    %56 = arith.addf %55, %54 : vector<8x32xf32>
    %57 = arith.divf %55, %56 : vector<8x32xf32>
    %58 = vector.extract_strided_slice %41 {offsets = [0, 64], sizes = [8, 32], strides = [1, 1]} : vector<8x128xf32> to vector<8x32xf32>
    %59 = math.tanh %58 : vector<8x32xf32>
    %60 = vector.extract_strided_slice %41 {offsets = [0, 96], sizes = [8, 32], strides = [1, 1]} : vector<8x128xf32> to vector<8x32xf32>
    %61 = arith.negf %60 : vector<8x32xf32>
    %62 = math.exp %61 : vector<8x32xf32>
    %cst_45 = arith.constant 1.000000e+00 : f32
    %63 = vector.broadcast %cst_45 : f32 to vector<8x32xf32>
    %64 = arith.addf %63, %62 : vector<8x32xf32>
    %65 = arith.divf %63, %64 : vector<8x32xf32>
    %66 = arith.mulf %57, %30 : vector<8x32xf32>
    %67 = arith.mulf %51, %59 : vector<8x32xf32>
    %68 = arith.addf %66, %67 : vector<8x32xf32>
    %69 = math.tanh %68 : vector<8x32xf32>
    %70 = arith.mulf %65, %69 : vector<8x32xf32>
    %71 = vector.extract_strided_slice %45 {offsets = [0, 0], sizes = [8, 32], strides = [1, 1]} : vector<8x128xf32> to vector<8x32xf32>
    %72 = arith.negf %71 : vector<8x32xf32>
    %73 = math.exp %72 : vector<8x32xf32>
    %cst_46 = arith.constant 1.000000e+00 : f32
    %74 = vector.broadcast %cst_46 : f32 to vector<8x32xf32>
    %75 = arith.addf %74, %73 : vector<8x32xf32>
    %76 = arith.divf %74, %75 : vector<8x32xf32>
    %77 = vector.extract_strided_slice %45 {offsets = [0, 32], sizes = [8, 32], strides = [1, 1]} : vector<8x128xf32> to vector<8x32xf32>
    %78 = arith.negf %77 : vector<8x32xf32>
    %79 = math.exp %78 : vector<8x32xf32>
    %cst_47 = arith.constant 1.000000e+00 : f32
    %80 = vector.broadcast %cst_47 : f32 to vector<8x32xf32>
    %81 = arith.addf %80, %79 : vector<8x32xf32>
    %82 = arith.divf %80, %81 : vector<8x32xf32>
    %83 = vector.extract_strided_slice %45 {offsets = [0, 64], sizes = [8, 32], strides = [1, 1]} : vector<8x128xf32> to vector<8x32xf32>
    %84 = math.tanh %83 : vector<8x32xf32>
    %85 = vector.extract_strided_slice %45 {offsets = [0, 96], sizes = [8, 32], strides = [1, 1]} : vector<8x128xf32> to vector<8x32xf32>
    %86 = arith.negf %85 : vector<8x32xf32>
    %87 = math.exp %86 : vector<8x32xf32>
    %cst_48 = arith.constant 1.000000e+00 : f32
    %88 = vector.broadcast %cst_48 : f32 to vector<8x32xf32>
    %89 = arith.addf %88, %87 : vector<8x32xf32>
    %90 = arith.divf %88, %89 : vector<8x32xf32>
    %91 = arith.mulf %82, %32 : vector<8x32xf32>
    %92 = arith.mulf %76, %84 : vector<8x32xf32>
    %93 = arith.addf %91, %92 : vector<8x32xf32>
    %94 = math.tanh %93 : vector<8x32xf32>
    %95 = arith.mulf %90, %94 : vector<8x32xf32>
    %96 = arith.addi %26, %c0_i32_37 : i32
    %97 = vector.broadcast %96 : i32 to vector<8x1xi32>
    %98 = arith.cmpi slt, %97, %21 : vector<8x1xi32>
    %99 = arith.addi %28, %33 : i32
    %100 = vector.broadcast %99 : i32 to vector<8x1xi32>
    %101 = arith.cmpi slt, %100, %21 : vector<8x1xi32>
    %cst_49 = arith.constant 0.000000e+00 : f32
    %102 = vector.broadcast %cst_49 : f32 to vector<8x32xf32>
    %103 = vector.shape_cast %98 : vector<8x1xi1> to vector<8x1xi1>
    %104 = vector.broadcast %103 : vector<8x1xi1> to vector<8x32xi1>
    %105 = arith.select %104, %70, %102 : vector<8x32xi1>, vector<8x32xf32>
    %106 = arith.index_cast %c0_i32_37 : i32 to index
    %c0_50 = arith.constant 0 : index
    %c0_51 = arith.constant 0 : index
    %107 = vector.load %arg7[%106, %c0_50, %c0_51] : memref<4x8x32xf32, #tpu.memory_space<vmem>>, vector<1x8x32xf32>
    %108 = vector.shape_cast %107 : vector<1x8x32xf32> to vector<8x32xf32>
    %109 = vector.shape_cast %105 : vector<8x32xf32> to vector<1x8x32xf32>
    tpu.vector_store %arg7[%106, %c0_50, %c0_51], %109 {strides = array<i32>} : memref<4x8x32xf32, #tpu.memory_space<vmem>>, vector<1x8x32xf32>,
    %cst_52 = arith.constant 0.000000e+00 : f32
    %110 = vector.broadcast %cst_52 : f32 to vector<8x32xf32>
    %111 = vector.shape_cast %101 : vector<8x1xi1> to vector<8x1xi1>
    %112 = vector.broadcast %111 : vector<8x1xi1> to vector<8x32xi1>
    %113 = arith.select %112, %95, %110 : vector<8x32xi1>, vector<8x32xf32>
    %114 = arith.index_cast %33 : i32 to index
    %c0_53 = arith.constant 0 : index
    %c0_54 = arith.constant 0 : index
    %115 = vector.load %arg8[%114, %c0_53, %c0_54] : memref<4x8x32xf32, #tpu.memory_space<vmem>>, vector<1x8x32xf32>
    %116 = vector.shape_cast %115 : vector<1x8x32xf32> to vector<8x32xf32>
    %117 = vector.shape_cast %113 : vector<8x32xf32> to vector<1x8x32xf32>
    tpu.vector_store %arg8[%114, %c0_53, %c0_54], %117 {strides = array<i32>} : memref<4x8x32xf32, #tpu.memory_space<vmem>>, vector<1x8x32xf32>,
    %118 = vector.shape_cast %98 : vector<8x1xi1> to vector<8x1xi1>
    %119 = vector.broadcast %118 : vector<8x1xi1> to vector<8x32xi1>
    %120 = arith.select %119, %70, %29 : vector<8x32xi1>, vector<8x32xf32>
    %121 = vector.shape_cast %98 : vector<8x1xi1> to vector<8x1xi1>
    %122 = vector.broadcast %121 : vector<8x1xi1> to vector<8x32xi1>
    %123 = arith.select %122, %68, %30 : vector<8x32xi1>, vector<8x32xf32>
    %124 = vector.shape_cast %101 : vector<8x1xi1> to vector<8x1xi1>
    %125 = vector.broadcast %124 : vector<8x1xi1> to vector<8x32xi1>
    %126 = arith.select %125, %95, %31 : vector<8x32xi1>, vector<8x32xf32>
    %127 = vector.shape_cast %101 : vector<8x1xi1> to vector<8x1xi1>
    %128 = vector.broadcast %127 : vector<8x1xi1> to vector<8x32xi1>
    %129 = arith.select %128, %93, %32 : vector<8x32xi1>, vector<8x32xf32>
    %c1_i32_55 = arith.constant 1 : i32
    %c3_i32_56 = arith.constant 3 : i32
    %130 = arith.subi %c3_i32_56, %c1_i32_55 : i32
    %c8_i32_57 = arith.constant 8 : i32
    %131 = arith.muli %c1_i32_55, %c8_i32_57 : i32
    %132 = tpu.assume_multiple %131, 8 : i32
    %c8_i32_58 = arith.constant 8 : i32
    %133 = arith.muli %130, %c8_i32_58 : i32
    %134 = tpu.assume_multiple %133, 8 : i32
    %135 = arith.index_cast %132 : i32 to index
    %c0_59 = arith.constant 0 : index
    %136 = vector.load %arg14[%135, %c0_59] : memref<32x128xf32, #tpu.memory_space<vmem>>, vector<8x128xf32>
    %cst_60 = arith.constant dense<0.000000e+00> : vector<8x128xf32>
    %137 = tpu.matmul %120, %23, %cst_60 {dimension_numbers = #tpu.dot_dimension_numbers<[1], [0], [0], [1], [0, 0, 1, 1], [], []>} : vector<8x32xf32>, vector<32x128xf32>, vector<8x128xf32> -> vector<8x128xf32>
    %138 = arith.addf %136, %137 : vector<8x128xf32>
    %139 = arith.index_cast %134 : i32 to index
    %c0_61 = arith.constant 0 : index
    %140 = vector.load %arg15[%139, %c0_61] : memref<32x128xf32, #tpu.memory_space<vmem>>, vector<8x128xf32>
    %cst_62 = arith.constant dense<0.000000e+00> : vector<8x128xf32>
    %141 = tpu.matmul %126, %25, %cst_62 {dimension_numbers = #tpu.dot_dimension_numbers<[1], [0], [0], [1], [0, 0, 1, 1], [], []>} : vector<8x32xf32>, vector<32x128xf32>, vector<8x128xf32> -> vector<8x128xf32>
    %142 = arith.addf %140, %141 : vector<8x128xf32>
    %143 = vector.extract_strided_slice %138 {offsets = [0, 0], sizes = [8, 32], strides = [1, 1]} : vector<8x128xf32> to vector<8x32xf32>
    %144 = arith.negf %143 : vector<8x32xf32>
    %145 = math.exp %144 : vector<8x32xf32>
    %cst_63 = arith.constant 1.000000e+00 : f32
    %146 = vector.broadcast %cst_63 : f32 to vector<8x32xf32>
    %147 = arith.addf %146, %145 : vector<8x32xf32>
    %148 = arith.divf %146, %147 : vector<8x32xf32>
    %149 = vector.extract_strided_slice %138 {offsets = [0, 32], sizes = [8, 32], strides = [1, 1]} : vector<8x128xf32> to vector<8x32xf32>
    %150 = arith.negf %149 : vector<8x32xf32>
    %151 = math.exp %150 : vector<8x32xf32>
    %cst_64 = arith.constant 1.000000e+00 : f32
    %152 = vector.broadcast %cst_64 : f32 to vector<8x32xf32>
    %153 = arith.addf %152, %151 : vector<8x32xf32>
    %154 = arith.divf %152, %153 : vector<8x32xf32>
    %155 = vector.extract_strided_slice %138 {offsets = [0, 64], sizes = [8, 32], strides = [1, 1]} : vector<8x128xf32> to vector<8x32xf32>
    %156 = math.tanh %155 : vector<8x32xf32>
    %157 = vector.extract_strided_slice %138 {offsets = [0, 96], sizes = [8, 32], strides = [1, 1]} : vector<8x128xf32> to vector<8x32xf32>
    %158 = arith.negf %157 : vector<8x32xf32>
    %159 = math.exp %158 : vector<8x32xf32>
    %cst_65 = arith.constant 1.000000e+00 : f32
    %160 = vector.broadcast %cst_65 : f32 to vector<8x32xf32>
    %161 = arith.addf %160, %159 : vector<8x32xf32>
    %162 = arith.divf %160, %161 : vector<8x32xf32>
    %163 = arith.mulf %154, %123 : vector<8x32xf32>
    %164 = arith.mulf %148, %156 : vector<8x32xf32>
    %165 = arith.addf %163, %164 : vector<8x32xf32>
    %166 = math.tanh %165 : vector<8x32xf32>
    %167 = arith.mulf %162, %166 : vector<8x32xf32>
    %168 = vector.extract_strided_slice %142 {offsets = [0, 0], sizes = [8, 32], strides = [1, 1]} : vector<8x128xf32> to vector<8x32xf32>
    %169 = arith.negf %168 : vector<8x32xf32>
    %170 = math.exp %169 : vector<8x32xf32>
    %cst_66 = arith.constant 1.000000e+00 : f32
    %171 = vector.broadcast %cst_66 : f32 to vector<8x32xf32>
    %172 = arith.addf %171, %170 : vector<8x32xf32>
    %173 = arith.divf %171, %172 : vector<8x32xf32>
    %174 = vector.extract_strided_slice %142 {offsets = [0, 32], sizes = [8, 32], strides = [1, 1]} : vector<8x128xf32> to vector<8x32xf32>
    %175 = arith.negf %174 : vector<8x32xf32>
    %176 = math.exp %175 : vector<8x32xf32>
    %cst_67 = arith.constant 1.000000e+00 : f32
    %177 = vector.broadcast %cst_67 : f32 to vector<8x32xf32>
    %178 = arith.addf %177, %176 : vector<8x32xf32>
    %179 = arith.divf %177, %178 : vector<8x32xf32>
    %180 = vector.extract_strided_slice %142 {offsets = [0, 64], sizes = [8, 32], strides = [1, 1]} : vector<8x128xf32> to vector<8x32xf32>
    %181 = math.tanh %180 : vector<8x32xf32>
    %182 = vector.extract_strided_slice %142 {offsets = [0, 96], sizes = [8, 32], strides = [1, 1]} : vector<8x128xf32> to vector<8x32xf32>
    %183 = arith.negf %182 : vector<8x32xf32>
    %184 = math.exp %183 : vector<8x32xf32>
    %cst_68 = arith.constant 1.000000e+00 : f32
    %185 = vector.broadcast %cst_68 : f32 to vector<8x32xf32>
    %186 = arith.addf %185, %184 : vector<8x32xf32>
    %187 = arith.divf %185, %186 : vector<8x32xf32>
    %188 = arith.mulf %179, %129 : vector<8x32xf32>
    %189 = arith.mulf %173, %181 : vector<8x32xf32>
    %190 = arith.addf %188, %189 : vector<8x32xf32>
    %191 = math.tanh %190 : vector<8x32xf32>
    %192 = arith.mulf %187, %191 : vector<8x32xf32>
    %193 = arith.addi %26, %c1_i32_55 : i32
    %194 = vector.broadcast %193 : i32 to vector<8x1xi32>
    %195 = arith.cmpi slt, %194, %21 : vector<8x1xi32>
    %196 = arith.addi %28, %130 : i32
    %197 = vector.broadcast %196 : i32 to vector<8x1xi32>
    %198 = arith.cmpi slt, %197, %21 : vector<8x1xi32>
    %cst_69 = arith.constant 0.000000e+00 : f32
    %199 = vector.broadcast %cst_69 : f32 to vector<8x32xf32>
    %200 = vector.shape_cast %195 : vector<8x1xi1> to vector<8x1xi1>
    %201 = vector.broadcast %200 : vector<8x1xi1> to vector<8x32xi1>
    %202 = arith.select %201, %167, %199 : vector<8x32xi1>, vector<8x32xf32>
    %203 = arith.index_cast %c1_i32_55 : i32 to index
    %c0_70 = arith.constant 0 : index
    %c0_71 = arith.constant 0 : index
    %204 = vector.load %arg7[%203, %c0_70, %c0_71] : memref<4x8x32xf32, #tpu.memory_space<vmem>>, vector<1x8x32xf32>
    %205 = vector.shape_cast %204 : vector<1x8x32xf32> to vector<8x32xf32>
    %206 = vector.shape_cast %202 : vector<8x32xf32> to vector<1x8x32xf32>
    tpu.vector_store %arg7[%203, %c0_70, %c0_71], %206 {strides = array<i32>} : memref<4x8x32xf32, #tpu.memory_space<vmem>>, vector<1x8x32xf32>,
    %cst_72 = arith.constant 0.000000e+00 : f32
    %207 = vector.broadcast %cst_72 : f32 to vector<8x32xf32>
    %208 = vector.shape_cast %198 : vector<8x1xi1> to vector<8x1xi1>
    %209 = vector.broadcast %208 : vector<8x1xi1> to vector<8x32xi1>
    %210 = arith.select %209, %192, %207 : vector<8x32xi1>, vector<8x32xf32>
    %211 = arith.index_cast %130 : i32 to index
    %c0_73 = arith.constant 0 : index
    %c0_74 = arith.constant 0 : index
    %212 = vector.load %arg8[%211, %c0_73, %c0_74] : memref<4x8x32xf32, #tpu.memory_space<vmem>>, vector<1x8x32xf32>
    %213 = vector.shape_cast %212 : vector<1x8x32xf32> to vector<8x32xf32>
    %214 = vector.shape_cast %210 : vector<8x32xf32> to vector<1x8x32xf32>
    tpu.vector_store %arg8[%211, %c0_73, %c0_74], %214 {strides = array<i32>} : memref<4x8x32xf32, #tpu.memory_space<vmem>>, vector<1x8x32xf32>,
    %215 = vector.shape_cast %195 : vector<8x1xi1> to vector<8x1xi1>
    %216 = vector.broadcast %215 : vector<8x1xi1> to vector<8x32xi1>
    %217 = arith.select %216, %167, %120 : vector<8x32xi1>, vector<8x32xf32>
    %218 = vector.shape_cast %195 : vector<8x1xi1> to vector<8x1xi1>
    %219 = vector.broadcast %218 : vector<8x1xi1> to vector<8x32xi1>
    %220 = arith.select %219, %165, %123 : vector<8x32xi1>, vector<8x32xf32>
    %221 = vector.shape_cast %198 : vector<8x1xi1> to vector<8x1xi1>
    %222 = vector.broadcast %221 : vector<8x1xi1> to vector<8x32xi1>
    %223 = arith.select %222, %192, %126 : vector<8x32xi1>, vector<8x32xf32>
    %224 = vector.shape_cast %198 : vector<8x1xi1> to vector<8x1xi1>
    %225 = vector.broadcast %224 : vector<8x1xi1> to vector<8x32xi1>
    %226 = arith.select %225, %190, %129 : vector<8x32xi1>, vector<8x32xf32>
    %c2_i32 = arith.constant 2 : i32
    %c3_i32_75 = arith.constant 3 : i32
    %227 = arith.subi %c3_i32_75, %c2_i32 : i32
    %c8_i32_76 = arith.constant 8 : i32
    %228 = arith.muli %c2_i32, %c8_i32_76 : i32
    %229 = tpu.assume_multiple %228, 8 : i32
    %c8_i32_77 = arith.constant 8 : i32
    %230 = arith.muli %227, %c8_i32_77 : i32
    %231 = tpu.assume_multiple %230, 8 : i32
    %232 = arith.index_cast %229 : i32 to index
    %c0_78 = arith.constant 0 : index
    %233 = vector.load %arg14[%232, %c0_78] : memref<32x128xf32, #tpu.memory_space<vmem>>, vector<8x128xf32>
    %cst_79 = arith.constant dense<0.000000e+00> : vector<8x128xf32>
    %234 = tpu.matmul %217, %23, %cst_79 {dimension_numbers = #tpu.dot_dimension_numbers<[1], [0], [0], [1], [0, 0, 1, 1], [], []>} : vector<8x32xf32>, vector<32x128xf32>, vector<8x128xf32> -> vector<8x128xf32>
    %235 = arith.addf %233, %234 : vector<8x128xf32>
    %236 = arith.index_cast %231 : i32 to index
    %c0_80 = arith.constant 0 : index
    %237 = vector.load %arg15[%236, %c0_80] : memref<32x128xf32, #tpu.memory_space<vmem>>, vector<8x128xf32>
    %cst_81 = arith.constant dense<0.000000e+00> : vector<8x128xf32>
    %238 = tpu.matmul %223, %25, %cst_81 {dimension_numbers = #tpu.dot_dimension_numbers<[1], [0], [0], [1], [0, 0, 1, 1], [], []>} : vector<8x32xf32>, vector<32x128xf32>, vector<8x128xf32> -> vector<8x128xf32>
    %239 = arith.addf %237, %238 : vector<8x128xf32>
    %240 = vector.extract_strided_slice %235 {offsets = [0, 0], sizes = [8, 32], strides = [1, 1]} : vector<8x128xf32> to vector<8x32xf32>
    %241 = arith.negf %240 : vector<8x32xf32>
    %242 = math.exp %241 : vector<8x32xf32>
    %cst_82 = arith.constant 1.000000e+00 : f32
    %243 = vector.broadcast %cst_82 : f32 to vector<8x32xf32>
    %244 = arith.addf %243, %242 : vector<8x32xf32>
    %245 = arith.divf %243, %244 : vector<8x32xf32>
    %246 = vector.extract_strided_slice %235 {offsets = [0, 32], sizes = [8, 32], strides = [1, 1]} : vector<8x128xf32> to vector<8x32xf32>
    %247 = arith.negf %246 : vector<8x32xf32>
    %248 = math.exp %247 : vector<8x32xf32>
    %cst_83 = arith.constant 1.000000e+00 : f32
    %249 = vector.broadcast %cst_83 : f32 to vector<8x32xf32>
    %250 = arith.addf %249, %248 : vector<8x32xf32>
    %251 = arith.divf %249, %250 : vector<8x32xf32>
    %252 = vector.extract_strided_slice %235 {offsets = [0, 64], sizes = [8, 32], strides = [1, 1]} : vector<8x128xf32> to vector<8x32xf32>
    %253 = math.tanh %252 : vector<8x32xf32>
    %254 = vector.extract_strided_slice %235 {offsets = [0, 96], sizes = [8, 32], strides = [1, 1]} : vector<8x128xf32> to vector<8x32xf32>
    %255 = arith.negf %254 : vector<8x32xf32>
    %256 = math.exp %255 : vector<8x32xf32>
    %cst_84 = arith.constant 1.000000e+00 : f32
    %257 = vector.broadcast %cst_84 : f32 to vector<8x32xf32>
    %258 = arith.addf %257, %256 : vector<8x32xf32>
    %259 = arith.divf %257, %258 : vector<8x32xf32>
    %260 = arith.mulf %251, %220 : vector<8x32xf32>
    %261 = arith.mulf %245, %253 : vector<8x32xf32>
    %262 = arith.addf %260, %261 : vector<8x32xf32>
    %263 = math.tanh %262 : vector<8x32xf32>
    %264 = arith.mulf %259, %263 : vector<8x32xf32>
    %265 = vector.extract_strided_slice %239 {offsets = [0, 0], sizes = [8, 32], strides = [1, 1]} : vector<8x128xf32> to vector<8x32xf32>
    %266 = arith.negf %265 : vector<8x32xf32>
    %267 = math.exp %266 : vector<8x32xf32>
    %cst_85 = arith.constant 1.000000e+00 : f32
    %268 = vector.broadcast %cst_85 : f32 to vector<8x32xf32>
    %269 = arith.addf %268, %267 : vector<8x32xf32>
    %270 = arith.divf %268, %269 : vector<8x32xf32>
    %271 = vector.extract_strided_slice %239 {offsets = [0, 32], sizes = [8, 32], strides = [1, 1]} : vector<8x128xf32> to vector<8x32xf32>
    %272 = arith.negf %271 : vector<8x32xf32>
    %273 = math.exp %272 : vector<8x32xf32>
    %cst_86 = arith.constant 1.000000e+00 : f32
    %274 = vector.broadcast %cst_86 : f32 to vector<8x32xf32>
    %275 = arith.addf %274, %273 : vector<8x32xf32>
    %276 = arith.divf %274, %275 : vector<8x32xf32>
    %277 = vector.extract_strided_slice %239 {offsets = [0, 64], sizes = [8, 32], strides = [1, 1]} : vector<8x128xf32> to vector<8x32xf32>
    %278 = math.tanh %277 : vector<8x32xf32>
    %279 = vector.extract_strided_slice %239 {offsets = [0, 96], sizes = [8, 32], strides = [1, 1]} : vector<8x128xf32> to vector<8x32xf32>
    %280 = arith.negf %279 : vector<8x32xf32>
    %281 = math.exp %280 : vector<8x32xf32>
    %cst_87 = arith.constant 1.000000e+00 : f32
    %282 = vector.broadcast %cst_87 : f32 to vector<8x32xf32>
    %283 = arith.addf %282, %281 : vector<8x32xf32>
    %284 = arith.divf %282, %283 : vector<8x32xf32>
    %285 = arith.mulf %276, %226 : vector<8x32xf32>
    %286 = arith.mulf %270, %278 : vector<8x32xf32>
    %287 = arith.addf %285, %286 : vector<8x32xf32>
    %288 = math.tanh %287 : vector<8x32xf32>
    %289 = arith.mulf %284, %288 : vector<8x32xf32>
    %290 = arith.addi %26, %c2_i32 : i32
    %291 = vector.broadcast %290 : i32 to vector<8x1xi32>
    %292 = arith.cmpi slt, %291, %21 : vector<8x1xi32>
    %293 = arith.addi %28, %227 : i32
    %294 = vector.broadcast %293 : i32 to vector<8x1xi32>
    %295 = arith.cmpi slt, %294, %21 : vector<8x1xi32>
    %cst_88 = arith.constant 0.000000e+00 : f32
    %296 = vector.broadcast %cst_88 : f32 to vector<8x32xf32>
    %297 = vector.shape_cast %292 : vector<8x1xi1> to vector<8x1xi1>
    %298 = vector.broadcast %297 : vector<8x1xi1> to vector<8x32xi1>
    %299 = arith.select %298, %264, %296 : vector<8x32xi1>, vector<8x32xf32>
    %300 = arith.index_cast %c2_i32 : i32 to index
    %c0_89 = arith.constant 0 : index
    %c0_90 = arith.constant 0 : index
    %301 = vector.load %arg7[%300, %c0_89, %c0_90] : memref<4x8x32xf32, #tpu.memory_space<vmem>>, vector<1x8x32xf32>
    %302 = vector.shape_cast %301 : vector<1x8x32xf32> to vector<8x32xf32>
    %303 = vector.shape_cast %299 : vector<8x32xf32> to vector<1x8x32xf32>
    tpu.vector_store %arg7[%300, %c0_89, %c0_90], %303 {strides = array<i32>} : memref<4x8x32xf32, #tpu.memory_space<vmem>>, vector<1x8x32xf32>,
    %cst_91 = arith.constant 0.000000e+00 : f32
    %304 = vector.broadcast %cst_91 : f32 to vector<8x32xf32>
    %305 = vector.shape_cast %295 : vector<8x1xi1> to vector<8x1xi1>
    %306 = vector.broadcast %305 : vector<8x1xi1> to vector<8x32xi1>
    %307 = arith.select %306, %289, %304 : vector<8x32xi1>, vector<8x32xf32>
    %308 = arith.index_cast %227 : i32 to index
    %c0_92 = arith.constant 0 : index
    %c0_93 = arith.constant 0 : index
    %309 = vector.load %arg8[%308, %c0_92, %c0_93] : memref<4x8x32xf32, #tpu.memory_space<vmem>>, vector<1x8x32xf32>
    %310 = vector.shape_cast %309 : vector<1x8x32xf32> to vector<8x32xf32>
    %311 = vector.shape_cast %307 : vector<8x32xf32> to vector<1x8x32xf32>
    tpu.vector_store %arg8[%308, %c0_92, %c0_93], %311 {strides = array<i32>} : memref<4x8x32xf32, #tpu.memory_space<vmem>>, vector<1x8x32xf32>,
    %312 = vector.shape_cast %292 : vector<8x1xi1> to vector<8x1xi1>
    %313 = vector.broadcast %312 : vector<8x1xi1> to vector<8x32xi1>
    %314 = arith.select %313, %264, %217 : vector<8x32xi1>, vector<8x32xf32>
    %315 = vector.shape_cast %292 : vector<8x1xi1> to vector<8x1xi1>
    %316 = vector.broadcast %315 : vector<8x1xi1> to vector<8x32xi1>
    %317 = arith.select %316, %262, %220 : vector<8x32xi1>, vector<8x32xf32>
    %318 = vector.shape_cast %295 : vector<8x1xi1> to vector<8x1xi1>
    %319 = vector.broadcast %318 : vector<8x1xi1> to vector<8x32xi1>
    %320 = arith.select %319, %289, %223 : vector<8x32xi1>, vector<8x32xf32>
    %321 = vector.shape_cast %295 : vector<8x1xi1> to vector<8x1xi1>
    %322 = vector.broadcast %321 : vector<8x1xi1> to vector<8x32xi1>
    %323 = arith.select %322, %287, %226 : vector<8x32xi1>, vector<8x32xf32>
    %c3_i32_94 = arith.constant 3 : i32
    %c3_i32_95 = arith.constant 3 : i32
    %324 = arith.subi %c3_i32_95, %c3_i32_94 : i32
    %c8_i32_96 = arith.constant 8 : i32
    %325 = arith.muli %c3_i32_94, %c8_i32_96 : i32
    %326 = tpu.assume_multiple %325, 8 : i32
    %c8_i32_97 = arith.constant 8 : i32
    %327 = arith.muli %324, %c8_i32_97 : i32
    %328 = tpu.assume_multiple %327, 8 : i32
    %329 = arith.index_cast %326 : i32 to index
    %c0_98 = arith.constant 0 : index
    %330 = vector.load %arg14[%329, %c0_98] : memref<32x128xf32, #tpu.memory_space<vmem>>, vector<8x128xf32>
    %cst_99 = arith.constant dense<0.000000e+00> : vector<8x128xf32>
    %331 = tpu.matmul %314, %23, %cst_99 {dimension_numbers = #tpu.dot_dimension_numbers<[1], [0], [0], [1], [0, 0, 1, 1], [], []>} : vector<8x32xf32>, vector<32x128xf32>, vector<8x128xf32> -> vector<8x128xf32>
    %332 = arith.addf %330, %331 : vector<8x128xf32>
    %333 = arith.index_cast %328 : i32 to index
    %c0_100 = arith.constant 0 : index
    %334 = vector.load %arg15[%333, %c0_100] : memref<32x128xf32, #tpu.memory_space<vmem>>, vector<8x128xf32>
    %cst_101 = arith.constant dense<0.000000e+00> : vector<8x128xf32>
    %335 = tpu.matmul %320, %25, %cst_101 {dimension_numbers = #tpu.dot_dimension_numbers<[1], [0], [0], [1], [0, 0, 1, 1], [], []>} : vector<8x32xf32>, vector<32x128xf32>, vector<8x128xf32> -> vector<8x128xf32>
    %336 = arith.addf %334, %335 : vector<8x128xf32>
    %337 = vector.extract_strided_slice %332 {offsets = [0, 0], sizes = [8, 32], strides = [1, 1]} : vector<8x128xf32> to vector<8x32xf32>
    %338 = arith.negf %337 : vector<8x32xf32>
    %339 = math.exp %338 : vector<8x32xf32>
    %cst_102 = arith.constant 1.000000e+00 : f32
    %340 = vector.broadcast %cst_102 : f32 to vector<8x32xf32>
    %341 = arith.addf %340, %339 : vector<8x32xf32>
    %342 = arith.divf %340, %341 : vector<8x32xf32>
    %343 = vector.extract_strided_slice %332 {offsets = [0, 32], sizes = [8, 32], strides = [1, 1]} : vector<8x128xf32> to vector<8x32xf32>
    %344 = arith.negf %343 : vector<8x32xf32>
    %345 = math.exp %344 : vector<8x32xf32>
    %cst_103 = arith.constant 1.000000e+00 : f32
    %346 = vector.broadcast %cst_103 : f32 to vector<8x32xf32>
    %347 = arith.addf %346, %345 : vector<8x32xf32>
    %348 = arith.divf %346, %347 : vector<8x32xf32>
    %349 = vector.extract_strided_slice %332 {offsets = [0, 64], sizes = [8, 32], strides = [1, 1]} : vector<8x128xf32> to vector<8x32xf32>
    %350 = math.tanh %349 : vector<8x32xf32>
    %351 = vector.extract_strided_slice %332 {offsets = [0, 96], sizes = [8, 32], strides = [1, 1]} : vector<8x128xf32> to vector<8x32xf32>
    %352 = arith.negf %351 : vector<8x32xf32>
    %353 = math.exp %352 : vector<8x32xf32>
    %cst_104 = arith.constant 1.000000e+00 : f32
    %354 = vector.broadcast %cst_104 : f32 to vector<8x32xf32>
    %355 = arith.addf %354, %353 : vector<8x32xf32>
    %356 = arith.divf %354, %355 : vector<8x32xf32>
    %357 = arith.mulf %348, %317 : vector<8x32xf32>
    %358 = arith.mulf %342, %350 : vector<8x32xf32>
    %359 = arith.addf %357, %358 : vector<8x32xf32>
    %360 = math.tanh %359 : vector<8x32xf32>
    %361 = arith.mulf %356, %360 : vector<8x32xf32>
    %362 = vector.extract_strided_slice %336 {offsets = [0, 0], sizes = [8, 32], strides = [1, 1]} : vector<8x128xf32> to vector<8x32xf32>
    %363 = arith.negf %362 : vector<8x32xf32>
    %364 = math.exp %363 : vector<8x32xf32>
    %cst_105 = arith.constant 1.000000e+00 : f32
    %365 = vector.broadcast %cst_105 : f32 to vector<8x32xf32>
    %366 = arith.addf %365, %364 : vector<8x32xf32>
    %367 = arith.divf %365, %366 : vector<8x32xf32>
    %368 = vector.extract_strided_slice %336 {offsets = [0, 32], sizes = [8, 32], strides = [1, 1]} : vector<8x128xf32> to vector<8x32xf32>
    %369 = arith.negf %368 : vector<8x32xf32>
    %370 = math.exp %369 : vector<8x32xf32>
    %cst_106 = arith.constant 1.000000e+00 : f32
    %371 = vector.broadcast %cst_106 : f32 to vector<8x32xf32>
    %372 = arith.addf %371, %370 : vector<8x32xf32>
    %373 = arith.divf %371, %372 : vector<8x32xf32>
    %374 = vector.extract_strided_slice %336 {offsets = [0, 64], sizes = [8, 32], strides = [1, 1]} : vector<8x128xf32> to vector<8x32xf32>
    %375 = math.tanh %374 : vector<8x32xf32>
    %376 = vector.extract_strided_slice %336 {offsets = [0, 96], sizes = [8, 32], strides = [1, 1]} : vector<8x128xf32> to vector<8x32xf32>
    %377 = arith.negf %376 : vector<8x32xf32>
    %378 = math.exp %377 : vector<8x32xf32>
    %cst_107 = arith.constant 1.000000e+00 : f32
    %379 = vector.broadcast %cst_107 : f32 to vector<8x32xf32>
    %380 = arith.addf %379, %378 : vector<8x32xf32>
    %381 = arith.divf %379, %380 : vector<8x32xf32>
    %382 = arith.mulf %373, %323 : vector<8x32xf32>
    %383 = arith.mulf %367, %375 : vector<8x32xf32>
    %384 = arith.addf %382, %383 : vector<8x32xf32>
    %385 = math.tanh %384 : vector<8x32xf32>
    %386 = arith.mulf %381, %385 : vector<8x32xf32>
    %387 = arith.addi %26, %c3_i32_94 : i32
    %388 = vector.broadcast %387 : i32 to vector<8x1xi32>
    %389 = arith.cmpi slt, %388, %21 : vector<8x1xi32>
    %390 = arith.addi %28, %324 : i32
    %391 = vector.broadcast %390 : i32 to vector<8x1xi32>
    %392 = arith.cmpi slt, %391, %21 : vector<8x1xi32>
    %cst_108 = arith.constant 0.000000e+00 : f32
    %393 = vector.broadcast %cst_108 : f32 to vector<8x32xf32>
    %394 = vector.shape_cast %389 : vector<8x1xi1> to vector<8x1xi1>
    %395 = vector.broadcast %394 : vector<8x1xi1> to vector<8x32xi1>
    %396 = arith.select %395, %361, %393 : vector<8x32xi1>, vector<8x32xf32>
    %397 = arith.index_cast %c3_i32_94 : i32 to index
    %c0_109 = arith.constant 0 : index
    %c0_110 = arith.constant 0 : index
    %398 = vector.load %arg7[%397, %c0_109, %c0_110] : memref<4x8x32xf32, #tpu.memory_space<vmem>>, vector<1x8x32xf32>
    %399 = vector.shape_cast %398 : vector<1x8x32xf32> to vector<8x32xf32>
    %400 = vector.shape_cast %396 : vector<8x32xf32> to vector<1x8x32xf32>
    tpu.vector_store %arg7[%397, %c0_109, %c0_110], %400 {strides = array<i32>} : memref<4x8x32xf32, #tpu.memory_space<vmem>>, vector<1x8x32xf32>,
    %cst_111 = arith.constant 0.000000e+00 : f32
    %401 = vector.broadcast %cst_111 : f32 to vector<8x32xf32>
    %402 = vector.shape_cast %392 : vector<8x1xi1> to vector<8x1xi1>
    %403 = vector.broadcast %402 : vector<8x1xi1> to vector<8x32xi1>
    %404 = arith.select %403, %386, %401 : vector<8x32xi1>, vector<8x32xf32>
    %405 = arith.index_cast %324 : i32 to index
    %c0_112 = arith.constant 0 : index
    %c0_113 = arith.constant 0 : index
    %406 = vector.load %arg8[%405, %c0_112, %c0_113] : memref<4x8x32xf32, #tpu.memory_space<vmem>>, vector<1x8x32xf32>
    %407 = vector.shape_cast %406 : vector<1x8x32xf32> to vector<8x32xf32>
    %408 = vector.shape_cast %404 : vector<8x32xf32> to vector<1x8x32xf32>
    tpu.vector_store %arg8[%405, %c0_112, %c0_113], %408 {strides = array<i32>} : memref<4x8x32xf32, #tpu.memory_space<vmem>>, vector<1x8x32xf32>,
    %409 = vector.shape_cast %389 : vector<8x1xi1> to vector<8x1xi1>
    %410 = vector.broadcast %409 : vector<8x1xi1> to vector<8x32xi1>
    %411 = arith.select %410, %361, %314 : vector<8x32xi1>, vector<8x32xf32>
    %412 = vector.shape_cast %389 : vector<8x1xi1> to vector<8x1xi1>
    %413 = vector.broadcast %412 : vector<8x1xi1> to vector<8x32xi1>
    %414 = arith.select %413, %359, %317 : vector<8x32xi1>, vector<8x32xf32>
    %415 = vector.shape_cast %392 : vector<8x1xi1> to vector<8x1xi1>
    %416 = vector.broadcast %415 : vector<8x1xi1> to vector<8x32xi1>
    %417 = arith.select %416, %386, %320 : vector<8x32xi1>, vector<8x32xf32>
    %418 = vector.shape_cast %392 : vector<8x1xi1> to vector<8x1xi1>
    %419 = vector.broadcast %418 : vector<8x1xi1> to vector<8x32xi1>
    %420 = arith.select %419, %384, %323 : vector<8x32xi1>, vector<8x32xf32>
    %c4_i32_114 = arith.constant 4 : i32
    %c0_115 = arith.constant 0 : index
    %c0_116 = arith.constant 0 : index
    %421 = vector.load %arg10[%c0_115, %c0_116] : memref<8x32xf32, #tpu.memory_space<vmem>>, vector<8x32xf32>
    tpu.vector_store %arg10[%c0_115, %c0_116], %411 {strides = array<i32>} : memref<8x32xf32, #tpu.memory_space<vmem>>, vector<8x32xf32>,
    %c0_117 = arith.constant 0 : index
    %c0_118 = arith.constant 0 : index
    %422 = vector.load %arg11[%c0_117, %c0_118] : memref<8x32xf32, #tpu.memory_space<vmem>>, vector<8x32xf32>
    tpu.vector_store %arg11[%c0_117, %c0_118], %414 {strides = array<i32>} : memref<8x32xf32, #tpu.memory_space<vmem>>, vector<8x32xf32>,
    %c0_119 = arith.constant 0 : index
    %c0_120 = arith.constant 0 : index
    %423 = vector.load %arg12[%c0_119, %c0_120] : memref<8x32xf32, #tpu.memory_space<vmem>>, vector<8x32xf32>
    tpu.vector_store %arg12[%c0_119, %c0_120], %417 {strides = array<i32>} : memref<8x32xf32, #tpu.memory_space<vmem>>, vector<8x32xf32>,
    %c0_121 = arith.constant 0 : index
    %c0_122 = arith.constant 0 : index
    %424 = vector.load %arg13[%c0_121, %c0_122] : memref<8x32xf32, #tpu.memory_space<vmem>>, vector<8x32xf32>
    tpu.vector_store %arg13[%c0_121, %c0_122], %420 {strides = array<i32>} : memref<8x32xf32, #tpu.memory_space<vmem>>, vector<8x32xf32>,
    %c1_i32_123 = arith.constant 1 : i32
    %425 = arith.cmpi eq, %arg0, %c1_i32_123 : i32
    %426 = arith.extui %425 : i1 to i32
    %c0_i32_124 = arith.constant 0 : i32
    %427 = arith.cmpi ne, %426, %c0_i32_124 : i32
    scf.if %427 {
      %428 = tpu.concatenate %411, %417 in 1 : vector<8x32xf32>, vector<8x32xf32> -> vector<8x64xf32>
      %c0_125 = arith.constant 0 : index
      %c0_126 = arith.constant 0 : index
      %429 = vector.load %arg9[%c0_125, %c0_126] : memref<8x64xf32, #tpu.memory_space<vmem>>, vector<8x64xf32>
      tpu.vector_store %arg9[%c0_125, %c0_126], %428 {strides = array<i32>} : memref<8x64xf32, #tpu.memory_space<vmem>>, vector<8x64xf32>,
    } else {
    }
    return
  }
  func.func @transform_0(%arg0: i32) -> (i32, i32) {
    %c0_i32 = arith.constant 0 : i32
    %c0_i32_0 = arith.constant 0 : i32
    return %arg0, %c0_i32 : i32, i32
  }
  func.func @transform_1(%arg0: i32) -> (i32, i32) {
    %c1_i32 = arith.constant 1 : i32
    %0 = arith.subi %c1_i32, %arg0 : i32
    %c0_i32 = arith.constant 0 : i32
    %c0_i32_0 = arith.constant 0 : i32
    return %0, %c0_i32 : i32, i32
  }
  func.func @transform_2(%arg0: i32) -> (i32, i32) {
    %c0_i32 = arith.constant 0 : i32
    %c0_i32_0 = arith.constant 0 : i32
    %c0_i32_1 = arith.constant 0 : i32
    return %c0_i32, %c0_i32_0 : i32, i32
  }
  func.func @transform_3(%arg0: i32) -> (i32, i32, i32) {
    %c0_i32 = arith.constant 0 : i32
    %c0_i32_0 = arith.constant 0 : i32
    %c0_i32_1 = arith.constant 0 : i32
    %c0_i32_2 = arith.constant 0 : i32
    return %c0_i32, %c0_i32_0, %c0_i32_1 : i32, i32, i32
  }
  func.func @transform_4(%arg0: i32) -> (i32, i32, i32) {
    %c0_i32 = arith.constant 0 : i32
    %c0_i32_0 = arith.constant 0 : i32
    %c0_i32_1 = arith.constant 0 : i32
    %c0_i32_2 = arith.constant 0 : i32
    return %c0_i32, %c0_i32_0, %c0_i32_1 : i32, i32, i32
  }
  func.func @transform_5(%arg0: i32) -> (i32, i32, i32) {
    %c0_i32 = arith.constant 0 : i32
    %c0_i32_0 = arith.constant 0 : i32
    %c0_i32_1 = arith.constant 0 : i32
    %c0_i32_2 = arith.constant 0 : i32
    return %c0_i32, %c0_i32_0, %c0_i32_1 : i32, i32, i32
  }
  func.func @transform_6(%arg0: i32) -> (i32, i32, i32) {
    %c0_i32 = arith.constant 0 : i32
    %c0_i32_0 = arith.constant 0 : i32
    %c0_i32_1 = arith.constant 0 : i32
    return %arg0, %c0_i32, %c0_i32_0 : i32, i32, i32
  }
  func.func @transform_7(%arg0: i32) -> (i32, i32, i32) {
    %c1_i32 = arith.constant 1 : i32
    %0 = arith.subi %c1_i32, %arg0 : i32
    %c0_i32 = arith.constant 0 : i32
    %c0_i32_0 = arith.constant 0 : i32
    %c0_i32_1 = arith.constant 0 : i32
    return %0, %c0_i32, %c0_i32_0 : i32, i32, i32
  }
  func.func @transform_8(%arg0: i32) -> (i32, i32) {
    %c0_i32 = arith.constant 0 : i32
    %c0_i32_0 = arith.constant 0 : i32
    %c0_i32_1 = arith.constant 0 : i32
    return %c0_i32, %c0_i32_0 : i32, i32
  }
}

</mosaic_0001>

<bundles_post_ra>
// kernel: lstm_encoder_forward_pallas.2
= control target key start
LH: loop header
LB: loop body
LE: loop exit
PB: predicated region body
PF: predicated region fallthrough
CT: control target
= control target key end

     0   :  { %14 = vsyncpa [#allocation9], 0  ;;  %s2127_s27 = smov 0   ;;  %s2620_s0 = inlined_call_operand.vmem [shape: f32[64,16], index: 0, kind: input, shape index: {}, may-alias: {0,1}]   ;;  %s2621_s1 = inlined_call_operand.vmem [shape: f32[64,16], index: 1, kind: input, shape index: {}, may-alias: {0,1}]   ;;  %s2622_s2 = inlined_call_operand.vmem [shape: s32[8,1], index: 2, kind: input, shape index: {}]   ;;  %s2623_s3 = inlined_call_operand.vmem [shape: f32[2,16,128], index: 3, kind: input, shape index: {}]   ;;  %s2624_s4 = inlined_call_operand.vmem [shape: f32[2,32,128], index: 4, kind: input, shape index: {}]   ;;  %s2625_s5 = inlined_call_operand.vmem [shape: f32[2,1,128], index: 5, kind: input, shape index: {}]   ;;  %s2626_s6 = inlined_call_operand.vmem [shape: f32[8,8,32], index: 6, kind: output, shape index: {0}]   ;;  %s2627_s7 = inlined_call_operand.vmem [shape: f32[8,8,32], index: 7, kind: output, shape index: {1}]   ;;  %s2628_s8 = inlined_call_operand.hbm [shape: f32[8,64], index: 8, kind: output, shape index: {2}]  }
   0x1 LB: > { %s2133_s28 = sadd.s32 4294967295, %s2071_s27   ;;  %p1732_p0 = scmp.ge.s32.totalorder %s2071_s27, 1  ;;  %s2071_s27 = sphi %s2127_s27, %s20_s27  }
   0x2   : > { %p281_p1 = scmp.lt.s32.totalorder %s2071_s27, 3 }
   0x4   : > { %p282_p2 = pnand %p1732_p0, %p281_p1 }
   0x5   : > { %s2138_s29 = sshll.u32 (!%p282_p2), %s2133_s28, 2  ;;  %s333_s30 = ssub.s32 (!%p282_p2), 1, %s2133_s28 }
   0x6   : > { %285 = sbr.rel (%p282_p2) target bundleno = 2940 (0xb7c), region = 44  ;;  %p328_p3 = scmp.lt.s32.totalorder (!%p282_p2), %s2138_s29, 7 }
   0x7   : > { %s2142_s9 = sshll.u32 (!%p282_p2), %s333_s30, 2  ;;  %p1741_p5 = scmp.ne.s32.totalorder (!%p282_p2), %s2133_s28, 0 }
   0x8   : > { %p335_p4 = scmp.lt.s32.totalorder (!%p282_p2), %s2142_s9, 7 }
   0xb   : > { %s329_s10 = scalar_select %p328_p3, %s2138_s29, 7 }
   0xc   : > { %s336_s11 = scalar_select %p335_p4, %s2142_s9, 7 }
   0xd   : > { %s1734_s12 = sshll.u32 %s329_s10, 3  ;;  %358 = sbr.rel (%p1741_p5) target bundleno = 21 (0x15), region = 48 }
   0xe   : > { %s2150_s15 = scalar_lea.vmem %s2620_s0, %s1734_s12  ;;  %s1736_s16 = sshll.u32 %s336_s11, 3 }
   0xf   : > { %s2155_s19 = scalar_lea.vmem %s2621_s1, %s1736_s16  ;;  %s2160_s22 = scalar_lea.vmem %s2626_s6, %s1734_s12 }
  0x10   : > { %s2165_s25 = scalar_lea.vmem %s2627_s7, %s1736_s16 }
  0x12   : > { %vm359_vm0 = vcmask 261120   ;;  %v2073_v0 = vmov 0.0  }
  0x13   : > { %360 = vst.msk [vmem:[#allocation2] sm:$0xff] %vm359_vm0, %v2073_v0  ;;  %361 = vst.msk [vmem:[#allocation3] sm:$0xff] %vm359_vm0, %v2073_v0 }
  0x14   : > { %362 = vst.msk [vmem:[#allocation4] sm:$0xff] %vm359_vm0, %v2073_v0  ;;  %363 = vst.msk [vmem:[#allocation5] sm:$0xff] %vm359_vm0, %v2073_v0 }
  0x15 PF: > { %v369_v1 = vld [vmem:[%s2623_s3 + $0x8] sm:$0xff]  ;;  %v368_v2 = vld [vmem:[%s2623_s3] sm:$0xff]  ;;  %vm377_vm1 = vcmask 130048   ;;  %v1748_v4 = vld [vmem:[%s2623_s3 + $0x18] sm:$0xff]  ;;  %v2074_v9 = vmov 0.0   ;;  %vm613_vm2 = vcmask 261120   ;;  %v820_v60 = vstv %s2138_s29 }
  0x16   : > { %v364_v3 = vld [vmem:[%s2150_s15] sm:$0xff]  ;;  %1840 = vmatprep.subr.mxu0 %v369_v1  ;;  %v1747_v5 = vld [vmem:[%s2623_s3 + $0x10] sm:$0xff]  ;;  %1850 = vmatprep.subr.mxu1 %v1748_v4  ;;  %v365_v6 = vld [vmem:[%s2150_s15 + $0x8] sm:$0xff]  ;;  %vm2075_vm3 = vmmov 0   ;;  %s2076_s17 = smov 32   ;;  %v2077_v50 = vmov 0  }
  0x17   : > { %1844 = vmatprep.mubr.msk.f32.mxu0 %vm377_vm1, %v364_v3  ;;  %1841 = vmatpush3.msra.mxu0 %v369_v1  ;;  %v2186_v7 = vld [vmem:[%s2624_s4 + $0x18] sm:$0xff]  ;;  %v479_v8 = vld [vmem:[%s2155_s19] sm:$0xff]  ;;  %v366_v10 = vld [vmem:[%s2150_s15 + $0x10] sm:$0xff]  ;;  %s2078_s24 = smov 64   ;;  %s2079_s10 = smov 96  }
  0x18   : > { %1842 = vmatprep.subr.mxu0 %v368_v2  ;;  %1851 = vmatpush3.msra.mxu1 %v1748_v4  ;;  %v480_v11 = vld [vmem:[%s2155_s19 + $0x8] sm:$0xff]  ;;  %v2197_v12 = vld [vmem:[%s2624_s4 + $0x10] sm:$0xff]  ;;  %v367_v13 = vld [vmem:[%s2150_s15 + $0x18] sm:$0xff]  ;;  %s822_s15 = sadd.s32 3, %s2142_s9  ;;  %s1062_s11 = sadd.s32 1, %s2138_s29 }
  0x19   : > { %1843 = vmatpush3.msra.mxu0 %v368_v2  ;;  %1852 = vmatprep.subr.mxu1 %v1747_v5  ;;  %v2207_v14 = vld [vmem:[%s2624_s4 + $0x38] sm:$0xff]  ;;  %v2212_v15 = vld [vmem:[%s2624_s4 + $0x8] sm:$0xff]  ;;  %v481_v16 = vld [vmem:[%s2155_s19 + $0x10] sm:$0xff]  ;;  %v823_v0 = vstv %s822_s15  ;;  %s1065_s12 = sadd.s32 2, %s2142_s9  ;;  %s1300_s13 = sadd.s32 2, %s2138_s29 }
  0x1a   : > { %1845 = vmatmul.mubr.msk.f32.vlgmr.msra.gmra.mxu0 %vm377_vm1, %v365_v6  ;;  %1860 = vmatprep.subr.mxu0 %v2074_v9  ;;  %v2222_v17 = vld [vmem:[%s2624_s4 + $0x30] sm:$0xff]  ;;  %v482_v18 = vld [vmem:[%s2155_s19 + $0x18] sm:$0xff]  ;;  %v2230_v19 = vld [vmem:[%s2624_s4] sm:$0xff]  ;;  %s1303_s14 = sadd.s32 1, %s2142_s9  ;;  %s1537_s19 = sadd.s32 3, %s2138_s29 }
  0x1b   : > { %1861 = vmatpush3.msra.mxu0 %v2186_v7  ;;  %1853 = vmatpush3.msra.mxu1 %v1747_v5  ;;  %v2236_v20 = vld [vmem:[#allocation2] sm:$0xff]  ;;  %v2241_v21 = vld [vmem:[%s2624_s4 + $0x28] sm:$0xff]  ;;  %v2256_v24 = vld [vmem:[#allocation4] sm:$0xff]  ;;  %p1783_p6 = scmp.ne.s32.totalorder %s2133_s28, 1 }
  0x1c   : > { %1854 = vmatprep.mubr.msk.f32.mxu1 %vm377_vm1, %v479_v8  ;;  %1862 = vmatprep.subr.mxu0 %v2074_v9  ;;  %v2251_v22 = vld [vmem:[%s2624_s4 + $0x20] sm:$0xff]  ;;  %v609_v23 = vld [vmem:[#allocation3] sm:$0xff]  ;;  %v611_v25 = vld [vmem:[#allocation5] sm:$0xff]  ;;  %s2080_s29 = smov (!%p1783_p6), 64  }
  0x1d   : > { %1847 = vmatprep.mubr.msk.f32.mxu0 %vm377_vm1, %v366_v10  ;;  %1855 = vmatmul.mubr.msk.f32.vlgmr.msra.gmra.mxu1 %vm377_vm1, %v480_v11  ;;  %v1742_v26 = vld [vmem:[%s2625_s5] ss:$0 sm:$0xff]  ;;  %v1750_v29 = vld [vmem:[%s2625_s5 + $0x1] ss:$0 sm:$0xff] }
  0x1e   : > { %1863 = vmatpush3.msra.mxu0 %v2197_v12  ;;  %1871 = vmatprep.subr.mxu1 %v2074_v9  ;;  %v2313_v59 = vld [vmem:[%s2622_s2] sm:$0xff] }
  0x1f   : > { %1848 = vmatmul.mubr.msk.f32.gmra.mxu0 %vm377_vm1, %v367_v13  ;;  %1864 = vmatprep.subr.mxu0 %v2074_v9  ;;  %vm821_vm4 = vcmp.lt.s32.totalorder %v820_v60, %v2313_v59  ;;  %vm824_vm5 = vcmp.lt.s32.totalorder %v823_v0, %v2313_v59 }
  0x20   : > { %1872 = vmatpush3.msra.mxu1 %v2207_v14  ;;  %1865 = vmatpush3.msra.mxu0 %v2212_v15  ;;  %v825_v3 = vsel %vm821_vm4, 1, %v2077_v50  ;;  %v836_v5 = vsel %vm824_vm5, 1, %v2077_v50 }
  0x21   : > { %1873 = vmatprep.subr.mxu1 %v2074_v9  ;;  %1857 = vmatprep.mubr.msk.f32.mxu1 %vm377_vm1, %v481_v16 }
  0x22   : > { %1866 = vmatprep.subr.mxu0 %v2074_v9  ;;  %1874 = vmatpush3.msra.mxu1 %v2222_v17 }
  0x23   : > { %1858 = vmatmul.mubr.msk.f32.gmra.mxu1 %vm377_vm1, %v482_v18  ;;  %1867 = vmatpush3.msra.mxu0 %v2230_v19 }
  0x24   : > { %1868 = vmatprep.mubr.msk.f32.mxu0 %vm2075_vm3, %v2074_v9  ;;  %1875 = vmatprep.subr.mxu1 %v2074_v9 }
  0x25   : > { %1869 = vmatmul.mubr.msk.f32.vlgmr.msra.gmra.mxu0 %vm613_vm2, %v2236_v20  ;;  %1876 = vmatpush3.msra.mxu1 %v2241_v21 }
  0x26   : > { %1877 = vmatprep.subr.mxu1 %v2074_v9  ;;  %1879 = vmatprep.mubr.msk.f32.mxu1 %vm2075_vm3, %v2074_v9 }
  0x27   : > { %1878 = vmatpush3.msra.mxu1 %v2251_v22  ;;  %772 = vrot.lane.b32.xlu1 %v609_v23, %s2076_s17 }
  0x28   : > { %1880 = vmatmul.mubr.msk.f32.vlgmr.msra.gmra.mxu1 %vm613_vm2, %v2256_v24  ;;  %1882 = vmatprep.subr.mxu0 %v2074_v9 }
  0x29   : > { %1883 = vmatpush3.msra.mxu0 %v2186_v7  ;;  %1893 = vmatprep.subr.mxu1 %v2074_v9 }
  0x2a   : > { %1884 = vmatprep.subr.mxu0 %v2074_v9  ;;  %1894 = vmatpush3.msra.mxu1 %v2207_v14 }
  0x2b   : > { %800 = vrot.lane.b32.xlu1 %v611_v25, %s2076_s17  ;;  %1885 = vmatpush3.msra.mxu0 %v2197_v12 }
  0x2c   : > { %1886 = vmatprep.subr.mxu0 %v2074_v9  ;;  %1895 = vmatprep.subr.mxu1 %v2074_v9 }
  0x2d   : > { %1887 = vmatpush3.msra.mxu0 %v2212_v15  ;;  %1890 = vmatprep.mubr.msk.f32.mxu0 %vm2075_vm3, %v2074_v9 }
  0x2e   : > { %1888 = vmatprep.subr.mxu0 %v2074_v9  ;;  %1896 = vmatpush3.msra.mxu1 %v2222_v17 }
  0x2f   : > { %1889 = vmatpush3.msra.mxu0 %v2230_v19  ;;  %1897 = vmatprep.subr.mxu1 %v2074_v9 }
  0x30   : > { %1898 = vmatpush3.msra.mxu1 %v2241_v21  ;;  %1901 = vmatprep.mubr.msk.f32.mxu1 %vm2075_vm3, %v2074_v9 }
  0x31   : > { %1899 = vmatprep.subr.mxu1 %v2074_v9  ;;  %1904 = vmatprep.subr.mxu0 %v2074_v9 }
  0x32   : > { %1900 = vmatpush3.msra.mxu1 %v2251_v22  ;;  %1971 = vset.pattern.permute.xlu0 %v2077_v50 }
  0x33   : > { %1915 = vmatprep.subr.mxu1 %v2074_v9  ;;  %1972 = vset.pattern.permute.xlu1 %v2077_v50 }
  0x99   : > { %v2323_v6 = vpop.permute.xlu1 %772 }
  0x9d   : > { %v2326_v10 = vpop.permute.xlu1 %800 }
  0xda   : > { %v1846_v27 = vpop.f32.mrf.mxu0 }
  0xdb   : > { %v2291_v28 = vadd.f32 %v1846_v27, %v1742_v26 }
  0xdc   : > { %v456_v30 = vpop.f32.mrf.mxu0 }
  0xdd   : > { %v1856_v31 = vpop.f32.mrf.mxu1  ;;  %v457_v40 = vadd.f32 %v1742_v26, %v456_v30 }
  0xde   : > { %v2296_v32 = vadd.f32 %v1856_v31, %v1750_v29 }
  0xdf   : > { %v1849_v33 = vpop.f32.mrf.mxu0  ;;  %v572_v34 = vpop.f32.mrf.mxu1 }
  0xe0   : > { %v2298_v35 = vadd.f32 %v1849_v33, %v1742_v26  ;;  %v2300_v36 = vadd.f32 %v1750_v29, %v572_v34 }
  0xe1   : > { %v466_v37 = vpop.f32.mrf.mxu0 }
  0xe2   : > { %v2302_v38 = vadd.f32 %v1742_v26, %v466_v37 }
  0xe3   : > { %v1859_v39 = vpop.f32.mrf.mxu1 }
  0xe4   : > { %v588_v41 = vadd.f32 %v1859_v39, %v1750_v29 }
  0xe5   : > { %v683_v42 = vpop.f32.mrf.mxu0  ;;  %v582_v43 = vpop.f32.mrf.mxu1 }
  0xe6   : > { %v687_v44 = vadd.f32 %v683_v42, %v457_v40  ;;  %v2304_v45 = vadd.f32 %v1750_v29, %v582_v43 }
  0xe7   : > { %v1870_v46 = vpop.f32.mrf.mxu0 }
  0xe8   : > { %1973 = vtanh.f32 %v687_v44  ;;  %v759_v47 = vpop.f32.mrf.mxu1  ;;  %v1763_v53 = vmul.f32 -1.442695, %v687_v44 }
  0xe9   : > { %v763_v48 = vadd.f32 %v759_v47, %v588_v41 }
  0xea   : > { %v1881_v49 = vpop.f32.mrf.mxu1 }
  0xeb   : > { %1975 = vtanh.f32 %v763_v48  ;;  %v1764_v54 = vmul.f32 -1.442695, %v763_v48 }
  0xec   : > { %1977 = vpow2.f32 %v1763_v53 }
  0xed   : > { %1979 = vpow2.f32 %v1764_v54 }
  0xf5   : > { %v1974_v51 = vpop.eup %1973 }
  0xf6   : > { %777 = vrot.lane.b32.xlu0 %v1974_v51, %s2078_s24 }
  0xf8   : > { %v1976_v52 = vpop.eup %1975 }
  0xf9   : > { %v1978_v55 = vpop.eup %1977 }
  0xfa   : > { %805 = vrot.lane.b32.xlu0 %v1976_v52, %s2078_s24  ;;  %v767_v56 = vadd.f32 1.0, %v1978_v55  ;;  %v1980_v57 = vpop.eup %1979 }
  0xfb   : > { %v795_v58 = vadd.f32 1.0, %v1980_v57 }
  0xfc   : > { %1981 = vrcp.f32 %v767_v56 }
  0xfd   : > { %1983 = vrcp.f32 %v795_v58 }
 0x109   : > { %v1982_v61 = vpop.eup %1981 }
 0x10a   : > { %v1984_v1 = vpop.eup %1983  ;;  %v775_v8 = vmul.f32 %v1982_v61, %v2323_v6 }
 0x10b   : > { %v803_v16 = vmul.f32 %v1984_v1, %v2326_v10 }
 0x168   : > { %v778_v62 = vpop.permute.xlu0 %777 }
 0x169   : > { %v780_v63 = vmul.f32 %v1982_v61, %v778_v62 }
 0x16b   : > { %782 = vrot.lane.b32.xlu0 %v780_v63, %s2076_s17 }
 0x16c   : > { %v806_v2 = vpop.permute.xlu0 %805 }
 0x16d   : > { %v808_v4 = vmul.f32 %v1984_v1, %v806_v2 }
 0x16f   : > { %810 = vrot.lane.b32.xlu1 %v808_v4, %s2076_s17  ;;  %827 = vperm.xlu0 %1971, %v825_v3  }
 0x173   : > { %838 = vperm.xlu1 %1972, %v836_v5  }
 0x1dd   : > { %v783_v11 = vpop.permute.xlu0 %782 }
 0x1de   : > { %v2328_v13 = vadd.f32 %v783_v11, %v775_v8 }
 0x1e0   : > { %1985 = vtanh.f32 %v2328_v13 }
 0x1e1   : > { %v811_v18 = vpop.permute.xlu1 %810 }
 0x1e2   : > { %v2332_v23 = vadd.f32 %v811_v18, %v803_v16 }
 0x1e4   : > { %1987 = vtanh.f32 %v2332_v23 }
 0x1ea   : > { %v2343_v29 = vpop.permute.xlu0 %827 }
 0x1eb   : > { %vm829_vm6 = vcmp.eq.s32.totalorder %v2343_v29, 1 }
 0x1ec   : > { %v2403_v3 = vsel %vm829_vm6, %v2328_v13, %v2323_v6 }
 0x1ed   : > { %v1986_v25 = vpop.eup %1985 }
 0x1ee   : > { %788 = vrot.lane.b32.xlu1 %v1986_v25, %s2078_s24  ;;  %v2341_v27 = vpop.permute.xlu1 %838 }
 0x1ef   : > { %vm840_vm7 = vcmp.eq.s32.totalorder %v2341_v27, 1 }
 0x1f0   : > { %v2412_v11 = vsel %vm840_vm7, %v2332_v23, %v2326_v10 }
 0x1f1   : > { %v1988_v26 = vpop.eup %1987 }
 0x1f2   : > { %816 = vrot.lane.b32.xlu0 %v1988_v26, %s2078_s24  ;;  %848 = vrot.lane.b32.xlu1 %v2236_v20, %s2079_s10 }
 0x1f6   : > { %853 = vrot.lane.b32.xlu0 %v2256_v24, %s2079_s10 }
 0x260   : > { %v789_v30 = vpop.permute.xlu1 %788 }
 0x261   : > { %v2345_v31 = vmul.f32 %v1982_v61, %v789_v30  ;;  %v1066_v61 = vstv %s1065_s12 }
 0x262   : > { %vm1067_vm9 = vcmp.lt.s32.totalorder %v1066_v61, %v2313_v59 }
 0x263   : > { %v1080_v2 = vsel %vm1067_vm9, 1, %v2077_v50 }
 0x264   : > { %v817_v33 = vpop.permute.xlu0 %816  ;;  %v849_v34 = vpop.permute.xlu1 %848 }
 0x265   : > { %v2351_v37 = vsel %vm829_vm6, %v2345_v31, %v849_v34  ;;  %v2355_v20 = vmul.f32 %v1984_v1, %v817_v33 }
 0x266   : > { %861 = vrot.lane.b32.xlu1 %v2351_v37, %s2076_s17 }
 0x268   : > { %v854_v24 = vpop.permute.xlu0 %853 }
 0x269   : > { %v2361_v39 = vsel %vm840_vm7, %v2355_v20, %v854_v24 }
 0x26a   : > { %939 = vrot.lane.b32.xlu0 %v2361_v39, %s2076_s17 }
 0x2d8   : > { %v862_v40 = vpop.permute.xlu1 %861 }
 0x2d9   : > { %1891 = vmatmul.mubr.msk.f32.vlgmr.msra.gmra.mxu0 %vm613_vm2, %v862_v40 }
 0x2da   : > { %1905 = vmatpush3.msra.mxu0 %v2186_v7  ;;  %1912 = vmatprep.mubr.msk.f32.mxu0 %vm2075_vm3, %v2074_v9 }
 0x2db   : > { %1906 = vmatprep.subr.mxu0 %v2074_v9 }
 0x2dc   : > { %v940_v41 = vpop.permute.xlu0 %939  ;;  %1907 = vmatpush3.msra.mxu0 %v2197_v12 }
 0x2dd   : > { %1902 = vmatmul.mubr.msk.f32.vlgmr.msra.gmra.mxu1 %vm613_vm2, %v940_v41  ;;  %1908 = vmatprep.subr.mxu0 %v2074_v9 }
 0x2de   : > { %1909 = vmatpush3.msra.mxu0 %v2212_v15  ;;  %1916 = vmatpush3.msra.mxu1 %v2207_v14 }
 0x2df   : > { %1910 = vmatprep.subr.mxu0 %v2074_v9  ;;  %1917 = vmatprep.subr.mxu1 %v2074_v9 }
 0x2e0   : > { %1911 = vmatpush3.msra.mxu0 %v2230_v19  ;;  %1918 = vmatpush3.msra.mxu1 %v2222_v17 }
 0x2e1   : > { %1919 = vmatprep.subr.mxu1 %v2074_v9  ;;  %1923 = vmatprep.mubr.msk.f32.mxu1 %vm2075_vm3, %v2074_v9 }
 0x2e2   : > { %1920 = vmatpush3.msra.mxu1 %v2241_v21  ;;  %1926 = vmatprep.subr.mxu0 %v2074_v9 }
 0x2e3   : > { %1921 = vmatprep.subr.mxu1 %v2074_v9 }
 0x2e4   : > { %1922 = vmatpush3.msra.mxu1 %v2251_v22 }
 0x2e5   : > { %1937 = vmatprep.subr.mxu1 %v2074_v9 }
 0x399   : > { %v931_v42 = vpop.f32.mrf.mxu0 }
 0x39a   : > { %v935_v43 = vadd.f32 %v931_v42, %v2291_v28 }
 0x39b   : > { %v1892_v44 = vpop.f32.mrf.mxu0 }
 0x39c   : > { %1989 = vtanh.f32 %v935_v43  ;;  %v1768_v52 = vmul.f32 -1.442695, %v935_v43 }
 0x39d   : > { %v1009_v46 = vpop.f32.mrf.mxu1 }
 0x39e   : > { %v1013_v47 = vadd.f32 %v1009_v46, %v2304_v45  ;;  %v1063_v45 = vstv %s1062_s11 }
 0x39f   : > { %v1903_v48 = vpop.f32.mrf.mxu1  ;;  %vm1064_vm8 = vcmp.lt.s32.totalorder %v1063_v45, %v2313_v59 }
 0x3a0   : > { %1991 = vtanh.f32 %v1013_v47  ;;  %v1769_v53 = vmul.f32 -1.442695, %v1013_v47  ;;  %v1068_v0 = vsel %vm1064_vm8, 1, %v2077_v50 }
 0x3a1   : > { %1993 = vpow2.f32 %v1768_v52 }
 0x3a2   : > { %1995 = vpow2.f32 %v1769_v53 }
 0x3a9   : > { %v1990_v49 = vpop.eup %1989 }
 0x3aa   : > { %1023 = vrot.lane.b32.xlu1 %v1990_v49, %s2078_s24  ;;  %v1304_v49 = vstv %s1303_s14 }
 0x3ab   : > { %vm1305_vm13 = vcmp.lt.s32.totalorder %v1304_v49, %v2313_v59 }
 0x3ad   : > { %v1992_v51 = vpop.eup %1991 }
 0x3ae   : > { %1047 = vrot.lane.b32.xlu0 %v1992_v51, %s2078_s24  ;;  %v1994_v28 = vpop.eup %1993 }
 0x3af   : > { %v1017_v54 = vadd.f32 1.0, %v1994_v28  ;;  %v1996_v55 = vpop.eup %1995 }
 0x3b0   : > { %v1041_v56 = vadd.f32 1.0, %v1996_v55 }
 0x3b1   : > { %1997 = vrcp.f32 %v1017_v54  ;;  %v1318_v54 = vsel %vm1305_vm13, 1, %v2077_v50 }
 0x3b2   : > { %1999 = vrcp.f32 %v1041_v56 }
 0x3be   : > { %v1998_v57 = vpop.eup %1997 }
 0x3bf   : > { %v2000_v62 = vpop.eup %1999  ;;  %v1021_v4 = vmul.f32 %v1998_v57, %v2403_v3 }
 0x3c0   : > { %v1045_v16 = vmul.f32 %v2000_v62, %v2412_v11 }
 0x41c   : > { %v1024_v58 = vpop.permute.xlu1 %1023 }
 0x41d   : > { %v1026_v60 = vmul.f32 %v1998_v57, %v1024_v58 }
 0x41f   : > { %1028 = vrot.lane.b32.xlu1 %v1026_v60, %s2076_s17 }
 0x420   : > { %v1048_v63 = vpop.permute.xlu0 %1047 }
 0x421   : > { %v1050_v1 = vmul.f32 %v2000_v62, %v1048_v63 }
 0x423   : > { %1052 = vrot.lane.b32.xlu0 %v1050_v1, %s2076_s17  ;;  %1070 = vperm.xlu1 %1972, %v1068_v0  }
 0x427   : > { %1082 = vperm.xlu0 %1971, %v1080_v2  }
 0x491   : > { %v1029_v5 = vpop.permute.xlu1 %1028 }
 0x492   : > { %v2406_v8 = vadd.f32 %v1029_v5, %v1021_v4 }
 0x494   : > { %2001 = vtanh.f32 %v2406_v8 }
 0x495   : > { %v1053_v18 = vpop.permute.xlu0 %1052 }
 0x496   : > { %v2416_v25 = vadd.f32 %v1053_v18, %v1045_v16 }
 0x498   : > { %2003 = vtanh.f32 %v2416_v25 }
 0x49e   : > { %v2421_v26 = vpop.permute.xlu1 %1070 }
 0x49f   : > { %vm1072_vm10 = vcmp.eq.s32.totalorder %v2421_v26, 1 }
 0x4a0   : > { %v2483_v55 = vsel %vm1072_vm10, %v2406_v8, %v2403_v3 }
 0x4a1   : > { %v2002_v6 = vpop.eup %2001 }
 0x4a2   : > { %1034 = vrot.lane.b32.xlu1 %v2002_v6, %s2078_s24  ;;  %v2423_v30 = vpop.permute.xlu0 %1082 }
 0x4a3   : > { %vm1084_vm11 = vcmp.eq.s32.totalorder %v2423_v30, 1 }
 0x4a4   : > { %v2492_v58 = vsel %vm1084_vm11, %v2416_v25, %v2412_v11 }
 0x4a5   : > { %v2004_v13 = vpop.eup %2003 }
 0x4a6   : > { %1058 = vrot.lane.b32.xlu0 %v2004_v13, %s2078_s24 }
 0x514   : > { %v1035_v10 = vpop.permute.xlu1 %1034 }
 0x515   : > { %v2425_v23 = vmul.f32 %v1998_v57, %v1035_v10 }
 0x517   : > { %v2432_v33 = vsel %vm1072_vm10, %v2425_v23, %v2351_v37 }
 0x518   : > { %v1059_v34 = vpop.permute.xlu0 %1058  ;;  %1099 = vrot.lane.b32.xlu1 %v2432_v33, %s2076_s17 }
 0x519   : > { %v2436_v24 = vmul.f32 %v2000_v62, %v1059_v34 }
 0x51b   : > { %v2443_v40 = vsel %vm1084_vm11, %v2436_v24, %v2361_v39  ;;  %v1085_v29 = vsel %vm1084_vm11, %v2436_v24, 0.0 }
 0x51c   : > { %1177 = vrot.lane.b32.xlu0 %v2443_v40, %s2076_s17 }
 0x58a   : > { %v1100_v41 = vpop.permute.xlu1 %1099 }
 0x58b   : > { %1913 = vmatmul.mubr.msk.f32.vlgmr.msra.gmra.mxu0 %vm613_vm2, %v1100_v41 }
 0x58c   : > { %1927 = vmatpush3.msra.mxu0 %v2186_v7  ;;  %1934 = vmatprep.mubr.msk.f32.mxu0 %vm2075_vm3, %v2074_v9 }
 0x58d   : > { %1928 = vmatprep.subr.mxu0 %v2074_v9 }
 0x58e   : > { %v1178_v37 = vpop.permute.xlu0 %1177  ;;  %1929 = vmatpush3.msra.mxu0 %v2197_v12 }
 0x58f   : > { %1924 = vmatmul.mubr.msk.f32.vlgmr.msra.gmra.mxu1 %vm613_vm2, %v1178_v37  ;;  %1930 = vmatprep.subr.mxu0 %v2074_v9 }
 0x590   : > { %1931 = vmatpush3.msra.mxu0 %v2212_v15  ;;  %1938 = vmatpush3.msra.mxu1 %v2207_v14 }
 0x591   : > { %1932 = vmatprep.subr.mxu0 %v2074_v9  ;;  %1939 = vmatprep.subr.mxu1 %v2074_v9 }
 0x592   : > { %1933 = vmatpush3.msra.mxu0 %v2230_v19  ;;  %1940 = vmatpush3.msra.mxu1 %v2222_v17 }
 0x593   : > { %1941 = vmatprep.subr.mxu1 %v2074_v9  ;;  %1945 = vmatprep.mubr.msk.f32.mxu1 %vm2075_vm3, %v2074_v9 }
 0x594   : > { %1942 = vmatpush3.msra.mxu1 %v2241_v21 }
 0x595   : > { %1943 = vmatprep.subr.mxu1 %v2074_v9 }
 0x596   : > { %1944 = vmatpush3.msra.mxu1 %v2251_v22 }
 0x64b   : > { %v1169_v7 = vpop.f32.mrf.mxu0 }
 0x64c   : > { %v1173_v12 = vadd.f32 %v1169_v7, %v2302_v38 }
 0x64d   : > { %v1914_v14 = vpop.f32.mrf.mxu0 }
 0x64e   : > { %2005 = vtanh.f32 %v1173_v12  ;;  %v1774_v9 = vmul.f32 -1.442695, %v1173_v12 }
 0x64f   : > { %v1247_v15 = vpop.f32.mrf.mxu1 }
 0x650   : > { %v1251_v19 = vadd.f32 %v1247_v15, %v2296_v32  ;;  %v1301_v32 = vstv %s1300_s13 }
 0x651   : > { %v1925_v17 = vpop.f32.mrf.mxu1  ;;  %vm1302_vm12 = vcmp.lt.s32.totalorder %v1301_v32, %v2313_v59 }
 0x652   : > { %2007 = vtanh.f32 %v1251_v19  ;;  %v1775_v22 = vmul.f32 -1.442695, %v1251_v19  ;;  %v1306_v53 = vsel %vm1302_vm12, 1, %v2077_v50 }
 0x653   : > { %2009 = vpow2.f32 %v1774_v9  ;;  %v1540_v9 = vstv %s2142_s9 }
 0x654   : > { %2011 = vpow2.f32 %v1775_v22  ;;  %vm1541_vm1 = vcmp.lt.s32.totalorder %v1540_v9, %v2313_v59 }
 0x65b   : > { %v2006_v39 = vpop.eup %2005 }
 0x65c   : > { %1261 = vrot.lane.b32.xlu1 %v2006_v39, %s2078_s24 }
 0x65f   : > { %v2008_v21 = vpop.eup %2007 }
 0x660   : > { %1285 = vrot.lane.b32.xlu0 %v2008_v21, %s2078_s24  ;;  %v2010_v38 = vpop.eup %2009 }
 0x661   : > { %v1255_v42 = vadd.f32 1.0, %v2010_v38  ;;  %v2012_v43 = vpop.eup %2011 }
 0x662   : > { %v1279_v44 = vadd.f32 1.0, %v2012_v43 }
 0x663   : > { %2013 = vrcp.f32 %v1255_v42 }
 0x664   : > { %2015 = vrcp.f32 %v1279_v44  ;;  %v1554_v44 = vsel %vm1541_vm1, 1, %v2077_v50 }
 0x670   : > { %v2014_v46 = vpop.eup %2013 }
 0x671   : > { %v2016_v51 = vpop.eup %2015  ;;  %v1259_v56 = vmul.f32 %v2014_v46, %v2483_v55 }
 0x672   : > { %v1283_v60 = vmul.f32 %v2016_v51, %v2492_v58 }
 0x6ce   : > { %v1262_v47 = vpop.permute.xlu1 %1261 }
 0x6cf   : > { %v1264_v48 = vmul.f32 %v2014_v46, %v1262_v47 }
 0x6d1   : > { %1266 = vrot.lane.b32.xlu1 %v1264_v48, %s2076_s17 }
 0x6d2   : > { %v1286_v52 = vpop.permute.xlu0 %1285 }
 0x6d3   : > { %v1288_v28 = vmul.f32 %v2016_v51, %v1286_v52 }
 0x6d5   : > { %1290 = vrot.lane.b32.xlu0 %v1288_v28, %s2076_s17  ;;  %1308 = vperm.xlu1 %1972, %v1306_v53   ;;  %v830_v28 = vsel %vm829_vm6, %v2345_v31, 0.0 }
 0x6d9   : > { %1320 = vperm.xlu0 %1971, %v1318_v54   ;;  %v841_v54 = vsel %vm840_vm7, %v2355_v20, 0.0 }
 0x743   : > { %v1267_v45 = vpop.permute.xlu1 %1266 }
 0x744   : > { %v2486_v57 = vadd.f32 %v1267_v45, %v1259_v56 }
 0x746   : > { %2017 = vtanh.f32 %v2486_v57 }
 0x747   : > { %v1291_v61 = vpop.permute.xlu0 %1290 }
 0x748   : > { %v2496_v62 = vadd.f32 %v1291_v61, %v1283_v60 }
 0x74a   : > { %2019 = vtanh.f32 %v2496_v62 }
 0x750   : > { %v2501_v1 = vpop.permute.xlu1 %1308 }
 0x751   : > { %vm1310_vm14 = vcmp.eq.s32.totalorder %v2501_v1, 1 }
 0x752   : > { %v1331_v32 = vsel %vm1310_vm14, %v2486_v57, %v2483_v55  ;;  %v1073_v55 = vsel %vm1072_vm10, %v2425_v23, 0.0 }
 0x753   : > { %v2018_v63 = vpop.eup %2017 }
 0x754   : > { %1272 = vrot.lane.b32.xlu1 %v2018_v63, %s2078_s24  ;;  %v2503_v2 = vpop.permute.xlu0 %1320 }
 0x755   : > { %vm1322_vm15 = vcmp.eq.s32.totalorder %v2503_v2, 1 }
 0x756   : > { %v1333_v49 = vsel %vm1322_vm15, %v2496_v62, %v2492_v58 }
 0x757   : > { %v2020_v0 = vpop.eup %2019 }
 0x758   : > { %1296 = vrot.lane.b32.xlu0 %v2020_v0, %s2078_s24 }
 0x7c6   : > { %v1273_v3 = vpop.permute.xlu1 %1272 }
 0x7c7   : > { %v2505_v4 = vmul.f32 %v2014_v46, %v1273_v3 }
 0x7c9   : > { %v2512_v5 = vsel %vm1310_vm14, %v2505_v4, %v2432_v33  ;;  %v1311_v31 = vsel %vm1310_vm14, %v2505_v4, 0.0 }
 0x7ca   : > { %v1297_v8 = vpop.permute.xlu0 %1296  ;;  %1337 = vrot.lane.b32.xlu1 %v2512_v5, %s2076_s17 }
 0x7cb   : > { %v2516_v11 = vmul.f32 %v2016_v51, %v1297_v8 }
 0x7cd   : > { %v2523_v16 = vsel %vm1322_vm15, %v2516_v11, %v2443_v40  ;;  %v1323_v20 = vsel %vm1322_vm15, %v2516_v11, 0.0 }
 0x7ce   : > { %1414 = vrot.lane.b32.xlu0 %v2523_v16, %s2076_s17 }
 0x83c   : > { %v1338_v18 = vpop.permute.xlu1 %1337 }
 0x83d   : > { %1935 = vmatmul.mubr.msk.f32.vlgmr.msra.gmra.mxu0 %vm613_vm2, %v1338_v18 }
 0x840   : > { %v1415_v25 = vpop.permute.xlu0 %1414 }
 0x841   : > { %1946 = vmatmul.mubr.msk.f32.vlgmr.msra.gmra.mxu1 %vm613_vm2, %v1415_v25 }
 0x8fd   : > { %v1407_v6 = vpop.f32.mrf.mxu0 }
 0x8fe   : > { %v1411_v13 = vadd.f32 %v1407_v6, %v2298_v35 }
 0x8ff   : > { %v1936_v10 = vpop.f32.mrf.mxu0 }
 0x900   : > { %2021 = vtanh.f32 %v1411_v13  ;;  %v1780_v7 = vmul.f32 -1.442695, %v1411_v13 }
 0x901   : > { %v1484_v33 = vpop.f32.mrf.mxu1 }
 0x902   : > { %v1488_v34 = vadd.f32 %v1484_v33, %v2300_v36  ;;  %v1538_v36 = vstv %s1537_s19 }
 0x903   : > { %v1947_v41 = vpop.f32.mrf.mxu1  ;;  %vm1539_vm0 = vcmp.lt.s32.totalorder %v1538_v36, %v2313_v59 }
 0x904   : > { %2023 = vtanh.f32 %v1488_v34  ;;  %v1781_v12 = vmul.f32 -1.442695, %v1488_v34  ;;  %v1542_v42 = vsel %vm1539_vm0, 1, %v2077_v50 }
 0x905   : > { %2025 = vpow2.f32 %v1780_v7 }
 0x906   : > { %2027 = vpow2.f32 %v1781_v12 }
 0x90d   : > { %v2022_v40 = vpop.eup %2021 }
 0x90e   : > { %1498 = vrot.lane.b32.xlu1 %v2022_v40, %s2078_s24 }
 0x911   : > { %v2024_v37 = vpop.eup %2023 }
 0x912   : > { %1522 = vrot.lane.b32.xlu0 %v2024_v37, %s2078_s24  ;;  %v2026_v35 = vpop.eup %2025 }
 0x913   : > { %v1492_v14 = vadd.f32 1.0, %v2026_v35  ;;  %v2028_v15 = vpop.eup %2027 }
 0x914   : > { %v1516_v19 = vadd.f32 1.0, %v2028_v15 }
 0x915   : > { %2029 = vrcp.f32 %v1492_v14 }
 0x916   : > { %2031 = vrcp.f32 %v1516_v19 }
 0x922   : > { %v2030_v17 = vpop.eup %2029 }
 0x923   : > { %v2032_v22 = vpop.eup %2031  ;;  %v1496_v46 = vmul.f32 %v2030_v17, %v1331_v32 }
 0x924   : > { %v1520_v59 = vmul.f32 %v2032_v22, %v1333_v49 }
 0x980   : > { %v1499_v39 = vpop.permute.xlu1 %1498 }
 0x981   : > { %v1501_v21 = vmul.f32 %v2030_v17, %v1499_v39 }
 0x983   : > { %1503 = vrot.lane.b32.xlu1 %v1501_v21, %s2076_s17 }
 0x984   : > { %v1523_v38 = vpop.permute.xlu0 %1522 }
 0x985   : > { %v1525_v43 = vmul.f32 %v2032_v22, %v1523_v38 }
 0x987   : > { %1527 = vrot.lane.b32.xlu0 %v1525_v43, %s2076_s17  ;;  %1544 = vperm.xlu1 %1972, %v1542_v42  }
 0x98b   : > { %1556 = vperm.xlu0 %1971, %v1554_v44  }
 0x9f5   : > { %v1504_v47 = vpop.permute.xlu1 %1503 }
 0x9f6   : > { %v1506_v48 = vadd.f32 %v1504_v47, %v1496_v46 }
 0x9f8   : > { %2033 = vtanh.f32 %v1506_v48 }
 0x9f9   : > { %v1528_v51 = vpop.permute.xlu0 %1527 }
 0x9fa   : > { %v1530_v52 = vadd.f32 %v1528_v51, %v1520_v59 }
 0x9fc   : > { %2035 = vtanh.f32 %v1530_v52 }
 0xa02   : > { %v1545_v27 = vpop.permute.xlu1 %1544 }
 0xa03   : > { %vm1546_vm3 = vcmp.eq.s32.totalorder %v1545_v27, 1 }
 0xa04   : > { %v1566_v26 = vsel %vm1546_vm3, %v1506_v48, %v1331_v32 }
 0xa05   : > { %v2034_v50 = vpop.eup %2033 }
 0xa06   : > { %1509 = vrot.lane.b32.xlu1 %v2034_v50, %s2078_s24  ;;  %v1557_v30 = vpop.permute.xlu0 %1556 }
 0xa07   : > { %vm1558_vm4 = vcmp.eq.s32.totalorder %v1557_v30, 1 }
 0xa08   : > { %v1568_v0 = vsel %vm1558_vm4, %v1530_v52, %v1333_v49 }
 0xa09   : > { %v2036_v53 = vpop.eup %2035 }
 0xa0a   : > { %1533 = vrot.lane.b32.xlu0 %v2036_v53, %s2078_s24  ;;  %832 = vrot.lane.b32.xlu1 %v830_v28, %s2076_s17 }
 0xa0e   : > { %843 = vrot.lane.b32.xlu0 %v841_v54, %s2076_s17  ;;  %1075 = vrot.lane.b32.xlu1 %v1073_v55, %s2076_s17 }
 0xa12   : > { %1087 = vrot.lane.b32.xlu0 %v1085_v29, %s2076_s17  ;;  %1313 = vrot.lane.b32.xlu1 %v1311_v31, %s2076_s17 }
 0xa16   : > { %1325 = vrot.lane.b32.xlu0 %v1323_v20, %s2076_s17 }
 0xa1a   : > { %1575 = vrot.lane.b32.xlu0 %v1566_v26, %s2079_s10 }
 0xa78   : > { %v1510_v23 = vpop.permute.xlu1 %1509 }
 0xa79   : > { %v1512_v24 = vmul.f32 %v2030_v17, %v1510_v23 }
 0xa7b   : > { %v1547_v56 = vsel %vm1546_vm3, %v1512_v24, 0.0  ;;  %v1565_v61 = vsel %vm1546_vm3, %v1512_v24, %v2512_v5 }
 0xa7c   : > { %v1534_v45 = vpop.permute.xlu0 %1533  ;;  %1549 = vrot.lane.b32.xlu1 %v1547_v56, %s2076_s17  ;;  %v833_v57 = vpop.permute.xlu1 %832 }
 0xa7d   : > { %v1536_v58 = vmul.f32 %v2032_v22, %v1534_v45  ;;  %835 = vst.msk [vmem:[%s2160_s22] sm:$0xff] %vm613_vm2, %v833_v57 }
 0xa7f   : > { %v1559_v60 = vsel %vm1558_vm4, %v1536_v58, 0.0  ;;  %v1567_v1 = vsel %vm1558_vm4, %v1536_v58, %v2523_v16 }
 0xa80   : > { %v844_v62 = vpop.permute.xlu0 %843  ;;  %1561 = vrot.lane.b32.xlu0 %v1559_v60, %s2076_s17  ;;  %1570 = vrot.lane.b32.xlu1 %v1565_v61, %s2076_s17  ;;  %v1076_v63 = vpop.permute.xlu1 %1075 }
 0xa81   : > { %1765 = vst.msk [vmem:[%s2165_s25 + $0x18] sm:$0xff] %vm613_vm2, %v844_v62  ;;  %1770 = vst.msk [vmem:[%s2160_s22 + $0x8] sm:$0xff] %vm613_vm2, %v1076_v63 }
 0xa84   : > { %v1088_v2 = vpop.permute.xlu0 %1087  ;;  %1585 = vrot.lane.b32.xlu0 %v1568_v0, %s2079_s10  ;;  %1580 = vrot.lane.b32.xlu1 %v1567_v1, %s2076_s17  ;;  %v1314_v3 = vpop.permute.xlu1 %1313 }
 0xa85   : > { %1771 = vst.msk [vmem:[%s2165_s25 + $0x10] sm:$0xff] %vm613_vm2, %v1088_v2  ;;  %1776 = vst.msk [vmem:[%s2160_s22 + $0x10] sm:$0xff] %vm613_vm2, %v1314_v3 }
 0xa88   : > { %v1326_v4 = vpop.permute.xlu0 %1325 }
 0xa89   : > { %1777 = vst.msk [vmem:[%s2165_s25 + $0x8] sm:$0xff] %vm613_vm2, %v1326_v4 }
 0xa8c   : > { %v1576_v5 = vpop.permute.xlu0 %1575 }
 0xa8d   : > { %1578 = vst.msk [vmem:[#allocation3] sm:$0xff] %vm613_vm2, %v1576_v5 }
 0xaee   : > { %v1550_v8 = vpop.permute.xlu1 %1549 }
 0xaef   : > { %1782 = vst.msk [vmem:[%s2160_s22 + $0x18] sm:$0xff] %vm613_vm2, %v1550_v8 }
 0xaf2   : > { %v1562_v11 = vpop.permute.xlu0 %1561  ;;  %v1571_v16 = vpop.permute.xlu1 %1570 }
 0xaf3   : > { %1564 = vst.msk [vmem:[%s2165_s25] sm:$0xff] %vm613_vm2, %v1562_v11  ;;  %1573 = vst.msk [vmem:[#allocation2] sm:$0xff] %vm613_vm2, %v1571_v16  ;;  %1592 = sbr.rel (%p1783_p6) target bundleno = 2925 (0xb6d), region = 52 }
 0xaf6   : > { %v1586_v18 = vpop.permute.xlu0 %1585  ;;  %v1581_v25 = vpop.permute.xlu1 %1580 }
 0xaf7   : > { %1588 = vst.msk [vmem:[#allocation5] sm:$0xff] %vm613_vm2, %v1586_v18  ;;  %1583 = vst.msk [vmem:[#allocation4] sm:$0xff] %vm613_vm2, %v1581_v25 }
 0xaf8   : > { %1593 = vrot.lane.b32.xlu0 %v1567_v1, %s2080_s29  ;;  %vm1597_vm5 = vcmask 523264  }
 0xb6a   : > { %v1594_v6 = vpop.permute.xlu0 %1593 }
 0xb6b   : > { %v1596_v13 = vsel %vm613_vm2, %v1571_v16, %v1594_v6 }
 0xb6c   : > { %1598 = vst.msk [vmem:[#allocation8] sm:$0xff] %vm1597_vm5, %v1596_v13 }
 0xb6d PF: > { %p1952_p7 = scmp.eq.s32.totalorder %s2133_s28, 1  ;;  %s2081_s9 = smov [#allocation8]  }
 0xb6e   : > { %s1626_s22 = sshll.u32 %s2081_s9, 4  ;;  %s1627_s22 = int_to_ptr.vmem [resolvable:$true] %s1626_s22 }
 0xb6f   : > { %s2037_s25 = scalar_lea.vmem %s1627_s22, 128  ;;  %p2044_p11 = scmp.lt.s32.totalorder %s1627_s22, %s1627_s22 }
 0xb70   : > { %p2038_p8 = scmp.ne.s32.totalorder %s1627_s22, %s2037_s25  ;;  %p2045_p12 = scmp.lt.s32.totalorder %s2037_s25, %s2037_s25 }
 0xb72   : > { %p2039_p9 = pnand %p2038_p8, %p1952_p7  ;;  %p2046_p13 = por %p2045_p12, %p2044_p11 }
 0xb74   : > { %p2040_p10 = pneg %p2039_p9 }
 0xb76   : > { %p2047_p0 = pnand %p2046_p13, %p2040_p10 }
 0xb78   : > { %2050 = shalt.err (!%p2047_p0)
}
 0xb79   : > { %1949 = dma.vmem_to_hbm [thread:$0]  (%p1952_p7), %s1627_s22, 128, %s2628_s8, [#allocation9]  }
 0xb7a   : > { %2066 = dma.done.wait (%p1952_p7), [#allocation9], 128  }
 0xb7b   : > { %2068 = vsyncadd (%p1952_p7), [#allocation9], 4294967168 }
 0xb7c PF: > { %s20_s27 = sadd.s32 1, %s2071_s27  }
 0xb7d   : > { %p17_p1 = scmp.ge.s32.totalorder %s20_s27, 4  }
 0xb7f   :  { %19 = sbr.rel (!%p17_p1) target bundleno = 1 (0x1), region = 121 }
 0xb84   :  { %1656 = vsyncpa [#allocation9], 1 }
 0xb85   :  { %1658 = vsyncpa [#allocation9 + $0x1], 1 }

// kernel: lstm_encoder_forward_pallas.3
= control target key start
LH: loop header
LB: loop body
LE: loop exit
PB: predicated region body
PF: predicated region fallthrough
CT: control target
= control target key end

     0   :  { %s2123_s27 = smov 0   ;;  %s2644_s0 = inlined_call_operand.vmem [shape: f32[64,64], index: 0, kind: input, shape index: {}, may-alias: {0,1}]   ;;  %s2645_s1 = inlined_call_operand.vmem [shape: f32[64,64], index: 1, kind: input, shape index: {}, may-alias: {0,1}]   ;;  %s2646_s2 = inlined_call_operand.vmem [shape: s32[8,1], index: 2, kind: input, shape index: {}]   ;;  %s2647_s3 = inlined_call_operand.vmem [shape: f32[2,64,128], index: 3, kind: input, shape index: {}]   ;;  %s2648_s4 = inlined_call_operand.vmem [shape: f32[2,32,128], index: 4, kind: input, shape index: {}]   ;;  %s2649_s5 = inlined_call_operand.vmem [shape: f32[2,1,128], index: 5, kind: input, shape index: {}]   ;;  %s2650_s6 = inlined_call_operand.vmem [shape: f32[8,8,32], index: 6, kind: output, shape index: {0}]   ;;  %s2651_s7 = inlined_call_operand.vmem [shape: f32[8,8,32], index: 7, kind: output, shape index: {1}]   ;;  %s2652_s8 = inlined_call_operand.vmem [shape: f32[8,64], index: 8, kind: output, shape index: {2}]  }
   0x1 LB: > { %s2129_s28 = sadd.s32 4294967295, %s2068_s27   ;;  %p1724_p0 = scmp.ge.s32.totalorder %s2068_s27, 1  ;;  %s2068_s27 = sphi %s2123_s27, %s19_s27  }
   0x2   : > { %p280_p1 = scmp.lt.s32.totalorder %s2068_s27, 3 }
   0x4   : > { %p281_p2 = pnand %p1724_p0, %p280_p1 }
   0x5   : > { %s2134_s29 = sshll.u32 (!%p281_p2), %s2129_s28, 2  ;;  %s332_s30 = ssub.s32 (!%p281_p2), 1, %s2129_s28 }
   0x6   : > { %284 = sbr.rel (%p281_p2) target bundleno = 2937 (0xb79), region = 44  ;;  %p327_p3 = scmp.lt.s32.totalorder (!%p281_p2), %s2134_s29, 7 }
   0x7   : > { %s2138_s9 = sshll.u32 (!%p281_p2), %s332_s30, 2  ;;  %p1733_p5 = scmp.ne.s32.totalorder (!%p281_p2), %s2129_s28, 0 }
   0x8   : > { %p334_p4 = scmp.lt.s32.totalorder (!%p281_p2), %s2138_s9, 7 }
   0xb   : > { %s328_s10 = scalar_select %p327_p3, %s2134_s29, 7 }
   0xc   : > { %s335_s11 = scalar_select %p334_p4, %s2138_s9, 7 }
   0xd   : > { %s1726_s12 = sshll.u32 %s328_s10, 3  ;;  %357 = sbr.rel (%p1733_p5) target bundleno = 21 (0x15), region = 48 }
   0xe   : > { %s2146_s15 = scalar_lea.vmem %s2644_s0, %s1726_s12  ;;  %s1728_s16 = sshll.u32 %s335_s11, 3 }
   0xf   : > { %s2151_s19 = scalar_lea.vmem %s2645_s1, %s1728_s16  ;;  %s2156_s22 = scalar_lea.vmem %s2650_s6, %s1726_s12 }
  0x10   : > { %s2161_s25 = scalar_lea.vmem %s2651_s7, %s1728_s16 }
  0x12   : > { %vm358_vm0 = vcmask 261120   ;;  %v2070_v0 = vmov 0.0  }
  0x13   : > { %359 = vst.msk [vmem:[#allocation2] sm:$0xff] %vm358_vm0, %v2070_v0  ;;  %360 = vst.msk [vmem:[#allocation3] sm:$0xff] %vm358_vm0, %v2070_v0 }
  0x14   : > { %361 = vst.msk [vmem:[#allocation4] sm:$0xff] %vm358_vm0, %v2070_v0  ;;  %362 = vst.msk [vmem:[#allocation5] sm:$0xff] %vm358_vm0, %v2070_v0 }
  0x15 PF: > { %v374_v1 = vld [vmem:[%s2647_s3 + $0x38] sm:$0xff]  ;;  %v373_v2 = vld [vmem:[%s2647_s3 + $0x30] sm:$0xff]  ;;  %v372_v5 = vld [vmem:[%s2647_s3 + $0x28] sm:$0xff]  ;;  %vm382_vm1 = vcmask 523264   ;;  %v2071_v21 = vmov 0.0   ;;  %vm624_vm2 = vcmask 261120  }
  0x16   : > { %v1746_v3 = vld [vmem:[%s2647_s3 + $0x78] sm:$0xff]  ;;  %1848 = vmatprep.subr.mxu0 %v374_v1  ;;  %v1745_v4 = vld [vmem:[%s2647_s3 + $0x70] sm:$0xff]  ;;  %v1744_v6 = vld [vmem:[%s2647_s3 + $0x68] sm:$0xff]  ;;  %vm2072_vm3 = vmmov 0   ;;  %s2073_s12 = smov 32   ;;  %v2074_v62 = vmov 0  }
  0x17   : > { %1870 = vmatprep.subr.mxu1 %v1746_v3  ;;  %1849 = vmatpush3.msra.mxu0 %v374_v1  ;;  %v371_v7 = vld [vmem:[%s2647_s3 + $0x20] sm:$0xff]  ;;  %v370_v9 = vld [vmem:[%s2647_s3 + $0x18] sm:$0xff]  ;;  %v369_v11 = vld [vmem:[%s2647_s3 + $0x10] sm:$0xff]  ;;  %s2075_s18 = smov 64   ;;  %s2076_s23 = smov 96  }
  0x18   : > { %1871 = vmatpush3.msra.mxu1 %v1746_v3  ;;  %1850 = vmatprep.subr.mxu0 %v373_v2  ;;  %v1743_v8 = vld [vmem:[%s2647_s3 + $0x60] sm:$0xff]  ;;  %v1742_v10 = vld [vmem:[%s2647_s3 + $0x58] sm:$0xff]  ;;  %v1741_v12 = vld [vmem:[%s2647_s3 + $0x50] sm:$0xff]  ;;  %s1073_s24 = sadd.s32 1, %s2134_s29  ;;  %s1076_s26 = sadd.s32 2, %s2138_s9 }
  0x19   : > { %1872 = vmatprep.subr.mxu1 %v1745_v4  ;;  %1851 = vmatpush3.msra.mxu0 %v373_v2  ;;  %v368_v13 = vld [vmem:[%s2647_s3 + $0x8] sm:$0xff]  ;;  %v363_v14 = vld [vmem:[%s2146_s15] sm:$0xff]  ;;  %v2218_v19 = vld [vmem:[%s2648_s4 + $0x18] sm:$0xff]  ;;  %s1311_s30 = sadd.s32 2, %s2134_s29  ;;  %s1314_s10 = sadd.s32 1, %s2138_s9 }
  0x1a   : > { %1873 = vmatpush3.msra.mxu1 %v1745_v4  ;;  %1852 = vmatprep.subr.mxu0 %v372_v5  ;;  %v1740_v15 = vld [vmem:[%s2647_s3 + $0x48] sm:$0xff]  ;;  %v367_v16 = vld [vmem:[%s2647_s3] sm:$0xff]  ;;  %v365_v22 = vld [vmem:[%s2146_s15 + $0x10] sm:$0xff]  ;;  %p1781_p6 = scmp.ne.s32.totalorder %s2129_s28, 1 }
  0x1b   : > { %1874 = vmatprep.subr.mxu1 %v1744_v6  ;;  %1853 = vmatpush3.msra.mxu0 %v372_v5  ;;  %v1739_v17 = vld [vmem:[%s2647_s3 + $0x40] sm:$0xff]  ;;  %v364_v18 = vld [vmem:[%s2146_s15 + $0x8] sm:$0xff]  ;;  %v2229_v24 = vld [vmem:[%s2648_s4 + $0x10] sm:$0xff] }
  0x1c   : > { %1875 = vmatpush3.msra.mxu1 %v1744_v6  ;;  %1854 = vmatprep.subr.mxu0 %v371_v7  ;;  %v484_v20 = vld [vmem:[%s2151_s19] sm:$0xff]  ;;  %v485_v23 = vld [vmem:[%s2151_s19 + $0x8] sm:$0xff]  ;;  %v366_v25 = vld [vmem:[%s2146_s15 + $0x18] sm:$0xff]  ;;  %s833_s15 = sadd.s32 3, %s2138_s9 }
  0x1d   : > { %1876 = vmatprep.subr.mxu1 %v1743_v8  ;;  %1855 = vmatpush3.msra.mxu0 %v371_v7  ;;  %v2239_v26 = vld [vmem:[%s2648_s4 + $0x38] sm:$0xff]  ;;  %v2244_v27 = vld [vmem:[%s2648_s4 + $0x8] sm:$0xff]  ;;  %v486_v28 = vld [vmem:[%s2151_s19 + $0x10] sm:$0xff] }
  0x1e   : > { %1877 = vmatpush3.msra.mxu1 %v1743_v8  ;;  %1856 = vmatprep.subr.mxu0 %v370_v9  ;;  %v2254_v29 = vld [vmem:[%s2648_s4 + $0x30] sm:$0xff]  ;;  %v487_v30 = vld [vmem:[%s2151_s19 + $0x18] sm:$0xff]  ;;  %v2262_v31 = vld [vmem:[%s2648_s4] sm:$0xff]  ;;  %v831_v8 = vstv %s2134_s29  ;;  %s1548_s19 = sadd.s32 3, %s2134_s29  ;;  %s2077_s29 = smov (!%p1781_p6), 64  }
  0x1f   : > { %1878 = vmatprep.subr.mxu1 %v1742_v10  ;;  %1857 = vmatpush3.msra.mxu0 %v370_v9  ;;  %v2268_v32 = vld [vmem:[#allocation2] sm:$0xff]  ;;  %v2273_v33 = vld [vmem:[%s2648_s4 + $0x28] sm:$0xff]  ;;  %v2288_v36 = vld [vmem:[#allocation4] sm:$0xff] }
  0x20   : > { %1879 = vmatpush3.msra.mxu1 %v1742_v10  ;;  %1858 = vmatprep.subr.mxu0 %v369_v11  ;;  %v2283_v34 = vld [vmem:[%s2648_s4 + $0x20] sm:$0xff]  ;;  %v620_v35 = vld [vmem:[#allocation3] sm:$0xff]  ;;  %v622_v37 = vld [vmem:[#allocation5] sm:$0xff] }
  0x21   : > { %1880 = vmatprep.subr.mxu1 %v1741_v12  ;;  %1859 = vmatpush3.msra.mxu0 %v369_v11  ;;  %v1734_v38 = vld [vmem:[%s2649_s5] ss:$0 sm:$0xff]  ;;  %v1748_v41 = vld [vmem:[%s2649_s5 + $0x1] ss:$0 sm:$0xff] }
  0x22   : > { %1881 = vmatpush3.msra.mxu1 %v1741_v12  ;;  %1860 = vmatprep.subr.mxu0 %v368_v13  ;;  %v2345_v7 = vld [vmem:[%s2646_s2] sm:$0xff]  ;;  %v834_v12 = vstv %s833_s15 }
  0x23   : > { %1864 = vmatprep.mubr.msk.f32.mxu0 %vm382_vm1, %v363_v14  ;;  %1861 = vmatpush3.msra.mxu0 %v368_v13  ;;  %vm832_vm4 = vcmp.lt.s32.totalorder %v831_v8, %v2345_v7  ;;  %vm835_vm5 = vcmp.lt.s32.totalorder %v834_v12, %v2345_v7 }
  0x24   : > { %1882 = vmatprep.subr.mxu1 %v1740_v15  ;;  %1862 = vmatprep.subr.mxu0 %v367_v16 }
  0x25   : > { %1883 = vmatpush3.msra.mxu1 %v1740_v15  ;;  %1863 = vmatpush3.msra.mxu0 %v367_v16  ;;  %v836_v15 = vsel %vm832_vm4, 1, %v2074_v62 }
  0x26   : > { %1884 = vmatprep.subr.mxu1 %v1739_v17  ;;  %1865 = vmatmul.mubr.msk.f32.vlgmr.msra.gmra.mxu0 %vm382_vm1, %v364_v18 }
  0x27   : > { %1892 = vmatprep.subr.mxu0 %v2071_v21  ;;  %1885 = vmatpush3.msra.mxu1 %v1739_v17  ;;  %v847_v17 = vsel %vm835_vm5, 1, %v2074_v62 }
  0x28   : > { %1893 = vmatpush3.msra.mxu0 %v2218_v19  ;;  %1886 = vmatprep.mubr.msk.f32.mxu1 %vm382_vm1, %v484_v20 }
  0x29   : > { %1894 = vmatprep.subr.mxu0 %v2071_v21  ;;  %1867 = vmatprep.mubr.msk.f32.mxu0 %vm382_vm1, %v365_v22 }
  0x2a   : > { %1887 = vmatmul.mubr.msk.f32.vlgmr.msra.gmra.mxu1 %vm382_vm1, %v485_v23  ;;  %1895 = vmatpush3.msra.mxu0 %v2229_v24 }
  0x2b   : > { %1903 = vmatprep.subr.mxu1 %v2071_v21  ;;  %1868 = vmatmul.mubr.msk.f32.gmra.mxu0 %vm382_vm1, %v366_v25 }
  0x2c   : > { %1896 = vmatprep.subr.mxu0 %v2071_v21  ;;  %1904 = vmatpush3.msra.mxu1 %v2239_v26 }
  0x2d   : > { %1897 = vmatpush3.msra.mxu0 %v2244_v27  ;;  %1905 = vmatprep.subr.mxu1 %v2071_v21 }
  0x2e   : > { %1889 = vmatprep.mubr.msk.f32.mxu1 %vm382_vm1, %v486_v28  ;;  %1898 = vmatprep.subr.mxu0 %v2071_v21 }
  0x2f   : > { %1906 = vmatpush3.msra.mxu1 %v2254_v29  ;;  %1899 = vmatpush3.msra.mxu0 %v2262_v31 }
  0x30   : > { %1890 = vmatmul.mubr.msk.f32.gmra.mxu1 %vm382_vm1, %v487_v30  ;;  %1900 = vmatprep.mubr.msk.f32.mxu0 %vm2072_vm3, %v2071_v21 }
  0x31   : > { %1907 = vmatprep.subr.mxu1 %v2071_v21  ;;  %1901 = vmatmul.mubr.msk.f32.vlgmr.msra.gmra.mxu0 %vm624_vm2, %v2268_v32 }
  0x32   : > { %1908 = vmatpush3.msra.mxu1 %v2273_v33  ;;  %1911 = vmatprep.mubr.msk.f32.mxu1 %vm2072_vm3, %v2071_v21 }
  0x33   : > { %1909 = vmatprep.subr.mxu1 %v2071_v21  ;;  %783 = vrot.lane.b32.xlu1 %v620_v35, %s2073_s12 }
  0x34   : > { %1910 = vmatpush3.msra.mxu1 %v2283_v34  ;;  %1914 = vmatprep.subr.mxu0 %v2071_v21 }
  0x35   : > { %1912 = vmatmul.mubr.msk.f32.vlgmr.msra.gmra.mxu1 %vm624_vm2, %v2288_v36  ;;  %1915 = vmatpush3.msra.mxu0 %v2218_v19 }
  0x36   : > { %1925 = vmatprep.subr.mxu1 %v2071_v21  ;;  %1916 = vmatprep.subr.mxu0 %v2071_v21 }
  0x37   : > { %1926 = vmatpush3.msra.mxu1 %v2239_v26  ;;  %811 = vrot.lane.b32.xlu1 %v622_v37, %s2073_s12 }
  0x38   : > { %1917 = vmatpush3.msra.mxu0 %v2229_v24  ;;  %1927 = vmatprep.subr.mxu1 %v2071_v21 }
  0x39   : > { %1918 = vmatprep.subr.mxu0 %v2071_v21  ;;  %1922 = vmatprep.mubr.msk.f32.mxu0 %vm2072_vm3, %v2071_v21 }
  0x3a   : > { %1919 = vmatpush3.msra.mxu0 %v2244_v27  ;;  %1928 = vmatpush3.msra.mxu1 %v2254_v29 }
  0x3b   : > { %1920 = vmatprep.subr.mxu0 %v2071_v21  ;;  %1929 = vmatprep.subr.mxu1 %v2071_v21 }
  0x3c   : > { %1921 = vmatpush3.msra.mxu0 %v2262_v31  ;;  %1930 = vmatpush3.msra.mxu1 %v2273_v33 }
  0x3d   : > { %1933 = vmatprep.mubr.msk.f32.mxu1 %vm2072_vm3, %v2071_v21  ;;  %1931 = vmatprep.subr.mxu1 %v2071_v21 }
  0x3e   : > { %1936 = vmatprep.subr.mxu0 %v2071_v21  ;;  %1932 = vmatpush3.msra.mxu1 %v2283_v34 }
  0x3f   : > { %1947 = vmatprep.subr.mxu1 %v2071_v21  ;;  %1996 = vset.pattern.permute.xlu0 %v2074_v62 }
  0x40   : > { %1997 = vset.pattern.permute.xlu1 %v2074_v62 }
  0xa5   : > { %v2355_v18 = vpop.permute.xlu1 %783 }
  0xa9   : > { %v2358_v22 = vpop.permute.xlu1 %811 }
  0xe6   : > { %v1866_v39 = vpop.f32.mrf.mxu0 }
  0xe7   : > { %v2323_v40 = vadd.f32 %v1866_v39, %v1734_v38 }
  0xe8   : > { %v461_v42 = vpop.f32.mrf.mxu0 }
  0xe9   : > { %v462_v52 = vadd.f32 %v1734_v38, %v461_v42 }
  0xea   : > { %v1888_v43 = vpop.f32.mrf.mxu1 }
  0xeb   : > { %v2328_v44 = vadd.f32 %v1888_v43, %v1748_v41  ;;  %v1869_v45 = vpop.f32.mrf.mxu0 }
  0xec   : > { %v583_v46 = vpop.f32.mrf.mxu1  ;;  %v2330_v47 = vadd.f32 %v1869_v45, %v1734_v38 }
  0xed   : > { %v2332_v48 = vadd.f32 %v1748_v41, %v583_v46  ;;  %v471_v49 = vpop.f32.mrf.mxu0 }
  0xee   : > { %v2334_v50 = vadd.f32 %v1734_v38, %v471_v49 }
  0xf0   : > { %v1891_v51 = vpop.f32.mrf.mxu1 }
  0xf1   : > { %v599_v53 = vadd.f32 %v1891_v51, %v1748_v41  ;;  %v694_v54 = vpop.f32.mrf.mxu0 }
  0xf2   : > { %v593_v55 = vpop.f32.mrf.mxu1  ;;  %v698_v56 = vadd.f32 %v694_v54, %v462_v52 }
  0xf3   : > { %v2336_v57 = vadd.f32 %v1748_v41, %v593_v55  ;;  %v1902_v58 = vpop.f32.mrf.mxu0 }
  0xf4   : > { %1998 = vtanh.f32 %v698_v56  ;;  %v1761_v1 = vmul.f32 -1.442695, %v698_v56 }
  0xf5   : > { %v770_v59 = vpop.f32.mrf.mxu1 }
  0xf6   : > { %v774_v60 = vadd.f32 %v770_v59, %v599_v53 }
  0xf7   : > { %v1913_v61 = vpop.f32.mrf.mxu1 }
  0xf8   : > { %2000 = vtanh.f32 %v774_v60  ;;  %v1762_v2 = vmul.f32 -1.442695, %v774_v60 }
  0xf9   : > { %2002 = vpow2.f32 %v1761_v1 }
  0xfa   : > { %2004 = vpow2.f32 %v1762_v2 }
 0x101   : > { %v1999_v63 = vpop.eup %1998 }
 0x102   : > { %788 = vrot.lane.b32.xlu0 %v1999_v63, %s2075_s18 }
 0x105   : > { %v2001_v0 = vpop.eup %2000 }
 0x106   : > { %816 = vrot.lane.b32.xlu0 %v2001_v0, %s2075_s18  ;;  %v2003_v3 = vpop.eup %2002 }
 0x107   : > { %v778_v4 = vadd.f32 1.0, %v2003_v3  ;;  %v2005_v5 = vpop.eup %2004 }
 0x108   : > { %v806_v6 = vadd.f32 1.0, %v2005_v5 }
 0x109   : > { %2006 = vrcp.f32 %v778_v4 }
 0x10a   : > { %2008 = vrcp.f32 %v806_v6 }
 0x116   : > { %v2007_v9 = vpop.eup %2006 }
 0x117   : > { %v2009_v13 = vpop.eup %2008  ;;  %v786_v20 = vmul.f32 %v2007_v9, %v2355_v18 }
 0x118   : > { %v814_v28 = vmul.f32 %v2009_v13, %v2358_v22 }
 0x174   : > { %v789_v10 = vpop.permute.xlu0 %788 }
 0x175   : > { %v791_v11 = vmul.f32 %v2007_v9, %v789_v10 }
 0x177   : > { %793 = vrot.lane.b32.xlu0 %v791_v11, %s2073_s12 }
 0x178   : > { %v817_v14 = vpop.permute.xlu0 %816 }
 0x179   : > { %v819_v16 = vmul.f32 %v2009_v13, %v817_v14 }
 0x17b   : > { %821 = vrot.lane.b32.xlu1 %v819_v16, %s2073_s12  ;;  %838 = vperm.xlu0 %1996, %v836_v15  }
 0x17f   : > { %849 = vperm.xlu1 %1997, %v847_v17  }
 0x1e9   : > { %v794_v23 = vpop.permute.xlu0 %793 }
 0x1ea   : > { %v2360_v25 = vadd.f32 %v794_v23, %v786_v20 }
 0x1ec   : > { %2010 = vtanh.f32 %v2360_v25 }
 0x1ed   : > { %v822_v30 = vpop.permute.xlu1 %821 }
 0x1ee   : > { %v2364_v35 = vadd.f32 %v822_v30, %v814_v28 }
 0x1f0   : > { %2012 = vtanh.f32 %v2364_v35 }
 0x1f6   : > { %v2375_v41 = vpop.permute.xlu0 %838 }
 0x1f7   : > { %vm840_vm6 = vcmp.eq.s32.totalorder %v2375_v41, 1 }
 0x1f8   : > { %v2435_v15 = vsel %vm840_vm6, %v2360_v25, %v2355_v18 }
 0x1f9   : > { %v2011_v37 = vpop.eup %2010 }
 0x1fa   : > { %799 = vrot.lane.b32.xlu1 %v2011_v37, %s2075_s18  ;;  %v2373_v39 = vpop.permute.xlu1 %849 }
 0x1fb   : > { %vm851_vm7 = vcmp.eq.s32.totalorder %v2373_v39, 1 }
 0x1fc   : > { %v2444_v23 = vsel %vm851_vm7, %v2364_v35, %v2358_v22 }
 0x1fd   : > { %v2013_v38 = vpop.eup %2012 }
 0x1fe   : > { %827 = vrot.lane.b32.xlu0 %v2013_v38, %s2075_s18  ;;  %859 = vrot.lane.b32.xlu1 %v2268_v32, %s2076_s23 }
 0x202   : > { %864 = vrot.lane.b32.xlu0 %v2288_v36, %s2076_s23 }
 0x26c   : > { %v800_v42 = vpop.permute.xlu1 %799 }
 0x26d   : > { %v2377_v43 = vmul.f32 %v2007_v9, %v800_v42  ;;  %v1077_v9 = vstv %s1076_s26 }
 0x26e   : > { %vm1078_vm9 = vcmp.lt.s32.totalorder %v1077_v9, %v2345_v7 }
 0x26f   : > { %v1091_v14 = vsel %vm1078_vm9, 1, %v2074_v62 }
 0x270   : > { %v828_v45 = vpop.permute.xlu0 %827  ;;  %v860_v46 = vpop.permute.xlu1 %859 }
 0x271   : > { %v2383_v49 = vsel %vm840_vm6, %v2377_v43, %v860_v46  ;;  %v2387_v32 = vmul.f32 %v2009_v13, %v828_v45 }
 0x272   : > { %872 = vrot.lane.b32.xlu1 %v2383_v49, %s2073_s12 }
 0x274   : > { %v865_v36 = vpop.permute.xlu0 %864 }
 0x275   : > { %v2393_v51 = vsel %vm851_vm7, %v2387_v32, %v865_v36 }
 0x276   : > { %950 = vrot.lane.b32.xlu0 %v2393_v51, %s2073_s12 }
 0x2e4   : > { %v873_v52 = vpop.permute.xlu1 %872 }
 0x2e5   : > { %1923 = vmatmul.mubr.msk.f32.vlgmr.msra.gmra.mxu0 %vm624_vm2, %v873_v52 }
 0x2e6   : > { %1937 = vmatpush3.msra.mxu0 %v2218_v19  ;;  %1944 = vmatprep.mubr.msk.f32.mxu0 %vm2072_vm3, %v2071_v21 }
 0x2e7   : > { %1938 = vmatprep.subr.mxu0 %v2071_v21 }
 0x2e8   : > { %v951_v53 = vpop.permute.xlu0 %950  ;;  %1939 = vmatpush3.msra.mxu0 %v2229_v24 }
 0x2e9   : > { %1934 = vmatmul.mubr.msk.f32.vlgmr.msra.gmra.mxu1 %vm624_vm2, %v951_v53  ;;  %1940 = vmatprep.subr.mxu0 %v2071_v21 }
 0x2ea   : > { %1941 = vmatpush3.msra.mxu0 %v2244_v27  ;;  %1948 = vmatpush3.msra.mxu1 %v2239_v26 }
 0x2eb   : > { %1942 = vmatprep.subr.mxu0 %v2071_v21  ;;  %1949 = vmatprep.subr.mxu1 %v2071_v21 }
 0x2ec   : > { %1943 = vmatpush3.msra.mxu0 %v2262_v31  ;;  %1950 = vmatpush3.msra.mxu1 %v2254_v29 }
 0x2ed   : > { %1951 = vmatprep.subr.mxu1 %v2071_v21  ;;  %1955 = vmatprep.mubr.msk.f32.mxu1 %vm2072_vm3, %v2071_v21 }
 0x2ee   : > { %1952 = vmatpush3.msra.mxu1 %v2273_v33  ;;  %1958 = vmatprep.subr.mxu0 %v2071_v21 }
 0x2ef   : > { %1953 = vmatprep.subr.mxu1 %v2071_v21 }
 0x2f0   : > { %1954 = vmatpush3.msra.mxu1 %v2283_v34 }
 0x2f1   : > { %1969 = vmatprep.subr.mxu1 %v2071_v21 }
 0x3a5   : > { %v942_v54 = vpop.f32.mrf.mxu0 }
 0x3a6   : > { %v946_v55 = vadd.f32 %v942_v54, %v2323_v40 }
 0x3a7   : > { %v1924_v56 = vpop.f32.mrf.mxu0 }
 0x3a8   : > { %2014 = vtanh.f32 %v946_v55  ;;  %v1766_v0 = vmul.f32 -1.442695, %v946_v55 }
 0x3a9   : > { %v1020_v58 = vpop.f32.mrf.mxu1 }
 0x3aa   : > { %v1024_v59 = vadd.f32 %v1020_v58, %v2336_v57  ;;  %v1074_v57 = vstv %s1073_s24 }
 0x3ab   : > { %v1935_v60 = vpop.f32.mrf.mxu1  ;;  %vm1075_vm8 = vcmp.lt.s32.totalorder %v1074_v57, %v2345_v7 }
 0x3ac   : > { %2016 = vtanh.f32 %v1024_v59  ;;  %v1767_v1 = vmul.f32 -1.442695, %v1024_v59  ;;  %v1079_v12 = vsel %vm1075_vm8, 1, %v2074_v62 }
 0x3ad   : > { %2018 = vpow2.f32 %v1766_v0 }
 0x3ae   : > { %2020 = vpow2.f32 %v1767_v1 }
 0x3b5   : > { %v2015_v61 = vpop.eup %2014 }
 0x3b6   : > { %1034 = vrot.lane.b32.xlu1 %v2015_v61, %s2075_s18  ;;  %v1315_v61 = vstv %s1314_s10 }
 0x3b7   : > { %vm1316_vm13 = vcmp.lt.s32.totalorder %v1315_v61, %v2345_v7 }
 0x3b9   : > { %v2017_v63 = vpop.eup %2016 }
 0x3ba   : > { %1058 = vrot.lane.b32.xlu0 %v2017_v63, %s2075_s18  ;;  %v2019_v40 = vpop.eup %2018 }
 0x3bb   : > { %v1028_v2 = vadd.f32 1.0, %v2019_v40  ;;  %v2021_v3 = vpop.eup %2020 }
 0x3bc   : > { %v1052_v4 = vadd.f32 1.0, %v2021_v3 }
 0x3bd   : > { %2022 = vrcp.f32 %v1028_v2  ;;  %v1329_v2 = vsel %vm1316_vm13, 1, %v2074_v62 }
 0x3be   : > { %2024 = vrcp.f32 %v1052_v4 }
 0x3ca   : > { %v2023_v5 = vpop.eup %2022 }
 0x3cb   : > { %v2025_v10 = vpop.eup %2024  ;;  %v1032_v16 = vmul.f32 %v2023_v5, %v2435_v15 }
 0x3cc   : > { %v1056_v28 = vmul.f32 %v2025_v10, %v2444_v23 }
 0x428   : > { %v1035_v6 = vpop.permute.xlu1 %1034 }
 0x429   : > { %v1037_v8 = vmul.f32 %v2023_v5, %v1035_v6 }
 0x42b   : > { %1039 = vrot.lane.b32.xlu1 %v1037_v8, %s2073_s12 }
 0x42c   : > { %v1059_v11 = vpop.permute.xlu0 %1058 }
 0x42d   : > { %v1061_v13 = vmul.f32 %v2025_v10, %v1059_v11 }
 0x42f   : > { %1063 = vrot.lane.b32.xlu0 %v1061_v13, %s2073_s12  ;;  %1081 = vperm.xlu1 %1997, %v1079_v12  }
 0x433   : > { %1093 = vperm.xlu0 %1996, %v1091_v14  }
 0x49d   : > { %v1040_v17 = vpop.permute.xlu1 %1039 }
 0x49e   : > { %v2438_v20 = vadd.f32 %v1040_v17, %v1032_v16 }
 0x4a0   : > { %2026 = vtanh.f32 %v2438_v20 }
 0x4a1   : > { %v1064_v30 = vpop.permute.xlu0 %1063 }
 0x4a2   : > { %v2448_v37 = vadd.f32 %v1064_v30, %v1056_v28 }
 0x4a4   : > { %2028 = vtanh.f32 %v2448_v37 }
 0x4aa   : > { %v2453_v38 = vpop.permute.xlu1 %1081 }
 0x4ab   : > { %vm1083_vm10 = vcmp.eq.s32.totalorder %v2453_v38, 1 }
 0x4ac   : > { %v2515_v3 = vsel %vm1083_vm10, %v2438_v20, %v2435_v15 }
 0x4ad   : > { %v2027_v18 = vpop.eup %2026 }
 0x4ae   : > { %1045 = vrot.lane.b32.xlu1 %v2027_v18, %s2075_s18  ;;  %v2455_v42 = vpop.permute.xlu0 %1093 }
 0x4af   : > { %vm1095_vm11 = vcmp.eq.s32.totalorder %v2455_v42, 1 }
 0x4b0   : > { %v2524_v6 = vsel %vm1095_vm11, %v2448_v37, %v2444_v23 }
 0x4b1   : > { %v2029_v25 = vpop.eup %2028 }
 0x4b2   : > { %1069 = vrot.lane.b32.xlu0 %v2029_v25, %s2075_s18 }
 0x520   : > { %v1046_v22 = vpop.permute.xlu1 %1045 }
 0x521   : > { %v2457_v35 = vmul.f32 %v2023_v5, %v1046_v22 }
 0x523   : > { %v2464_v45 = vsel %vm1083_vm10, %v2457_v35, %v2383_v49 }
 0x524   : > { %v1070_v46 = vpop.permute.xlu0 %1069  ;;  %1110 = vrot.lane.b32.xlu1 %v2464_v45, %s2073_s12 }
 0x525   : > { %v2468_v36 = vmul.f32 %v2025_v10, %v1070_v46 }
 0x527   : > { %v2475_v52 = vsel %vm1095_vm11, %v2468_v36, %v2393_v51  ;;  %v1096_v41 = vsel %vm1095_vm11, %v2468_v36, 0.0 }
 0x528   : > { %1188 = vrot.lane.b32.xlu0 %v2475_v52, %s2073_s12 }
 0x596   : > { %v1111_v53 = vpop.permute.xlu1 %1110 }
 0x597   : > { %1945 = vmatmul.mubr.msk.f32.vlgmr.msra.gmra.mxu0 %vm624_vm2, %v1111_v53 }
 0x598   : > { %1959 = vmatpush3.msra.mxu0 %v2218_v19  ;;  %1966 = vmatprep.mubr.msk.f32.mxu0 %vm2072_vm3, %v2071_v21 }
 0x599   : > { %1960 = vmatprep.subr.mxu0 %v2071_v21 }
 0x59a   : > { %v1189_v49 = vpop.permute.xlu0 %1188  ;;  %1961 = vmatpush3.msra.mxu0 %v2229_v24 }
 0x59b   : > { %1956 = vmatmul.mubr.msk.f32.vlgmr.msra.gmra.mxu1 %vm624_vm2, %v1189_v49  ;;  %1962 = vmatprep.subr.mxu0 %v2071_v21 }
 0x59c   : > { %1963 = vmatpush3.msra.mxu0 %v2244_v27  ;;  %1970 = vmatpush3.msra.mxu1 %v2239_v26 }
 0x59d   : > { %1964 = vmatprep.subr.mxu0 %v2071_v21  ;;  %1971 = vmatprep.subr.mxu1 %v2071_v21 }
 0x59e   : > { %1965 = vmatpush3.msra.mxu0 %v2262_v31  ;;  %1972 = vmatpush3.msra.mxu1 %v2254_v29 }
 0x59f   : > { %1973 = vmatprep.subr.mxu1 %v2071_v21  ;;  %1977 = vmatprep.mubr.msk.f32.mxu1 %vm2072_vm3, %v2071_v21 }
 0x5a0   : > { %1974 = vmatpush3.msra.mxu1 %v2273_v33 }
 0x5a1   : > { %1975 = vmatprep.subr.mxu1 %v2071_v21 }
 0x5a2   : > { %1976 = vmatpush3.msra.mxu1 %v2283_v34 }
 0x657   : > { %v1180_v19 = vpop.f32.mrf.mxu0 }
 0x658   : > { %v1184_v24 = vadd.f32 %v1180_v19, %v2334_v50 }
 0x659   : > { %v1946_v26 = vpop.f32.mrf.mxu0 }
 0x65a   : > { %2030 = vtanh.f32 %v1184_v24  ;;  %v1772_v21 = vmul.f32 -1.442695, %v1184_v24 }
 0x65b   : > { %v1258_v27 = vpop.f32.mrf.mxu1 }
 0x65c   : > { %v1262_v31 = vadd.f32 %v1258_v27, %v2328_v44  ;;  %v1312_v44 = vstv %s1311_s30 }
 0x65d   : > { %v1957_v29 = vpop.f32.mrf.mxu1  ;;  %vm1313_vm12 = vcmp.lt.s32.totalorder %v1312_v44, %v2345_v7 }
 0x65e   : > { %2032 = vtanh.f32 %v1262_v31  ;;  %v1773_v34 = vmul.f32 -1.442695, %v1262_v31  ;;  %v1317_v1 = vsel %vm1313_vm12, 1, %v2074_v62 }
 0x65f   : > { %2034 = vpow2.f32 %v1772_v21  ;;  %v1551_v21 = vstv %s2138_s9 }
 0x660   : > { %2036 = vpow2.f32 %v1773_v34  ;;  %vm1552_vm3 = vcmp.lt.s32.totalorder %v1551_v21, %v2345_v7 }
 0x667   : > { %v2031_v51 = vpop.eup %2030 }
 0x668   : > { %1272 = vrot.lane.b32.xlu1 %v2031_v51, %s2075_s18 }
 0x66b   : > { %v2033_v33 = vpop.eup %2032 }
 0x66c   : > { %1296 = vrot.lane.b32.xlu0 %v2033_v33, %s2075_s18  ;;  %v2035_v50 = vpop.eup %2034 }
 0x66d   : > { %v1266_v54 = vadd.f32 1.0, %v2035_v50  ;;  %v2037_v55 = vpop.eup %2036 }
 0x66e   : > { %v1290_v56 = vadd.f32 1.0, %v2037_v55 }
 0x66f   : > { %2038 = vrcp.f32 %v1266_v54 }
 0x670   : > { %2040 = vrcp.f32 %v1290_v56  ;;  %v1565_v56 = vsel %vm1552_vm3, 1, %v2074_v62 }
 0x67c   : > { %v2039_v58 = vpop.eup %2038 }
 0x67d   : > { %v2041_v63 = vpop.eup %2040  ;;  %v1270_v4 = vmul.f32 %v2039_v58, %v2515_v3 }
 0x67e   : > { %v1294_v8 = vmul.f32 %v2041_v63, %v2524_v6 }
 0x6da   : > { %v1273_v59 = vpop.permute.xlu1 %1272 }
 0x6db   : > { %v1275_v60 = vmul.f32 %v2039_v58, %v1273_v59 }
 0x6dd   : > { %1277 = vrot.lane.b32.xlu1 %v1275_v60, %s2073_s12 }
 0x6de   : > { %v1297_v0 = vpop.permute.xlu0 %1296 }
 0x6df   : > { %v1299_v40 = vmul.f32 %v2041_v63, %v1297_v0 }
 0x6e1   : > { %1301 = vrot.lane.b32.xlu0 %v1299_v40, %s2073_s12  ;;  %1319 = vperm.xlu1 %1997, %v1317_v1   ;;  %v841_v40 = vsel %vm840_vm6, %v2377_v43, 0.0 }
 0x6e5   : > { %1331 = vperm.xlu0 %1996, %v1329_v2   ;;  %v852_v2 = vsel %vm851_vm7, %v2387_v32, 0.0 }
 0x74f   : > { %v1278_v57 = vpop.permute.xlu1 %1277 }
 0x750   : > { %v2518_v5 = vadd.f32 %v1278_v57, %v1270_v4 }
 0x752   : > { %2042 = vtanh.f32 %v2518_v5 }
 0x753   : > { %v1302_v9 = vpop.permute.xlu0 %1301 }
 0x754   : > { %v2528_v10 = vadd.f32 %v1302_v9, %v1294_v8 }
 0x756   : > { %2044 = vtanh.f32 %v2528_v10 }
 0x75c   : > { %v2533_v13 = vpop.permute.xlu1 %1319 }
 0x75d   : > { %vm1321_vm14 = vcmp.eq.s32.totalorder %v2533_v13, 1 }
 0x75e   : > { %v1342_v44 = vsel %vm1321_vm14, %v2518_v5, %v2515_v3  ;;  %v1084_v3 = vsel %vm1083_vm10, %v2457_v35, 0.0 }
 0x75f   : > { %v2043_v11 = vpop.eup %2042 }
 0x760   : > { %1283 = vrot.lane.b32.xlu1 %v2043_v11, %s2075_s18  ;;  %v2535_v14 = vpop.permute.xlu0 %1331 }
 0x761   : > { %vm1333_vm15 = vcmp.eq.s32.totalorder %v2535_v14, 1 }
 0x762   : > { %v1344_v61 = vsel %vm1333_vm15, %v2528_v10, %v2524_v6 }
 0x763   : > { %v2045_v12 = vpop.eup %2044 }
 0x764   : > { %1307 = vrot.lane.b32.xlu0 %v2045_v12, %s2075_s18 }
 0x7d2   : > { %v1284_v15 = vpop.permute.xlu1 %1283 }
 0x7d3   : > { %v2537_v16 = vmul.f32 %v2039_v58, %v1284_v15 }
 0x7d5   : > { %v2544_v17 = vsel %vm1321_vm14, %v2537_v16, %v2464_v45  ;;  %v1322_v43 = vsel %vm1321_vm14, %v2537_v16, 0.0 }
 0x7d6   : > { %v1308_v20 = vpop.permute.xlu0 %1307  ;;  %1348 = vrot.lane.b32.xlu1 %v2544_v17, %s2073_s12 }
 0x7d7   : > { %v2548_v23 = vmul.f32 %v2041_v63, %v1308_v20 }
 0x7d9   : > { %v2555_v28 = vsel %vm1333_vm15, %v2548_v23, %v2475_v52  ;;  %v1334_v32 = vsel %vm1333_vm15, %v2548_v23, 0.0 }
 0x7da   : > { %1425 = vrot.lane.b32.xlu0 %v2555_v28, %s2073_s12 }
 0x848   : > { %v1349_v30 = vpop.permute.xlu1 %1348 }
 0x849   : > { %1967 = vmatmul.mubr.msk.f32.vlgmr.msra.gmra.mxu0 %vm624_vm2, %v1349_v30 }
 0x84c   : > { %v1426_v37 = vpop.permute.xlu0 %1425 }
 0x84d   : > { %1978 = vmatmul.mubr.msk.f32.vlgmr.msra.gmra.mxu1 %vm624_vm2, %v1426_v37 }
 0x909   : > { %v1418_v18 = vpop.f32.mrf.mxu0 }
 0x90a   : > { %v1422_v25 = vadd.f32 %v1418_v18, %v2330_v47 }
 0x90b   : > { %v1968_v22 = vpop.f32.mrf.mxu0 }
 0x90c   : > { %2046 = vtanh.f32 %v1422_v25  ;;  %v1778_v19 = vmul.f32 -1.442695, %v1422_v25 }
 0x90d   : > { %v1495_v45 = vpop.f32.mrf.mxu1 }
 0x90e   : > { %v1499_v46 = vadd.f32 %v1495_v45, %v2332_v48  ;;  %v1549_v48 = vstv %s1548_s19 }
 0x90f   : > { %v1979_v53 = vpop.f32.mrf.mxu1  ;;  %vm1550_vm0 = vcmp.lt.s32.totalorder %v1549_v48, %v2345_v7 }
 0x910   : > { %2048 = vtanh.f32 %v1499_v46  ;;  %v1779_v24 = vmul.f32 -1.442695, %v1499_v46  ;;  %v1553_v54 = vsel %vm1550_vm0, 1, %v2074_v62 }
 0x911   : > { %2050 = vpow2.f32 %v1778_v19 }
 0x912   : > { %2052 = vpow2.f32 %v1779_v24 }
 0x919   : > { %v2047_v52 = vpop.eup %2046 }
 0x91a   : > { %1509 = vrot.lane.b32.xlu1 %v2047_v52, %s2075_s18 }
 0x91d   : > { %v2049_v49 = vpop.eup %2048 }
 0x91e   : > { %1533 = vrot.lane.b32.xlu0 %v2049_v49, %s2075_s18  ;;  %v2051_v47 = vpop.eup %2050 }
 0x91f   : > { %v1503_v26 = vadd.f32 1.0, %v2051_v47  ;;  %v2053_v27 = vpop.eup %2052 }
 0x920   : > { %v1527_v31 = vadd.f32 1.0, %v2053_v27 }
 0x921   : > { %2054 = vrcp.f32 %v1503_v26 }
 0x922   : > { %2056 = vrcp.f32 %v1527_v31 }
 0x92e   : > { %v2055_v29 = vpop.eup %2054 }
 0x92f   : > { %v2057_v34 = vpop.eup %2056  ;;  %v1507_v58 = vmul.f32 %v2055_v29, %v1342_v44 }
 0x930   : > { %v1531_v7 = vmul.f32 %v2057_v34, %v1344_v61 }
 0x98c   : > { %v1510_v51 = vpop.permute.xlu1 %1509 }
 0x98d   : > { %v1512_v33 = vmul.f32 %v2055_v29, %v1510_v51 }
 0x98f   : > { %1514 = vrot.lane.b32.xlu1 %v1512_v33, %s2073_s12 }
 0x990   : > { %v1534_v50 = vpop.permute.xlu0 %1533 }
 0x991   : > { %v1536_v55 = vmul.f32 %v2057_v34, %v1534_v50 }
 0x993   : > { %1538 = vrot.lane.b32.xlu0 %v1536_v55, %s2073_s12  ;;  %1555 = vperm.xlu1 %1997, %v1553_v54  }
 0x997   : > { %1567 = vperm.xlu0 %1996, %v1565_v56  }
 0xa01   : > { %v1515_v59 = vpop.permute.xlu1 %1514 }
 0xa02   : > { %v1517_v60 = vadd.f32 %v1515_v59, %v1507_v58 }
 0xa04   : > { %2058 = vtanh.f32 %v1517_v60 }
 0xa05   : > { %v1539_v63 = vpop.permute.xlu0 %1538 }
 0xa06   : > { %v1541_v0 = vadd.f32 %v1539_v63, %v1531_v7 }
 0xa08   : > { %2060 = vtanh.f32 %v1541_v0 }
 0xa0e   : > { %v1556_v39 = vpop.permute.xlu1 %1555 }
 0xa0f   : > { %vm1557_vm4 = vcmp.eq.s32.totalorder %v1556_v39, 1 }
 0xa10   : > { %v1577_v38 = vsel %vm1557_vm4, %v1517_v60, %v1342_v44 }
 0xa11   : > { %v2059_v62 = vpop.eup %2058 }
 0xa12   : > { %1520 = vrot.lane.b32.xlu1 %v2059_v62, %s2075_s18  ;;  %v1568_v42 = vpop.permute.xlu0 %1567 }
 0xa13   : > { %vm1569_vm5 = vcmp.eq.s32.totalorder %v1568_v42, 1 }
 0xa14   : > { %v1579_v12 = vsel %vm1569_vm5, %v1541_v0, %v1344_v61 }
 0xa15   : > { %v2061_v1 = vpop.eup %2060 }
 0xa16   : > { %1544 = vrot.lane.b32.xlu0 %v2061_v1, %s2075_s18  ;;  %843 = vrot.lane.b32.xlu1 %v841_v40, %s2073_s12 }
 0xa1a   : > { %854 = vrot.lane.b32.xlu0 %v852_v2, %s2073_s12  ;;  %1086 = vrot.lane.b32.xlu1 %v1084_v3, %s2073_s12 }
 0xa1e   : > { %1098 = vrot.lane.b32.xlu0 %v1096_v41, %s2073_s12  ;;  %1324 = vrot.lane.b32.xlu1 %v1322_v43, %s2073_s12 }
 0xa22   : > { %1336 = vrot.lane.b32.xlu0 %v1334_v32, %s2073_s12 }
 0xa26   : > { %1586 = vrot.lane.b32.xlu0 %v1577_v38, %s2076_s23 }
 0xa84   : > { %v1521_v35 = vpop.permute.xlu1 %1520 }
 0xa85   : > { %v1523_v36 = vmul.f32 %v2055_v29, %v1521_v35 }
 0xa87   : > { %v1558_v4 = vsel %vm1557_vm4, %v1523_v36, 0.0  ;;  %v1576_v9 = vsel %vm1557_vm4, %v1523_v36, %v2544_v17 }
 0xa88   : > { %v1545_v57 = vpop.permute.xlu0 %1544  ;;  %1560 = vrot.lane.b32.xlu1 %v1558_v4, %s2073_s12  ;;  %v844_v5 = vpop.permute.xlu1 %843 }
 0xa89   : > { %v1547_v6 = vmul.f32 %v2057_v34, %v1545_v57  ;;  %846 = vst.msk [vmem:[%s2156_s22] sm:$0xff] %vm624_vm2, %v844_v5 }
 0xa8b   : > { %v1570_v8 = vsel %vm1569_vm5, %v1547_v6, 0.0  ;;  %v1578_v13 = vsel %vm1569_vm5, %v1547_v6, %v2555_v28 }
 0xa8c   : > { %v855_v10 = vpop.permute.xlu0 %854  ;;  %1572 = vrot.lane.b32.xlu0 %v1570_v8, %s2073_s12  ;;  %1581 = vrot.lane.b32.xlu1 %v1576_v9, %s2073_s12  ;;  %v1087_v11 = vpop.permute.xlu1 %1086 }
 0xa8d   : > { %1763 = vst.msk [vmem:[%s2161_s25 + $0x18] sm:$0xff] %vm624_vm2, %v855_v10  ;;  %1768 = vst.msk [vmem:[%s2156_s22 + $0x8] sm:$0xff] %vm624_vm2, %v1087_v11 }
 0xa90   : > { %v1099_v14 = vpop.permute.xlu0 %1098  ;;  %1596 = vrot.lane.b32.xlu0 %v1579_v12, %s2076_s23  ;;  %1591 = vrot.lane.b32.xlu1 %v1578_v13, %s2073_s12  ;;  %v1325_v15 = vpop.permute.xlu1 %1324 }
 0xa91   : > { %1769 = vst.msk [vmem:[%s2161_s25 + $0x10] sm:$0xff] %vm624_vm2, %v1099_v14  ;;  %1774 = vst.msk [vmem:[%s2156_s22 + $0x10] sm:$0xff] %vm624_vm2, %v1325_v15 }
 0xa94   : > { %v1337_v16 = vpop.permute.xlu0 %1336 }
 0xa95   : > { %1775 = vst.msk [vmem:[%s2161_s25 + $0x8] sm:$0xff] %vm624_vm2, %v1337_v16 }
 0xa98   : > { %v1587_v17 = vpop.permute.xlu0 %1586 }
 0xa99   : > { %1589 = vst.msk [vmem:[#allocation3] sm:$0xff] %vm624_vm2, %v1587_v17 }
 0xafa   : > { %v1561_v20 = vpop.permute.xlu1 %1560 }
 0xafb   : > { %1780 = vst.msk [vmem:[%s2156_s22 + $0x18] sm:$0xff] %vm624_vm2, %v1561_v20 }
 0xafe   : > { %v1573_v23 = vpop.permute.xlu0 %1572  ;;  %v1582_v28 = vpop.permute.xlu1 %1581 }
 0xaff   : > { %1575 = vst.msk [vmem:[%s2161_s25] sm:$0xff] %vm624_vm2, %v1573_v23  ;;  %1584 = vst.msk [vmem:[#allocation2] sm:$0xff] %vm624_vm2, %v1582_v28  ;;  %1603 = sbr.rel (%p1781_p6) target bundleno = 2937 (0xb79), region = 52 }
 0xb02   : > { %v1597_v30 = vpop.permute.xlu0 %1596  ;;  %v1592_v37 = vpop.permute.xlu1 %1591 }
 0xb03   : > { %1599 = vst.msk [vmem:[#allocation5] sm:$0xff] %vm624_vm2, %v1597_v30  ;;  %1594 = vst.msk [vmem:[#allocation4] sm:$0xff] %vm624_vm2, %v1592_v37 }
 0xb04   : > { %1604 = vrot.lane.b32.xlu0 %v1578_v13, %s2077_s29 }
 0xb76   : > { %v1605_v18 = vpop.permute.xlu0 %1604 }
 0xb77   : > { %v1607_v25 = vsel %vm624_vm2, %v1582_v28, %v1605_v18 }
 0xb78   : > { %1608 = vst.msk [vmem:[%s2652_s8] sm:$0xff] %vm382_vm1, %v1607_v25 }
 0xb79 PF: > { %s19_s27 = sadd.s32 1, %s2068_s27  }
 0xb7a   : > { %p16_p7 = scmp.ge.s32.totalorder %s19_s27, 4  }
 0xb7c   :  { %18 = sbr.rel (!%p16_p7) target bundleno = 1 (0x1), region = 120 }

</bundles_post_ra>
